<compile_context>
chip_gen: v7x
topology: tpu7x:2x2x1
jax: 0.10.0
libtpu: 0.0.40
codegen_flags: <defaults>
</compile_context>

<pallas_src>
import jax
import jax.numpy as jnp
from jax.experimental import pallas as pl
from jax.experimental.pallas import tpu as pltpu

# ---- model config (matches the module's __init__ args + PyTorch defaults) ----
SEQ = 8
BATCH = 2
D_MODEL = 32          # input_dim
NUM_HEADS = 4         # num_heads
NUM_LAYERS = 2        # num_layers
OUTPUT_DIM = 8        # output_dim
DIM_FF = 2048         # nn.TransformerEncoderLayer default dim_feedforward
HEAD_DIM = D_MODEL // NUM_HEADS
LN_EPS = 1e-5

ROWS = BATCH * SEQ            # batch folded into rows (sublanes): one (16, 32) slab
O_PAD = 4 * D_MODEL           # 128: fused-weight lane width == padded output width
assert O_PAD == 128 and O_PAD >= OUTPUT_DIM

# packed small-vector slab: 7 rows per layer + 1 row for bfc, padded to 8-sublane tile
_VECS_PER_LAYER = 7
VEC_ROWS = 16
assert NUM_LAYERS * _VECS_PER_LAYER + 1 <= VEC_ROWS


def _layer_norm(v, gamma, beta):
    mean = jnp.mean(v, axis=-1, keepdims=True)
    var = jnp.mean((v - mean) ** 2, axis=-1, keepdims=True)
    return (v - mean) * jax.lax.rsqrt(var + LN_EPS) * gamma + beta


def transformer_kernel(
    x_ref,         # (ROWS, D)              f32
    wattn_ref,     # (L+1, D, 4D)           bf16  [Wq|Wk|Wv|Wout] per layer; row L = padded Wfc
    w1_ref,        # (L, D, F)              bf16
    b1_ref,        # (L, F)                 f32
    w2_ref,        # (L, F, D)              bf16
    vecs_ref,      # (VEC_ROWS, 4D)         f32   packed biases / LN params
    out_ref,       # (ROWS, O_PAD)          f32
):
    x = x_ref[...].astype(jnp.float32)                              # (ROWS, D)
    vecs = vecs_ref[...]                                            # (VEC_ROWS, 4D)

    for l in range(NUM_LAYERS):              # static unroll over layers
        base = l * _VECS_PER_LAYER
        bqkv = vecs[base + 0:base + 1, :3 * D_MODEL]                # (1, 3D)
        bout = vecs[base + 1:base + 2, :D_MODEL]                    # (1, D)
        g1   = vecs[base + 2:base + 3, :D_MODEL]
        be1  = vecs[base + 3:base + 4, :D_MODEL]
        b2   = vecs[base + 4:base + 5, :D_MODEL]
        g2   = vecs[base + 5:base + 6, :D_MODEL]
        be2  = vecs[base + 6:base + 7, :D_MODEL]

        wattn_l = wattn_ref[l]                                      # (D, 4D) bf16

        # ---- QKV projection: one full 128-lane matmul on the (B*S, D) slab.
        # (1/sqrt(head_dim) already folded into the Q columns / bias.)
        qkvo = jnp.dot(x.astype(jnp.bfloat16), wattn_l,
                       preferred_element_type=jnp.float32)          # (ROWS, 4D)
        qkv = qkvo[:, :3 * D_MODEL] + bqkv
        q = qkv[:, 0 * D_MODEL:1 * D_MODEL]
        k = qkv[:, 1 * D_MODEL:2 * D_MODEL]
        v = qkv[:, 2 * D_MODEL:3 * D_MODEL]

        # ---- multi-head self-attention: per-(batch, head) scores, heads
        #      re-concatenated so the output projection is ONE matmul ------
        ctx_rows = []
        for b in range(BATCH):               # static unroll over batch
            r0, r1 = b * SEQ, (b + 1) * SEQ
            qb, kb, vb = q[r0:r1], k[r0:r1], v[r0:r1]
            heads = []
            for h in range(NUM_HEADS):       # static unroll over heads
                c0, c1 = h * HEAD_DIM, (h + 1) * HEAD_DIM
                s = jnp.dot(qb[:, c0:c1], kb[:, c0:c1].T,
                            preferred_element_type=jnp.float32)     # (S, S)
                s = s - jnp.max(s, axis=-1, keepdims=True)
                p = jnp.exp(s)
                p = p * pl.reciprocal(jnp.sum(p, axis=-1, keepdims=True),
                                      approx=True)
                heads.append(jnp.dot(p, vb[:, c0:c1],
                                     preferred_element_type=jnp.float32))
            ctx_rows.append(jnp.concatenate(heads, axis=-1))         # (S, D)
        ctx = jnp.concatenate(ctx_rows, axis=0)                      # (ROWS, D)

        # ---- attention output projection: same fused slab, take Wout cols.
        attn = jnp.dot(ctx.astype(jnp.bfloat16), wattn_l,
                       preferred_element_type=jnp.float32)[:, 3 * D_MODEL:] + bout
        x = _layer_norm(x + attn, g1, be1)

        # ---- feed-forward -----------------------------------------------
        h1 = jnp.dot(x.astype(jnp.bfloat16), w1_ref[l],
                     preferred_element_type=jnp.float32) + b1_ref[l:l + 1, :]
        h1 = jnp.maximum(h1, 0.0)            # relu (default activation)
        ff = jnp.dot(h1.astype(jnp.bfloat16), w2_ref[l],
                     preferred_element_type=jnp.float32) + b2
        x = _layer_norm(x + ff, g2, be2)

    # ---- final fc: row L of the fused slab, lane-padded to O_PAD ---------
    bfc = vecs[NUM_LAYERS * _VECS_PER_LAYER:NUM_LAYERS * _VECS_PER_LAYER + 1, :]
    out = jnp.dot(x.astype(jnp.bfloat16), wattn_ref[NUM_LAYERS],
                  preferred_element_type=jnp.float32) + bfc
    out_ref[...] = out.astype(out_ref.dtype)


def _prepare_kernel_params(params):
    """bf16 fused weight slabs, softmax scale folded into Q, packed small vectors."""
    scale = jnp.float32(1.0 / (HEAD_DIM ** 0.5))
    wqkv = params["wqkv"].at[:, :, :D_MODEL].multiply(scale)          # (L, D, 3D)
    bqkv = params["bqkv"].at[:, :, :D_MODEL].multiply(scale)          # (L, 1, 3D)

    # fused attention / fc weight slab: [Wq|Wk|Wv|Wout] per layer, fc as layer L
    wattn = jnp.zeros((NUM_LAYERS + 1, D_MODEL, 4 * D_MODEL), jnp.float32)
    wattn = wattn.at[:NUM_LAYERS, :, :3 * D_MODEL].set(wqkv)
    wattn = wattn.at[:NUM_LAYERS, :, 3 * D_MODEL:].set(params["wout"])
    wattn = wattn.at[NUM_LAYERS, :, :OUTPUT_DIM].set(params["wfc"])

    # packed small per-layer f32 vectors (single DMA)
    vecs = jnp.zeros((VEC_ROWS, 4 * D_MODEL), jnp.float32)
    for l in range(NUM_LAYERS):
        base = l * _VECS_PER_LAYER
        vecs = vecs.at[base + 0, :3 * D_MODEL].set(bqkv[l, 0])
        vecs = vecs.at[base + 1, :D_MODEL].set(params["bout"][l, 0])
        vecs = vecs.at[base + 2, :D_MODEL].set(params["g1"][l, 0])
        vecs = vecs.at[base + 3, :D_MODEL].set(params["be1"][l, 0])
        vecs = vecs.at[base + 4, :D_MODEL].set(params["b2"][l, 0])
        vecs = vecs.at[base + 5, :D_MODEL].set(params["g2"][l, 0])
        vecs = vecs.at[base + 6, :D_MODEL].set(params["be2"][l, 0])
    vecs = vecs.at[NUM_LAYERS * _VECS_PER_LAYER, :OUTPUT_DIM].set(params["bfc"][0])

    return (
        wattn.astype(jnp.bfloat16),
        params["w1"].astype(jnp.bfloat16),
        params["b1"].reshape(NUM_LAYERS, DIM_FF),
        params["w2"].astype(jnp.bfloat16),
        vecs,
    )


def transformer_forward(x_sbd, params):
    """x_sbd: (SEQ, BATCH, D_MODEL) float32, returns (SEQ, BATCH, OUTPUT_DIM)."""
    x_rows = (jnp.transpose(x_sbd, (1, 0, 2))
              .astype(jnp.float32)
              .reshape(ROWS, D_MODEL))                    # (B*S, D), batch-major rows
    kparams = _prepare_kernel_params(params)

    vmem_spec = pl.BlockSpec(memory_space=pltpu.MemorySpace.VMEM)
    out_pad = pl.pallas_call(
        transformer_kernel,
        out_shape=jax.ShapeDtypeStruct((ROWS, O_PAD), jnp.float32),
        in_specs=[vmem_spec] * (1 + len(kparams)),
        out_specs=vmem_spec,
    )(x_rows, *kparams)

    out = out_pad[:, :OUTPUT_DIM].reshape(BATCH, SEQ, OUTPUT_DIM)
    return jnp.transpose(out, (1, 0, 2))


def reference_forward(x_sbd, params):
    """Pure-JAX f32 reference of the same math (for a sanity check)."""
    x = jnp.transpose(x_sbd, (1, 0, 2)).astype(jnp.float32)   # (B, S, D)
    for l in range(NUM_LAYERS):
        qkv = x @ params["wqkv"][l] + params["bqkv"][l]
        q, k, v = jnp.split(qkv, 3, axis=-1)
        B, S, D = q.shape
        qh = q.reshape(B, S, NUM_HEADS, HEAD_DIM).transpose(0, 2, 1, 3)
        kh = k.reshape(B, S, NUM_HEADS, HEAD_DIM).transpose(0, 2, 1, 3)
        vh = v.reshape(B, S, NUM_HEADS, HEAD_DIM).transpose(0, 2, 1, 3)
        s = jnp.einsum("bhqd,bhkd->bhqk", qh, kh) / jnp.float32(HEAD_DIM ** 0.5)
        p = jax.nn.softmax(s, axis=-1)
        o = jnp.einsum("bhqk,bhkd->bhqd", p, vh).transpose(0, 2, 1, 3).reshape(B, S, D)
        attn = o @ params["wout"][l] + params["bout"][l]
        x = _layer_norm(x + attn, params["g1"][l], params["be1"][l])
        h1 = jax.nn.relu(x @ params["w1"][l] + params["b1"][l])
        ff = h1 @ params["w2"][l] + params["b2"][l]
        x = _layer_norm(x + ff, params["g2"][l], params["be2"][l])
    out = x @ params["wfc"] + params["bfc"]
    return jnp.transpose(out, (1, 0, 2))


def init_params(key):
    """Deterministic synthetic parameters (weights stored pre-transposed: y = x @ W)."""
    ks = jax.random.split(key, 8)
    sc = 0.05
    L, D, F, O = NUM_LAYERS, D_MODEL, DIM_FF, OUTPUT_DIM
    return {
        "wqkv": sc * jax.random.normal(ks[0], (L, D, 3 * D), jnp.float32),
        "bqkv": sc * jax.random.normal(ks[1], (L, 1, 3 * D), jnp.float32),
        "wout": sc * jax.random.normal(ks[2], (L, D, D), jnp.float32),
        "bout": sc * jax.random.normal(ks[3], (L, 1, D), jnp.float32),
        "g1": jnp.ones((L, 1, D), jnp.float32),
        "be1": jnp.zeros((L, 1, D), jnp.float32),
        "w1": sc * jax.random.normal(ks[4], (L, D, F), jnp.float32),
        "b1": sc * jax.random.normal(ks[5], (L, 1, F), jnp.float32),
        "w2": sc * jax.random.normal(ks[6], (L, F, D), jnp.float32),
        "b2": jnp.zeros((L, 1, D), jnp.float32),
        "g2": jnp.ones((L, 1, D), jnp.float32),
        "be2": jnp.zeros((L, 1, D), jnp.float32),
        "wfc": sc * jax.random.normal(ks[7], (D, O), jnp.float32),
        "bfc": jnp.zeros((1, O), jnp.float32),
    }


if __name__ == "__main__":
    key = jax.random.PRNGKey(0)
    k_x, k_p = jax.random.split(key)
    # PyTorch layout (batch_first=False): (seq, batch, d_model)
    x = jax.random.normal(k_x, (SEQ, BATCH, D_MODEL), jnp.float32)
    params = init_params(k_p)

    fwd = jax.jit(transformer_forward)
    out = jax.block_until_ready(fwd(x, params))

    ref = jax.block_until_ready(reference_forward(x, params))
    assert out.shape == (SEQ, BATCH, OUTPUT_DIM)
    # bf16 weights in the kernel vs f32 reference -> loose-ish tolerance
    assert jnp.allclose(out, ref, rtol=2e-2, atol=2e-2), "mismatch vs reference"

    print("KERNEL_OK")
</pallas_src>

<mosaic_0001>
module attributes {stable_mosaic.version = 11 : i64} {
  func.func @transformer_kernel(%arg0: memref<16x32xf32, #tpu.memory_space<vmem>>, %arg1: memref<3x32x128xbf16, #tpu.memory_space<vmem>>, %arg2: memref<2x32x2048xbf16, #tpu.memory_space<vmem>>, %arg3: memref<2x2048xf32, #tpu.memory_space<vmem>>, %arg4: memref<2x2048x32xbf16, #tpu.memory_space<vmem>>, %arg5: memref<16x128xf32, #tpu.memory_space<vmem>>, %arg6: memref<16x128xf32, #tpu.memory_space<vmem>>) attributes {dimension_semantics = [], scalar_prefetch = 0 : i64, scratch_operands = 0 : i64, tpu.core_type = #tpu.core_type<tc>} {
    %c0 = arith.constant 0 : index
    %c0_0 = arith.constant 0 : index
    %0 = vector.load %arg0[%c0, %c0_0] : memref<16x32xf32, #tpu.memory_space<vmem>>, vector<16x32xf32>
    %c0_1 = arith.constant 0 : index
    %c0_2 = arith.constant 0 : index
    %1 = vector.load %arg5[%c0_1, %c0_2] : memref<16x128xf32, #tpu.memory_space<vmem>>, vector<16x128xf32>
    %2 = vector.extract_strided_slice %1 {offsets = [0, 0], sizes = [1, 96], strides = [1, 1]} : vector<16x128xf32> to vector<1x96xf32>
    %3 = vector.extract_strided_slice %1 {offsets = [1, 0], sizes = [1, 32], strides = [1, 1]} : vector<16x128xf32> to vector<1x32xf32>
    %4 = vector.extract_strided_slice %1 {offsets = [2, 0], sizes = [1, 32], strides = [1, 1]} : vector<16x128xf32> to vector<1x32xf32>
    %5 = vector.extract_strided_slice %1 {offsets = [3, 0], sizes = [1, 32], strides = [1, 1]} : vector<16x128xf32> to vector<1x32xf32>
    %6 = vector.extract_strided_slice %1 {offsets = [4, 0], sizes = [1, 32], strides = [1, 1]} : vector<16x128xf32> to vector<1x32xf32>
    %7 = vector.extract_strided_slice %1 {offsets = [5, 0], sizes = [1, 32], strides = [1, 1]} : vector<16x128xf32> to vector<1x32xf32>
    %8 = vector.extract_strided_slice %1 {offsets = [6, 0], sizes = [1, 32], strides = [1, 1]} : vector<16x128xf32> to vector<1x32xf32>
    %c0_3 = arith.constant 0 : index
    %c0_4 = arith.constant 0 : index
    %c0_5 = arith.constant 0 : index
    %9 = vector.load %arg1[%c0_3, %c0_4, %c0_5] : memref<3x32x128xbf16, #tpu.memory_space<vmem>>, vector<1x32x128xbf16>
    %10 = vector.shape_cast %9 : vector<1x32x128xbf16> to vector<32x128xbf16>
    %11 = arith.truncf %0 : vector<16x32xf32> to vector<16x32xbf16>
    %cst = arith.constant dense<0.000000e+00> : vector<16x128xf32>
    %12 = tpu.matmul %11, %10, %cst {dimension_numbers = #tpu.dot_dimension_numbers<[1], [0], [0], [1], [0, 0, 1, 1], [], []>} : vector<16x32xbf16>, vector<32x128xbf16>, vector<16x128xf32> -> vector<16x128xf32>
    %13 = vector.extract_strided_slice %12 {offsets = [0, 0], sizes = [16, 96], strides = [1, 1]} : vector<16x128xf32> to vector<16x96xf32>
    %14 = vector.broadcast %2 : vector<1x96xf32> to vector<16x96xf32>
    %15 = arith.addf %13, %14 : vector<16x96xf32>
    %16 = vector.extract_strided_slice %15 {offsets = [0, 0], sizes = [16, 32], strides = [1, 1]} : vector<16x96xf32> to vector<16x32xf32>
    %17 = vector.extract_strided_slice %15 {offsets = [0, 32], sizes = [16, 32], strides = [1, 1]} : vector<16x96xf32> to vector<16x32xf32>
    %18 = vector.extract_strided_slice %15 {offsets = [0, 64], sizes = [16, 32], strides = [1, 1]} : vector<16x96xf32> to vector<16x32xf32>
    %19 = vector.extract_strided_slice %16 {offsets = [0, 0], sizes = [8, 32], strides = [1, 1]} : vector<16x32xf32> to vector<8x32xf32>
    %20 = vector.extract_strided_slice %17 {offsets = [0, 0], sizes = [8, 32], strides = [1, 1]} : vector<16x32xf32> to vector<8x32xf32>
    %21 = vector.extract_strided_slice %18 {offsets = [0, 0], sizes = [8, 32], strides = [1, 1]} : vector<16x32xf32> to vector<8x32xf32>
    %22 = vector.extract_strided_slice %19 {offsets = [0, 0], sizes = [8, 8], strides = [1, 1]} : vector<8x32xf32> to vector<8x8xf32>
    %23 = vector.extract_strided_slice %20 {offsets = [0, 0], sizes = [8, 8], strides = [1, 1]} : vector<8x32xf32> to vector<8x8xf32>
    %24 = tpu.transpose %23, [1, 0] : vector<8x8xf32> -> vector<8x8xf32>
    %cst_6 = arith.constant dense<0.000000e+00> : vector<8x8xf32>
    %25 = tpu.matmul %22, %24, %cst_6 {dimension_numbers = #tpu.dot_dimension_numbers<[1], [0], [0], [1], [0, 0, 1, 1], [], []>} : vector<8x8xf32>, vector<8x8xf32>, vector<8x8xf32> -> vector<8x8xf32>
    %cst_7 = arith.constant dense<0xFF800000> : vector<8xf32>
    %26 = vector.multi_reduction <maximumf>, %25, %cst_7 [1] : vector<8x8xf32> to vector<8xf32>
    %27 = vector.shape_cast %26 : vector<8xf32> to vector<8x1xf32>
    %28 = vector.broadcast %27 : vector<8x1xf32> to vector<8x8xf32>
    %29 = arith.subf %25, %28 : vector<8x8xf32>
    %30 = math.exp %29 : vector<8x8xf32>
    %cst_8 = arith.constant dense<0.000000e+00> : vector<8xf32>
    %31 = vector.multi_reduction <add>, %30, %cst_8 [1] : vector<8x8xf32> to vector<8xf32>
    %32 = vector.shape_cast %31 : vector<8xf32> to vector<8x1xf32>
    %33 = tpu.reciprocal %32 {approx = true} : vector<8x1xf32> -> vector<8x1xf32>
    %34 = vector.broadcast %33 : vector<8x1xf32> to vector<8x8xf32>
    %35 = arith.mulf %30, %34 : vector<8x8xf32>
    %36 = vector.extract_strided_slice %21 {offsets = [0, 0], sizes = [8, 8], strides = [1, 1]} : vector<8x32xf32> to vector<8x8xf32>
    %cst_9 = arith.constant dense<0.000000e+00> : vector<8x8xf32>
    %37 = tpu.matmul %35, %36, %cst_9 {dimension_numbers = #tpu.dot_dimension_numbers<[1], [0], [0], [1], [0, 0, 1, 1], [], []>} : vector<8x8xf32>, vector<8x8xf32>, vector<8x8xf32> -> vector<8x8xf32>
    %38 = vector.extract_strided_slice %19 {offsets = [0, 8], sizes = [8, 8], strides = [1, 1]} : vector<8x32xf32> to vector<8x8xf32>
    %39 = vector.extract_strided_slice %20 {offsets = [0, 8], sizes = [8, 8], strides = [1, 1]} : vector<8x32xf32> to vector<8x8xf32>
    %40 = tpu.transpose %39, [1, 0] : vector<8x8xf32> -> vector<8x8xf32>
    %cst_10 = arith.constant dense<0.000000e+00> : vector<8x8xf32>
    %41 = tpu.matmul %38, %40, %cst_10 {dimension_numbers = #tpu.dot_dimension_numbers<[1], [0], [0], [1], [0, 0, 1, 1], [], []>} : vector<8x8xf32>, vector<8x8xf32>, vector<8x8xf32> -> vector<8x8xf32>
    %cst_11 = arith.constant dense<0xFF800000> : vector<8xf32>
    %42 = vector.multi_reduction <maximumf>, %41, %cst_11 [1] : vector<8x8xf32> to vector<8xf32>
    %43 = vector.shape_cast %42 : vector<8xf32> to vector<8x1xf32>
    %44 = vector.broadcast %43 : vector<8x1xf32> to vector<8x8xf32>
    %45 = arith.subf %41, %44 : vector<8x8xf32>
    %46 = math.exp %45 : vector<8x8xf32>
    %cst_12 = arith.constant dense<0.000000e+00> : vector<8xf32>
    %47 = vector.multi_reduction <add>, %46, %cst_12 [1] : vector<8x8xf32> to vector<8xf32>
    %48 = vector.shape_cast %47 : vector<8xf32> to vector<8x1xf32>
    %49 = tpu.reciprocal %48 {approx = true} : vector<8x1xf32> -> vector<8x1xf32>
    %50 = vector.broadcast %49 : vector<8x1xf32> to vector<8x8xf32>
    %51 = arith.mulf %46, %50 : vector<8x8xf32>
    %52 = vector.extract_strided_slice %21 {offsets = [0, 8], sizes = [8, 8], strides = [1, 1]} : vector<8x32xf32> to vector<8x8xf32>
    %cst_13 = arith.constant dense<0.000000e+00> : vector<8x8xf32>
    %53 = tpu.matmul %51, %52, %cst_13 {dimension_numbers = #tpu.dot_dimension_numbers<[1], [0], [0], [1], [0, 0, 1, 1], [], []>} : vector<8x8xf32>, vector<8x8xf32>, vector<8x8xf32> -> vector<8x8xf32>
    %54 = vector.extract_strided_slice %19 {offsets = [0, 16], sizes = [8, 8], strides = [1, 1]} : vector<8x32xf32> to vector<8x8xf32>
    %55 = vector.extract_strided_slice %20 {offsets = [0, 16], sizes = [8, 8], strides = [1, 1]} : vector<8x32xf32> to vector<8x8xf32>
    %56 = tpu.transpose %55, [1, 0] : vector<8x8xf32> -> vector<8x8xf32>
    %cst_14 = arith.constant dense<0.000000e+00> : vector<8x8xf32>
    %57 = tpu.matmul %54, %56, %cst_14 {dimension_numbers = #tpu.dot_dimension_numbers<[1], [0], [0], [1], [0, 0, 1, 1], [], []>} : vector<8x8xf32>, vector<8x8xf32>, vector<8x8xf32> -> vector<8x8xf32>
    %cst_15 = arith.constant dense<0xFF800000> : vector<8xf32>
    %58 = vector.multi_reduction <maximumf>, %57, %cst_15 [1] : vector<8x8xf32> to vector<8xf32>
    %59 = vector.shape_cast %58 : vector<8xf32> to vector<8x1xf32>
    %60 = vector.broadcast %59 : vector<8x1xf32> to vector<8x8xf32>
    %61 = arith.subf %57, %60 : vector<8x8xf32>
    %62 = math.exp %61 : vector<8x8xf32>
    %cst_16 = arith.constant dense<0.000000e+00> : vector<8xf32>
    %63 = vector.multi_reduction <add>, %62, %cst_16 [1] : vector<8x8xf32> to vector<8xf32>
    %64 = vector.shape_cast %63 : vector<8xf32> to vector<8x1xf32>
    %65 = tpu.reciprocal %64 {approx = true} : vector<8x1xf32> -> vector<8x1xf32>
    %66 = vector.broadcast %65 : vector<8x1xf32> to vector<8x8xf32>
    %67 = arith.mulf %62, %66 : vector<8x8xf32>
    %68 = vector.extract_strided_slice %21 {offsets = [0, 16], sizes = [8, 8], strides = [1, 1]} : vector<8x32xf32> to vector<8x8xf32>
    %cst_17 = arith.constant dense<0.000000e+00> : vector<8x8xf32>
    %69 = tpu.matmul %67, %68, %cst_17 {dimension_numbers = #tpu.dot_dimension_numbers<[1], [0], [0], [1], [0, 0, 1, 1], [], []>} : vector<8x8xf32>, vector<8x8xf32>, vector<8x8xf32> -> vector<8x8xf32>
    %70 = vector.extract_strided_slice %19 {offsets = [0, 24], sizes = [8, 8], strides = [1, 1]} : vector<8x32xf32> to vector<8x8xf32>
    %71 = vector.extract_strided_slice %20 {offsets = [0, 24], sizes = [8, 8], strides = [1, 1]} : vector<8x32xf32> to vector<8x8xf32>
    %72 = tpu.transpose %71, [1, 0] : vector<8x8xf32> -> vector<8x8xf32>
    %cst_18 = arith.constant dense<0.000000e+00> : vector<8x8xf32>
    %73 = tpu.matmul %70, %72, %cst_18 {dimension_numbers = #tpu.dot_dimension_numbers<[1], [0], [0], [1], [0, 0, 1, 1], [], []>} : vector<8x8xf32>, vector<8x8xf32>, vector<8x8xf32> -> vector<8x8xf32>
    %cst_19 = arith.constant dense<0xFF800000> : vector<8xf32>
    %74 = vector.multi_reduction <maximumf>, %73, %cst_19 [1] : vector<8x8xf32> to vector<8xf32>
    %75 = vector.shape_cast %74 : vector<8xf32> to vector<8x1xf32>
    %76 = vector.broadcast %75 : vector<8x1xf32> to vector<8x8xf32>
    %77 = arith.subf %73, %76 : vector<8x8xf32>
    %78 = math.exp %77 : vector<8x8xf32>
    %cst_20 = arith.constant dense<0.000000e+00> : vector<8xf32>
    %79 = vector.multi_reduction <add>, %78, %cst_20 [1] : vector<8x8xf32> to vector<8xf32>
    %80 = vector.shape_cast %79 : vector<8xf32> to vector<8x1xf32>
    %81 = tpu.reciprocal %80 {approx = true} : vector<8x1xf32> -> vector<8x1xf32>
    %82 = vector.broadcast %81 : vector<8x1xf32> to vector<8x8xf32>
    %83 = arith.mulf %78, %82 : vector<8x8xf32>
    %84 = vector.extract_strided_slice %21 {offsets = [0, 24], sizes = [8, 8], strides = [1, 1]} : vector<8x32xf32> to vector<8x8xf32>
    %cst_21 = arith.constant dense<0.000000e+00> : vector<8x8xf32>
    %85 = tpu.matmul %83, %84, %cst_21 {dimension_numbers = #tpu.dot_dimension_numbers<[1], [0], [0], [1], [0, 0, 1, 1], [], []>} : vector<8x8xf32>, vector<8x8xf32>, vector<8x8xf32> -> vector<8x8xf32>
    %86 = tpu.concatenate %37, %53, %69, %85 in 1 : vector<8x8xf32>, vector<8x8xf32>, vector<8x8xf32>, vector<8x8xf32> -> vector<8x32xf32>
    %87 = vector.extract_strided_slice %16 {offsets = [8, 0], sizes = [8, 32], strides = [1, 1]} : vector<16x32xf32> to vector<8x32xf32>
    %88 = vector.extract_strided_slice %17 {offsets = [8, 0], sizes = [8, 32], strides = [1, 1]} : vector<16x32xf32> to vector<8x32xf32>
    %89 = vector.extract_strided_slice %18 {offsets = [8, 0], sizes = [8, 32], strides = [1, 1]} : vector<16x32xf32> to vector<8x32xf32>
    %90 = vector.extract_strided_slice %87 {offsets = [0, 0], sizes = [8, 8], strides = [1, 1]} : vector<8x32xf32> to vector<8x8xf32>
    %91 = vector.extract_strided_slice %88 {offsets = [0, 0], sizes = [8, 8], strides = [1, 1]} : vector<8x32xf32> to vector<8x8xf32>
    %92 = tpu.transpose %91, [1, 0] : vector<8x8xf32> -> vector<8x8xf32>
    %cst_22 = arith.constant dense<0.000000e+00> : vector<8x8xf32>
    %93 = tpu.matmul %90, %92, %cst_22 {dimension_numbers = #tpu.dot_dimension_numbers<[1], [0], [0], [1], [0, 0, 1, 1], [], []>} : vector<8x8xf32>, vector<8x8xf32>, vector<8x8xf32> -> vector<8x8xf32>
    %cst_23 = arith.constant dense<0xFF800000> : vector<8xf32>
    %94 = vector.multi_reduction <maximumf>, %93, %cst_23 [1] : vector<8x8xf32> to vector<8xf32>
    %95 = vector.shape_cast %94 : vector<8xf32> to vector<8x1xf32>
    %96 = vector.broadcast %95 : vector<8x1xf32> to vector<8x8xf32>
    %97 = arith.subf %93, %96 : vector<8x8xf32>
    %98 = math.exp %97 : vector<8x8xf32>
    %cst_24 = arith.constant dense<0.000000e+00> : vector<8xf32>
    %99 = vector.multi_reduction <add>, %98, %cst_24 [1] : vector<8x8xf32> to vector<8xf32>
    %100 = vector.shape_cast %99 : vector<8xf32> to vector<8x1xf32>
    %101 = tpu.reciprocal %100 {approx = true} : vector<8x1xf32> -> vector<8x1xf32>
    %102 = vector.broadcast %101 : vector<8x1xf32> to vector<8x8xf32>
    %103 = arith.mulf %98, %102 : vector<8x8xf32>
    %104 = vector.extract_strided_slice %89 {offsets = [0, 0], sizes = [8, 8], strides = [1, 1]} : vector<8x32xf32> to vector<8x8xf32>
    %cst_25 = arith.constant dense<0.000000e+00> : vector<8x8xf32>
    %105 = tpu.matmul %103, %104, %cst_25 {dimension_numbers = #tpu.dot_dimension_numbers<[1], [0], [0], [1], [0, 0, 1, 1], [], []>} : vector<8x8xf32>, vector<8x8xf32>, vector<8x8xf32> -> vector<8x8xf32>
    %106 = vector.extract_strided_slice %87 {offsets = [0, 8], sizes = [8, 8], strides = [1, 1]} : vector<8x32xf32> to vector<8x8xf32>
    %107 = vector.extract_strided_slice %88 {offsets = [0, 8], sizes = [8, 8], strides = [1, 1]} : vector<8x32xf32> to vector<8x8xf32>
    %108 = tpu.transpose %107, [1, 0] : vector<8x8xf32> -> vector<8x8xf32>
    %cst_26 = arith.constant dense<0.000000e+00> : vector<8x8xf32>
    %109 = tpu.matmul %106, %108, %cst_26 {dimension_numbers = #tpu.dot_dimension_numbers<[1], [0], [0], [1], [0, 0, 1, 1], [], []>} : vector<8x8xf32>, vector<8x8xf32>, vector<8x8xf32> -> vector<8x8xf32>
    %cst_27 = arith.constant dense<0xFF800000> : vector<8xf32>
    %110 = vector.multi_reduction <maximumf>, %109, %cst_27 [1] : vector<8x8xf32> to vector<8xf32>
    %111 = vector.shape_cast %110 : vector<8xf32> to vector<8x1xf32>
    %112 = vector.broadcast %111 : vector<8x1xf32> to vector<8x8xf32>
    %113 = arith.subf %109, %112 : vector<8x8xf32>
    %114 = math.exp %113 : vector<8x8xf32>
    %cst_28 = arith.constant dense<0.000000e+00> : vector<8xf32>
    %115 = vector.multi_reduction <add>, %114, %cst_28 [1] : vector<8x8xf32> to vector<8xf32>
    %116 = vector.shape_cast %115 : vector<8xf32> to vector<8x1xf32>
    %117 = tpu.reciprocal %116 {approx = true} : vector<8x1xf32> -> vector<8x1xf32>
    %118 = vector.broadcast %117 : vector<8x1xf32> to vector<8x8xf32>
    %119 = arith.mulf %114, %118 : vector<8x8xf32>
    %120 = vector.extract_strided_slice %89 {offsets = [0, 8], sizes = [8, 8], strides = [1, 1]} : vector<8x32xf32> to vector<8x8xf32>
    %cst_29 = arith.constant dense<0.000000e+00> : vector<8x8xf32>
    %121 = tpu.matmul %119, %120, %cst_29 {dimension_numbers = #tpu.dot_dimension_numbers<[1], [0], [0], [1], [0, 0, 1, 1], [], []>} : vector<8x8xf32>, vector<8x8xf32>, vector<8x8xf32> -> vector<8x8xf32>
    %122 = vector.extract_strided_slice %87 {offsets = [0, 16], sizes = [8, 8], strides = [1, 1]} : vector<8x32xf32> to vector<8x8xf32>
    %123 = vector.extract_strided_slice %88 {offsets = [0, 16], sizes = [8, 8], strides = [1, 1]} : vector<8x32xf32> to vector<8x8xf32>
    %124 = tpu.transpose %123, [1, 0] : vector<8x8xf32> -> vector<8x8xf32>
    %cst_30 = arith.constant dense<0.000000e+00> : vector<8x8xf32>
    %125 = tpu.matmul %122, %124, %cst_30 {dimension_numbers = #tpu.dot_dimension_numbers<[1], [0], [0], [1], [0, 0, 1, 1], [], []>} : vector<8x8xf32>, vector<8x8xf32>, vector<8x8xf32> -> vector<8x8xf32>
    %cst_31 = arith.constant dense<0xFF800000> : vector<8xf32>
    %126 = vector.multi_reduction <maximumf>, %125, %cst_31 [1] : vector<8x8xf32> to vector<8xf32>
    %127 = vector.shape_cast %126 : vector<8xf32> to vector<8x1xf32>
    %128 = vector.broadcast %127 : vector<8x1xf32> to vector<8x8xf32>
    %129 = arith.subf %125, %128 : vector<8x8xf32>
    %130 = math.exp %129 : vector<8x8xf32>
    %cst_32 = arith.constant dense<0.000000e+00> : vector<8xf32>
    %131 = vector.multi_reduction <add>, %130, %cst_32 [1] : vector<8x8xf32> to vector<8xf32>
    %132 = vector.shape_cast %131 : vector<8xf32> to vector<8x1xf32>
    %133 = tpu.reciprocal %132 {approx = true} : vector<8x1xf32> -> vector<8x1xf32>
    %134 = vector.broadcast %133 : vector<8x1xf32> to vector<8x8xf32>
    %135 = arith.mulf %130, %134 : vector<8x8xf32>
    %136 = vector.extract_strided_slice %89 {offsets = [0, 16], sizes = [8, 8], strides = [1, 1]} : vector<8x32xf32> to vector<8x8xf32>
    %cst_33 = arith.constant dense<0.000000e+00> : vector<8x8xf32>
    %137 = tpu.matmul %135, %136, %cst_33 {dimension_numbers = #tpu.dot_dimension_numbers<[1], [0], [0], [1], [0, 0, 1, 1], [], []>} : vector<8x8xf32>, vector<8x8xf32>, vector<8x8xf32> -> vector<8x8xf32>
    %138 = vector.extract_strided_slice %87 {offsets = [0, 24], sizes = [8, 8], strides = [1, 1]} : vector<8x32xf32> to vector<8x8xf32>
    %139 = vector.extract_strided_slice %88 {offsets = [0, 24], sizes = [8, 8], strides = [1, 1]} : vector<8x32xf32> to vector<8x8xf32>
    %140 = tpu.transpose %139, [1, 0] : vector<8x8xf32> -> vector<8x8xf32>
    %cst_34 = arith.constant dense<0.000000e+00> : vector<8x8xf32>
    %141 = tpu.matmul %138, %140, %cst_34 {dimension_numbers = #tpu.dot_dimension_numbers<[1], [0], [0], [1], [0, 0, 1, 1], [], []>} : vector<8x8xf32>, vector<8x8xf32>, vector<8x8xf32> -> vector<8x8xf32>
    %cst_35 = arith.constant dense<0xFF800000> : vector<8xf32>
    %142 = vector.multi_reduction <maximumf>, %141, %cst_35 [1] : vector<8x8xf32> to vector<8xf32>
    %143 = vector.shape_cast %142 : vector<8xf32> to vector<8x1xf32>
    %144 = vector.broadcast %143 : vector<8x1xf32> to vector<8x8xf32>
    %145 = arith.subf %141, %144 : vector<8x8xf32>
    %146 = math.exp %145 : vector<8x8xf32>
    %cst_36 = arith.constant dense<0.000000e+00> : vector<8xf32>
    %147 = vector.multi_reduction <add>, %146, %cst_36 [1] : vector<8x8xf32> to vector<8xf32>
    %148 = vector.shape_cast %147 : vector<8xf32> to vector<8x1xf32>
    %149 = tpu.reciprocal %148 {approx = true} : vector<8x1xf32> -> vector<8x1xf32>
    %150 = vector.broadcast %149 : vector<8x1xf32> to vector<8x8xf32>
    %151 = arith.mulf %146, %150 : vector<8x8xf32>
    %152 = vector.extract_strided_slice %89 {offsets = [0, 24], sizes = [8, 8], strides = [1, 1]} : vector<8x32xf32> to vector<8x8xf32>
    %cst_37 = arith.constant dense<0.000000e+00> : vector<8x8xf32>
    %153 = tpu.matmul %151, %152, %cst_37 {dimension_numbers = #tpu.dot_dimension_numbers<[1], [0], [0], [1], [0, 0, 1, 1], [], []>} : vector<8x8xf32>, vector<8x8xf32>, vector<8x8xf32> -> vector<8x8xf32>
    %154 = tpu.concatenate %105, %121, %137, %153 in 1 : vector<8x8xf32>, vector<8x8xf32>, vector<8x8xf32>, vector<8x8xf32> -> vector<8x32xf32>
    %155 = tpu.concatenate %86, %154 in 0 : vector<8x32xf32>, vector<8x32xf32> -> vector<16x32xf32>
    %156 = arith.truncf %155 : vector<16x32xf32> to vector<16x32xbf16>
    %cst_38 = arith.constant dense<0.000000e+00> : vector<16x128xf32>
    %157 = tpu.matmul %156, %10, %cst_38 {dimension_numbers = #tpu.dot_dimension_numbers<[1], [0], [0], [1], [0, 0, 1, 1], [], []>} : vector<16x32xbf16>, vector<32x128xbf16>, vector<16x128xf32> -> vector<16x128xf32>
    %158 = vector.extract_strided_slice %157 {offsets = [0, 96], sizes = [16, 32], strides = [1, 1]} : vector<16x128xf32> to vector<16x32xf32>
    %159 = vector.broadcast %3 : vector<1x32xf32> to vector<16x32xf32>
    %160 = arith.addf %158, %159 : vector<16x32xf32>
    %161 = arith.addf %0, %160 : vector<16x32xf32>
    %cst_39 = arith.constant dense<0.000000e+00> : vector<16xf32>
    %162 = vector.multi_reduction <add>, %161, %cst_39 [1] : vector<16x32xf32> to vector<16xf32>
    %163 = vector.shape_cast %162 : vector<16xf32> to vector<16x1xf32>
    %cst_40 = arith.constant 3.200000e+01 : f32
    %164 = vector.broadcast %cst_40 : f32 to vector<16x1xf32>
    %165 = arith.divf %163, %164 : vector<16x1xf32>
    %166 = vector.broadcast %165 : vector<16x1xf32> to vector<16x32xf32>
    %167 = arith.subf %161, %166 : vector<16x32xf32>
    %168 = arith.mulf %167, %167 : vector<16x32xf32>
    %cst_41 = arith.constant dense<0.000000e+00> : vector<16xf32>
    %169 = vector.multi_reduction <add>, %168, %cst_41 [1] : vector<16x32xf32> to vector<16xf32>
    %170 = vector.shape_cast %169 : vector<16xf32> to vector<16x1xf32>
    %cst_42 = arith.constant 3.200000e+01 : f32
    %171 = vector.broadcast %cst_42 : f32 to vector<16x1xf32>
    %172 = arith.divf %170, %171 : vector<16x1xf32>
    %173 = vector.broadcast %165 : vector<16x1xf32> to vector<16x32xf32>
    %174 = arith.subf %161, %173 : vector<16x32xf32>
    %cst_43 = arith.constant 9.99999974E-6 : f32
    %175 = vector.broadcast %cst_43 : f32 to vector<16x1xf32>
    %176 = arith.addf %172, %175 : vector<16x1xf32>
    %177 = math.rsqrt %176 : vector<16x1xf32>
    %178 = vector.broadcast %177 : vector<16x1xf32> to vector<16x32xf32>
    %179 = arith.mulf %174, %178 : vector<16x32xf32>
    %180 = vector.broadcast %4 : vector<1x32xf32> to vector<16x32xf32>
    %181 = arith.mulf %179, %180 : vector<16x32xf32>
    %182 = vector.broadcast %5 : vector<1x32xf32> to vector<16x32xf32>
    %183 = arith.addf %181, %182 : vector<16x32xf32>
    %184 = arith.truncf %183 : vector<16x32xf32> to vector<16x32xbf16>
    %c0_44 = arith.constant 0 : index
    %c0_45 = arith.constant 0 : index
    %c0_46 = arith.constant 0 : index
    %185 = vector.load %arg2[%c0_44, %c0_45, %c0_46] : memref<2x32x2048xbf16, #tpu.memory_space<vmem>>, vector<1x32x2048xbf16>
    %186 = vector.shape_cast %185 : vector<1x32x2048xbf16> to vector<32x2048xbf16>
    %cst_47 = arith.constant dense<0.000000e+00> : vector<16x2048xf32>
    %187 = tpu.matmul %184, %186, %cst_47 {dimension_numbers = #tpu.dot_dimension_numbers<[1], [0], [0], [1], [0, 0, 1, 1], [], []>} : vector<16x32xbf16>, vector<32x2048xbf16>, vector<16x2048xf32> -> vector<16x2048xf32>
    %c0_48 = arith.constant 0 : index
    %c0_49 = arith.constant 0 : index
    %188 = vector.load %arg3[%c0_48, %c0_49] : memref<2x2048xf32, #tpu.memory_space<vmem>>, vector<1x2048xf32>
    %189 = vector.broadcast %188 : vector<1x2048xf32> to vector<16x2048xf32>
    %190 = arith.addf %187, %189 : vector<16x2048xf32>
    %cst_50 = arith.constant 0.000000e+00 : f32
    %191 = vector.broadcast %cst_50 : f32 to vector<16x2048xf32>
    %192 = arith.maximumf %190, %191 : vector<16x2048xf32>
    %193 = arith.truncf %192 : vector<16x2048xf32> to vector<16x2048xbf16>
    %c0_51 = arith.constant 0 : index
    %c0_52 = arith.constant 0 : index
    %c0_53 = arith.constant 0 : index
    %194 = vector.load %arg4[%c0_51, %c0_52, %c0_53] : memref<2x2048x32xbf16, #tpu.memory_space<vmem>>, vector<1x2048x32xbf16>
    %195 = vector.shape_cast %194 : vector<1x2048x32xbf16> to vector<2048x32xbf16>
    %cst_54 = arith.constant dense<0.000000e+00> : vector<16x32xf32>
    %196 = tpu.matmul %193, %195, %cst_54 {dimension_numbers = #tpu.dot_dimension_numbers<[1], [0], [0], [1], [0, 0, 1, 1], [], []>} : vector<16x2048xbf16>, vector<2048x32xbf16>, vector<16x32xf32> -> vector<16x32xf32>
    %197 = vector.broadcast %6 : vector<1x32xf32> to vector<16x32xf32>
    %198 = arith.addf %196, %197 : vector<16x32xf32>
    %199 = arith.addf %183, %198 : vector<16x32xf32>
    %cst_55 = arith.constant dense<0.000000e+00> : vector<16xf32>
    %200 = vector.multi_reduction <add>, %199, %cst_55 [1] : vector<16x32xf32> to vector<16xf32>
    %201 = vector.shape_cast %200 : vector<16xf32> to vector<16x1xf32>
    %cst_56 = arith.constant 3.200000e+01 : f32
    %202 = vector.broadcast %cst_56 : f32 to vector<16x1xf32>
    %203 = arith.divf %201, %202 : vector<16x1xf32>
    %204 = vector.broadcast %203 : vector<16x1xf32> to vector<16x32xf32>
    %205 = arith.subf %199, %204 : vector<16x32xf32>
    %206 = arith.mulf %205, %205 : vector<16x32xf32>
    %cst_57 = arith.constant dense<0.000000e+00> : vector<16xf32>
    %207 = vector.multi_reduction <add>, %206, %cst_57 [1] : vector<16x32xf32> to vector<16xf32>
    %208 = vector.shape_cast %207 : vector<16xf32> to vector<16x1xf32>
    %cst_58 = arith.constant 3.200000e+01 : f32
    %209 = vector.broadcast %cst_58 : f32 to vector<16x1xf32>
    %210 = arith.divf %208, %209 : vector<16x1xf32>
    %211 = vector.broadcast %203 : vector<16x1xf32> to vector<16x32xf32>
    %212 = arith.subf %199, %211 : vector<16x32xf32>
    %cst_59 = arith.constant 9.99999974E-6 : f32
    %213 = vector.broadcast %cst_59 : f32 to vector<16x1xf32>
    %214 = arith.addf %210, %213 : vector<16x1xf32>
    %215 = math.rsqrt %214 : vector<16x1xf32>
    %216 = vector.broadcast %215 : vector<16x1xf32> to vector<16x32xf32>
    %217 = arith.mulf %212, %216 : vector<16x32xf32>
    %218 = vector.broadcast %7 : vector<1x32xf32> to vector<16x32xf32>
    %219 = arith.mulf %217, %218 : vector<16x32xf32>
    %220 = vector.broadcast %8 : vector<1x32xf32> to vector<16x32xf32>
    %221 = arith.addf %219, %220 : vector<16x32xf32>
    %222 = vector.extract_strided_slice %1 {offsets = [7, 0], sizes = [1, 96], strides = [1, 1]} : vector<16x128xf32> to vector<1x96xf32>
    %223 = vector.extract_strided_slice %1 {offsets = [8, 0], sizes = [1, 32], strides = [1, 1]} : vector<16x128xf32> to vector<1x32xf32>
    %224 = vector.extract_strided_slice %1 {offsets = [9, 0], sizes = [1, 32], strides = [1, 1]} : vector<16x128xf32> to vector<1x32xf32>
    %225 = vector.extract_strided_slice %1 {offsets = [10, 0], sizes = [1, 32], strides = [1, 1]} : vector<16x128xf32> to vector<1x32xf32>
    %226 = vector.extract_strided_slice %1 {offsets = [11, 0], sizes = [1, 32], strides = [1, 1]} : vector<16x128xf32> to vector<1x32xf32>
    %227 = vector.extract_strided_slice %1 {offsets = [12, 0], sizes = [1, 32], strides = [1, 1]} : vector<16x128xf32> to vector<1x32xf32>
    %228 = vector.extract_strided_slice %1 {offsets = [13, 0], sizes = [1, 32], strides = [1, 1]} : vector<16x128xf32> to vector<1x32xf32>
    %c1 = arith.constant 1 : index
    %c0_60 = arith.constant 0 : index
    %c0_61 = arith.constant 0 : index
    %229 = vector.load %arg1[%c1, %c0_60, %c0_61] : memref<3x32x128xbf16, #tpu.memory_space<vmem>>, vector<1x32x128xbf16>
    %230 = vector.shape_cast %229 : vector<1x32x128xbf16> to vector<32x128xbf16>
    %231 = arith.truncf %221 : vector<16x32xf32> to vector<16x32xbf16>
    %cst_62 = arith.constant dense<0.000000e+00> : vector<16x128xf32>
    %232 = tpu.matmul %231, %230, %cst_62 {dimension_numbers = #tpu.dot_dimension_numbers<[1], [0], [0], [1], [0, 0, 1, 1], [], []>} : vector<16x32xbf16>, vector<32x128xbf16>, vector<16x128xf32> -> vector<16x128xf32>
    %233 = vector.extract_strided_slice %232 {offsets = [0, 0], sizes = [16, 96], strides = [1, 1]} : vector<16x128xf32> to vector<16x96xf32>
    %234 = vector.broadcast %222 : vector<1x96xf32> to vector<16x96xf32>
    %235 = arith.addf %233, %234 : vector<16x96xf32>
    %236 = vector.extract_strided_slice %235 {offsets = [0, 0], sizes = [16, 32], strides = [1, 1]} : vector<16x96xf32> to vector<16x32xf32>
    %237 = vector.extract_strided_slice %235 {offsets = [0, 32], sizes = [16, 32], strides = [1, 1]} : vector<16x96xf32> to vector<16x32xf32>
    %238 = vector.extract_strided_slice %235 {offsets = [0, 64], sizes = [16, 32], strides = [1, 1]} : vector<16x96xf32> to vector<16x32xf32>
    %239 = vector.extract_strided_slice %236 {offsets = [0, 0], sizes = [8, 32], strides = [1, 1]} : vector<16x32xf32> to vector<8x32xf32>
    %240 = vector.extract_strided_slice %237 {offsets = [0, 0], sizes = [8, 32], strides = [1, 1]} : vector<16x32xf32> to vector<8x32xf32>
    %241 = vector.extract_strided_slice %238 {offsets = [0, 0], sizes = [8, 32], strides = [1, 1]} : vector<16x32xf32> to vector<8x32xf32>
    %242 = vector.extract_strided_slice %239 {offsets = [0, 0], sizes = [8, 8], strides = [1, 1]} : vector<8x32xf32> to vector<8x8xf32>
    %243 = vector.extract_strided_slice %240 {offsets = [0, 0], sizes = [8, 8], strides = [1, 1]} : vector<8x32xf32> to vector<8x8xf32>
    %244 = tpu.transpose %243, [1, 0] : vector<8x8xf32> -> vector<8x8xf32>
    %cst_63 = arith.constant dense<0.000000e+00> : vector<8x8xf32>
    %245 = tpu.matmul %242, %244, %cst_63 {dimension_numbers = #tpu.dot_dimension_numbers<[1], [0], [0], [1], [0, 0, 1, 1], [], []>} : vector<8x8xf32>, vector<8x8xf32>, vector<8x8xf32> -> vector<8x8xf32>
    %cst_64 = arith.constant dense<0xFF800000> : vector<8xf32>
    %246 = vector.multi_reduction <maximumf>, %245, %cst_64 [1] : vector<8x8xf32> to vector<8xf32>
    %247 = vector.shape_cast %246 : vector<8xf32> to vector<8x1xf32>
    %248 = vector.broadcast %247 : vector<8x1xf32> to vector<8x8xf32>
    %249 = arith.subf %245, %248 : vector<8x8xf32>
    %250 = math.exp %249 : vector<8x8xf32>
    %cst_65 = arith.constant dense<0.000000e+00> : vector<8xf32>
    %251 = vector.multi_reduction <add>, %250, %cst_65 [1] : vector<8x8xf32> to vector<8xf32>
    %252 = vector.shape_cast %251 : vector<8xf32> to vector<8x1xf32>
    %253 = tpu.reciprocal %252 {approx = true} : vector<8x1xf32> -> vector<8x1xf32>
    %254 = vector.broadcast %253 : vector<8x1xf32> to vector<8x8xf32>
    %255 = arith.mulf %250, %254 : vector<8x8xf32>
    %256 = vector.extract_strided_slice %241 {offsets = [0, 0], sizes = [8, 8], strides = [1, 1]} : vector<8x32xf32> to vector<8x8xf32>
    %cst_66 = arith.constant dense<0.000000e+00> : vector<8x8xf32>
    %257 = tpu.matmul %255, %256, %cst_66 {dimension_numbers = #tpu.dot_dimension_numbers<[1], [0], [0], [1], [0, 0, 1, 1], [], []>} : vector<8x8xf32>, vector<8x8xf32>, vector<8x8xf32> -> vector<8x8xf32>
    %258 = vector.extract_strided_slice %239 {offsets = [0, 8], sizes = [8, 8], strides = [1, 1]} : vector<8x32xf32> to vector<8x8xf32>
    %259 = vector.extract_strided_slice %240 {offsets = [0, 8], sizes = [8, 8], strides = [1, 1]} : vector<8x32xf32> to vector<8x8xf32>
    %260 = tpu.transpose %259, [1, 0] : vector<8x8xf32> -> vector<8x8xf32>
    %cst_67 = arith.constant dense<0.000000e+00> : vector<8x8xf32>
    %261 = tpu.matmul %258, %260, %cst_67 {dimension_numbers = #tpu.dot_dimension_numbers<[1], [0], [0], [1], [0, 0, 1, 1], [], []>} : vector<8x8xf32>, vector<8x8xf32>, vector<8x8xf32> -> vector<8x8xf32>
    %cst_68 = arith.constant dense<0xFF800000> : vector<8xf32>
    %262 = vector.multi_reduction <maximumf>, %261, %cst_68 [1] : vector<8x8xf32> to vector<8xf32>
    %263 = vector.shape_cast %262 : vector<8xf32> to vector<8x1xf32>
    %264 = vector.broadcast %263 : vector<8x1xf32> to vector<8x8xf32>
    %265 = arith.subf %261, %264 : vector<8x8xf32>
    %266 = math.exp %265 : vector<8x8xf32>
    %cst_69 = arith.constant dense<0.000000e+00> : vector<8xf32>
    %267 = vector.multi_reduction <add>, %266, %cst_69 [1] : vector<8x8xf32> to vector<8xf32>
    %268 = vector.shape_cast %267 : vector<8xf32> to vector<8x1xf32>
    %269 = tpu.reciprocal %268 {approx = true} : vector<8x1xf32> -> vector<8x1xf32>
    %270 = vector.broadcast %269 : vector<8x1xf32> to vector<8x8xf32>
    %271 = arith.mulf %266, %270 : vector<8x8xf32>
    %272 = vector.extract_strided_slice %241 {offsets = [0, 8], sizes = [8, 8], strides = [1, 1]} : vector<8x32xf32> to vector<8x8xf32>
    %cst_70 = arith.constant dense<0.000000e+00> : vector<8x8xf32>
    %273 = tpu.matmul %271, %272, %cst_70 {dimension_numbers = #tpu.dot_dimension_numbers<[1], [0], [0], [1], [0, 0, 1, 1], [], []>} : vector<8x8xf32>, vector<8x8xf32>, vector<8x8xf32> -> vector<8x8xf32>
    %274 = vector.extract_strided_slice %239 {offsets = [0, 16], sizes = [8, 8], strides = [1, 1]} : vector<8x32xf32> to vector<8x8xf32>
    %275 = vector.extract_strided_slice %240 {offsets = [0, 16], sizes = [8, 8], strides = [1, 1]} : vector<8x32xf32> to vector<8x8xf32>
    %276 = tpu.transpose %275, [1, 0] : vector<8x8xf32> -> vector<8x8xf32>
    %cst_71 = arith.constant dense<0.000000e+00> : vector<8x8xf32>
    %277 = tpu.matmul %274, %276, %cst_71 {dimension_numbers = #tpu.dot_dimension_numbers<[1], [0], [0], [1], [0, 0, 1, 1], [], []>} : vector<8x8xf32>, vector<8x8xf32>, vector<8x8xf32> -> vector<8x8xf32>
    %cst_72 = arith.constant dense<0xFF800000> : vector<8xf32>
    %278 = vector.multi_reduction <maximumf>, %277, %cst_72 [1] : vector<8x8xf32> to vector<8xf32>
    %279 = vector.shape_cast %278 : vector<8xf32> to vector<8x1xf32>
    %280 = vector.broadcast %279 : vector<8x1xf32> to vector<8x8xf32>
    %281 = arith.subf %277, %280 : vector<8x8xf32>
    %282 = math.exp %281 : vector<8x8xf32>
    %cst_73 = arith.constant dense<0.000000e+00> : vector<8xf32>
    %283 = vector.multi_reduction <add>, %282, %cst_73 [1] : vector<8x8xf32> to vector<8xf32>
    %284 = vector.shape_cast %283 : vector<8xf32> to vector<8x1xf32>
    %285 = tpu.reciprocal %284 {approx = true} : vector<8x1xf32> -> vector<8x1xf32>
    %286 = vector.broadcast %285 : vector<8x1xf32> to vector<8x8xf32>
    %287 = arith.mulf %282, %286 : vector<8x8xf32>
    %288 = vector.extract_strided_slice %241 {offsets = [0, 16], sizes = [8, 8], strides = [1, 1]} : vector<8x32xf32> to vector<8x8xf32>
    %cst_74 = arith.constant dense<0.000000e+00> : vector<8x8xf32>
    %289 = tpu.matmul %287, %288, %cst_74 {dimension_numbers = #tpu.dot_dimension_numbers<[1], [0], [0], [1], [0, 0, 1, 1], [], []>} : vector<8x8xf32>, vector<8x8xf32>, vector<8x8xf32> -> vector<8x8xf32>
    %290 = vector.extract_strided_slice %239 {offsets = [0, 24], sizes = [8, 8], strides = [1, 1]} : vector<8x32xf32> to vector<8x8xf32>
    %291 = vector.extract_strided_slice %240 {offsets = [0, 24], sizes = [8, 8], strides = [1, 1]} : vector<8x32xf32> to vector<8x8xf32>
    %292 = tpu.transpose %291, [1, 0] : vector<8x8xf32> -> vector<8x8xf32>
    %cst_75 = arith.constant dense<0.000000e+00> : vector<8x8xf32>
    %293 = tpu.matmul %290, %292, %cst_75 {dimension_numbers = #tpu.dot_dimension_numbers<[1], [0], [0], [1], [0, 0, 1, 1], [], []>} : vector<8x8xf32>, vector<8x8xf32>, vector<8x8xf32> -> vector<8x8xf32>
    %cst_76 = arith.constant dense<0xFF800000> : vector<8xf32>
    %294 = vector.multi_reduction <maximumf>, %293, %cst_76 [1] : vector<8x8xf32> to vector<8xf32>
    %295 = vector.shape_cast %294 : vector<8xf32> to vector<8x1xf32>
    %296 = vector.broadcast %295 : vector<8x1xf32> to vector<8x8xf32>
    %297 = arith.subf %293, %296 : vector<8x8xf32>
    %298 = math.exp %297 : vector<8x8xf32>
    %cst_77 = arith.constant dense<0.000000e+00> : vector<8xf32>
    %299 = vector.multi_reduction <add>, %298, %cst_77 [1] : vector<8x8xf32> to vector<8xf32>
    %300 = vector.shape_cast %299 : vector<8xf32> to vector<8x1xf32>
    %301 = tpu.reciprocal %300 {approx = true} : vector<8x1xf32> -> vector<8x1xf32>
    %302 = vector.broadcast %301 : vector<8x1xf32> to vector<8x8xf32>
    %303 = arith.mulf %298, %302 : vector<8x8xf32>
    %304 = vector.extract_strided_slice %241 {offsets = [0, 24], sizes = [8, 8], strides = [1, 1]} : vector<8x32xf32> to vector<8x8xf32>
    %cst_78 = arith.constant dense<0.000000e+00> : vector<8x8xf32>
    %305 = tpu.matmul %303, %304, %cst_78 {dimension_numbers = #tpu.dot_dimension_numbers<[1], [0], [0], [1], [0, 0, 1, 1], [], []>} : vector<8x8xf32>, vector<8x8xf32>, vector<8x8xf32> -> vector<8x8xf32>
    %306 = tpu.concatenate %257, %273, %289, %305 in 1 : vector<8x8xf32>, vector<8x8xf32>, vector<8x8xf32>, vector<8x8xf32> -> vector<8x32xf32>
    %307 = vector.extract_strided_slice %236 {offsets = [8, 0], sizes = [8, 32], strides = [1, 1]} : vector<16x32xf32> to vector<8x32xf32>
    %308 = vector.extract_strided_slice %237 {offsets = [8, 0], sizes = [8, 32], strides = [1, 1]} : vector<16x32xf32> to vector<8x32xf32>
    %309 = vector.extract_strided_slice %238 {offsets = [8, 0], sizes = [8, 32], strides = [1, 1]} : vector<16x32xf32> to vector<8x32xf32>
    %310 = vector.extract_strided_slice %307 {offsets = [0, 0], sizes = [8, 8], strides = [1, 1]} : vector<8x32xf32> to vector<8x8xf32>
    %311 = vector.extract_strided_slice %308 {offsets = [0, 0], sizes = [8, 8], strides = [1, 1]} : vector<8x32xf32> to vector<8x8xf32>
    %312 = tpu.transpose %311, [1, 0] : vector<8x8xf32> -> vector<8x8xf32>
    %cst_79 = arith.constant dense<0.000000e+00> : vector<8x8xf32>
    %313 = tpu.matmul %310, %312, %cst_79 {dimension_numbers = #tpu.dot_dimension_numbers<[1], [0], [0], [1], [0, 0, 1, 1], [], []>} : vector<8x8xf32>, vector<8x8xf32>, vector<8x8xf32> -> vector<8x8xf32>
    %cst_80 = arith.constant dense<0xFF800000> : vector<8xf32>
    %314 = vector.multi_reduction <maximumf>, %313, %cst_80 [1] : vector<8x8xf32> to vector<8xf32>
    %315 = vector.shape_cast %314 : vector<8xf32> to vector<8x1xf32>
    %316 = vector.broadcast %315 : vector<8x1xf32> to vector<8x8xf32>
    %317 = arith.subf %313, %316 : vector<8x8xf32>
    %318 = math.exp %317 : vector<8x8xf32>
    %cst_81 = arith.constant dense<0.000000e+00> : vector<8xf32>
    %319 = vector.multi_reduction <add>, %318, %cst_81 [1] : vector<8x8xf32> to vector<8xf32>
    %320 = vector.shape_cast %319 : vector<8xf32> to vector<8x1xf32>
    %321 = tpu.reciprocal %320 {approx = true} : vector<8x1xf32> -> vector<8x1xf32>
    %322 = vector.broadcast %321 : vector<8x1xf32> to vector<8x8xf32>
    %323 = arith.mulf %318, %322 : vector<8x8xf32>
    %324 = vector.extract_strided_slice %309 {offsets = [0, 0], sizes = [8, 8], strides = [1, 1]} : vector<8x32xf32> to vector<8x8xf32>
    %cst_82 = arith.constant dense<0.000000e+00> : vector<8x8xf32>
    %325 = tpu.matmul %323, %324, %cst_82 {dimension_numbers = #tpu.dot_dimension_numbers<[1], [0], [0], [1], [0, 0, 1, 1], [], []>} : vector<8x8xf32>, vector<8x8xf32>, vector<8x8xf32> -> vector<8x8xf32>
    %326 = vector.extract_strided_slice %307 {offsets = [0, 8], sizes = [8, 8], strides = [1, 1]} : vector<8x32xf32> to vector<8x8xf32>
    %327 = vector.extract_strided_slice %308 {offsets = [0, 8], sizes = [8, 8], strides = [1, 1]} : vector<8x32xf32> to vector<8x8xf32>
    %328 = tpu.transpose %327, [1, 0] : vector<8x8xf32> -> vector<8x8xf32>
    %cst_83 = arith.constant dense<0.000000e+00> : vector<8x8xf32>
    %329 = tpu.matmul %326, %328, %cst_83 {dimension_numbers = #tpu.dot_dimension_numbers<[1], [0], [0], [1], [0, 0, 1, 1], [], []>} : vector<8x8xf32>, vector<8x8xf32>, vector<8x8xf32> -> vector<8x8xf32>
    %cst_84 = arith.constant dense<0xFF800000> : vector<8xf32>
    %330 = vector.multi_reduction <maximumf>, %329, %cst_84 [1] : vector<8x8xf32> to vector<8xf32>
    %331 = vector.shape_cast %330 : vector<8xf32> to vector<8x1xf32>
    %332 = vector.broadcast %331 : vector<8x1xf32> to vector<8x8xf32>
    %333 = arith.subf %329, %332 : vector<8x8xf32>
    %334 = math.exp %333 : vector<8x8xf32>
    %cst_85 = arith.constant dense<0.000000e+00> : vector<8xf32>
    %335 = vector.multi_reduction <add>, %334, %cst_85 [1] : vector<8x8xf32> to vector<8xf32>
    %336 = vector.shape_cast %335 : vector<8xf32> to vector<8x1xf32>
    %337 = tpu.reciprocal %336 {approx = true} : vector<8x1xf32> -> vector<8x1xf32>
    %338 = vector.broadcast %337 : vector<8x1xf32> to vector<8x8xf32>
    %339 = arith.mulf %334, %338 : vector<8x8xf32>
    %340 = vector.extract_strided_slice %309 {offsets = [0, 8], sizes = [8, 8], strides = [1, 1]} : vector<8x32xf32> to vector<8x8xf32>
    %cst_86 = arith.constant dense<0.000000e+00> : vector<8x8xf32>
    %341 = tpu.matmul %339, %340, %cst_86 {dimension_numbers = #tpu.dot_dimension_numbers<[1], [0], [0], [1], [0, 0, 1, 1], [], []>} : vector<8x8xf32>, vector<8x8xf32>, vector<8x8xf32> -> vector<8x8xf32>
    %342 = vector.extract_strided_slice %307 {offsets = [0, 16], sizes = [8, 8], strides = [1, 1]} : vector<8x32xf32> to vector<8x8xf32>
    %343 = vector.extract_strided_slice %308 {offsets = [0, 16], sizes = [8, 8], strides = [1, 1]} : vector<8x32xf32> to vector<8x8xf32>
    %344 = tpu.transpose %343, [1, 0] : vector<8x8xf32> -> vector<8x8xf32>
    %cst_87 = arith.constant dense<0.000000e+00> : vector<8x8xf32>
    %345 = tpu.matmul %342, %344, %cst_87 {dimension_numbers = #tpu.dot_dimension_numbers<[1], [0], [0], [1], [0, 0, 1, 1], [], []>} : vector<8x8xf32>, vector<8x8xf32>, vector<8x8xf32> -> vector<8x8xf32>
    %cst_88 = arith.constant dense<0xFF800000> : vector<8xf32>
    %346 = vector.multi_reduction <maximumf>, %345, %cst_88 [1] : vector<8x8xf32> to vector<8xf32>
    %347 = vector.shape_cast %346 : vector<8xf32> to vector<8x1xf32>
    %348 = vector.broadcast %347 : vector<8x1xf32> to vector<8x8xf32>
    %349 = arith.subf %345, %348 : vector<8x8xf32>
    %350 = math.exp %349 : vector<8x8xf32>
    %cst_89 = arith.constant dense<0.000000e+00> : vector<8xf32>
    %351 = vector.multi_reduction <add>, %350, %cst_89 [1] : vector<8x8xf32> to vector<8xf32>
    %352 = vector.shape_cast %351 : vector<8xf32> to vector<8x1xf32>
    %353 = tpu.reciprocal %352 {approx = true} : vector<8x1xf32> -> vector<8x1xf32>
    %354 = vector.broadcast %353 : vector<8x1xf32> to vector<8x8xf32>
    %355 = arith.mulf %350, %354 : vector<8x8xf32>
    %356 = vector.extract_strided_slice %309 {offsets = [0, 16], sizes = [8, 8], strides = [1, 1]} : vector<8x32xf32> to vector<8x8xf32>
    %cst_90 = arith.constant dense<0.000000e+00> : vector<8x8xf32>
    %357 = tpu.matmul %355, %356, %cst_90 {dimension_numbers = #tpu.dot_dimension_numbers<[1], [0], [0], [1], [0, 0, 1, 1], [], []>} : vector<8x8xf32>, vector<8x8xf32>, vector<8x8xf32> -> vector<8x8xf32>
    %358 = vector.extract_strided_slice %307 {offsets = [0, 24], sizes = [8, 8], strides = [1, 1]} : vector<8x32xf32> to vector<8x8xf32>
    %359 = vector.extract_strided_slice %308 {offsets = [0, 24], sizes = [8, 8], strides = [1, 1]} : vector<8x32xf32> to vector<8x8xf32>
    %360 = tpu.transpose %359, [1, 0] : vector<8x8xf32> -> vector<8x8xf32>
    %cst_91 = arith.constant dense<0.000000e+00> : vector<8x8xf32>
    %361 = tpu.matmul %358, %360, %cst_91 {dimension_numbers = #tpu.dot_dimension_numbers<[1], [0], [0], [1], [0, 0, 1, 1], [], []>} : vector<8x8xf32>, vector<8x8xf32>, vector<8x8xf32> -> vector<8x8xf32>
    %cst_92 = arith.constant dense<0xFF800000> : vector<8xf32>
    %362 = vector.multi_reduction <maximumf>, %361, %cst_92 [1] : vector<8x8xf32> to vector<8xf32>
    %363 = vector.shape_cast %362 : vector<8xf32> to vector<8x1xf32>
    %364 = vector.broadcast %363 : vector<8x1xf32> to vector<8x8xf32>
    %365 = arith.subf %361, %364 : vector<8x8xf32>
    %366 = math.exp %365 : vector<8x8xf32>
    %cst_93 = arith.constant dense<0.000000e+00> : vector<8xf32>
    %367 = vector.multi_reduction <add>, %366, %cst_93 [1] : vector<8x8xf32> to vector<8xf32>
    %368 = vector.shape_cast %367 : vector<8xf32> to vector<8x1xf32>
    %369 = tpu.reciprocal %368 {approx = true} : vector<8x1xf32> -> vector<8x1xf32>
    %370 = vector.broadcast %369 : vector<8x1xf32> to vector<8x8xf32>
    %371 = arith.mulf %366, %370 : vector<8x8xf32>
    %372 = vector.extract_strided_slice %309 {offsets = [0, 24], sizes = [8, 8], strides = [1, 1]} : vector<8x32xf32> to vector<8x8xf32>
    %cst_94 = arith.constant dense<0.000000e+00> : vector<8x8xf32>
    %373 = tpu.matmul %371, %372, %cst_94 {dimension_numbers = #tpu.dot_dimension_numbers<[1], [0], [0], [1], [0, 0, 1, 1], [], []>} : vector<8x8xf32>, vector<8x8xf32>, vector<8x8xf32> -> vector<8x8xf32>
    %374 = tpu.concatenate %325, %341, %357, %373 in 1 : vector<8x8xf32>, vector<8x8xf32>, vector<8x8xf32>, vector<8x8xf32> -> vector<8x32xf32>
    %375 = tpu.concatenate %306, %374 in 0 : vector<8x32xf32>, vector<8x32xf32> -> vector<16x32xf32>
    %376 = arith.truncf %375 : vector<16x32xf32> to vector<16x32xbf16>
    %cst_95 = arith.constant dense<0.000000e+00> : vector<16x128xf32>
    %377 = tpu.matmul %376, %230, %cst_95 {dimension_numbers = #tpu.dot_dimension_numbers<[1], [0], [0], [1], [0, 0, 1, 1], [], []>} : vector<16x32xbf16>, vector<32x128xbf16>, vector<16x128xf32> -> vector<16x128xf32>
    %378 = vector.extract_strided_slice %377 {offsets = [0, 96], sizes = [16, 32], strides = [1, 1]} : vector<16x128xf32> to vector<16x32xf32>
    %379 = vector.broadcast %223 : vector<1x32xf32> to vector<16x32xf32>
    %380 = arith.addf %378, %379 : vector<16x32xf32>
    %381 = arith.addf %221, %380 : vector<16x32xf32>
    %cst_96 = arith.constant dense<0.000000e+00> : vector<16xf32>
    %382 = vector.multi_reduction <add>, %381, %cst_96 [1] : vector<16x32xf32> to vector<16xf32>
    %383 = vector.shape_cast %382 : vector<16xf32> to vector<16x1xf32>
    %cst_97 = arith.constant 3.200000e+01 : f32
    %384 = vector.broadcast %cst_97 : f32 to vector<16x1xf32>
    %385 = arith.divf %383, %384 : vector<16x1xf32>
    %386 = vector.broadcast %385 : vector<16x1xf32> to vector<16x32xf32>
    %387 = arith.subf %381, %386 : vector<16x32xf32>
    %388 = arith.mulf %387, %387 : vector<16x32xf32>
    %cst_98 = arith.constant dense<0.000000e+00> : vector<16xf32>
    %389 = vector.multi_reduction <add>, %388, %cst_98 [1] : vector<16x32xf32> to vector<16xf32>
    %390 = vector.shape_cast %389 : vector<16xf32> to vector<16x1xf32>
    %cst_99 = arith.constant 3.200000e+01 : f32
    %391 = vector.broadcast %cst_99 : f32 to vector<16x1xf32>
    %392 = arith.divf %390, %391 : vector<16x1xf32>
    %393 = vector.broadcast %385 : vector<16x1xf32> to vector<16x32xf32>
    %394 = arith.subf %381, %393 : vector<16x32xf32>
    %cst_100 = arith.constant 9.99999974E-6 : f32
    %395 = vector.broadcast %cst_100 : f32 to vector<16x1xf32>
    %396 = arith.addf %392, %395 : vector<16x1xf32>
    %397 = math.rsqrt %396 : vector<16x1xf32>
    %398 = vector.broadcast %397 : vector<16x1xf32> to vector<16x32xf32>
    %399 = arith.mulf %394, %398 : vector<16x32xf32>
    %400 = vector.broadcast %224 : vector<1x32xf32> to vector<16x32xf32>
    %401 = arith.mulf %399, %400 : vector<16x32xf32>
    %402 = vector.broadcast %225 : vector<1x32xf32> to vector<16x32xf32>
    %403 = arith.addf %401, %402 : vector<16x32xf32>
    %404 = arith.truncf %403 : vector<16x32xf32> to vector<16x32xbf16>
    %c1_101 = arith.constant 1 : index
    %c0_102 = arith.constant 0 : index
    %c0_103 = arith.constant 0 : index
    %405 = vector.load %arg2[%c1_101, %c0_102, %c0_103] : memref<2x32x2048xbf16, #tpu.memory_space<vmem>>, vector<1x32x2048xbf16>
    %406 = vector.shape_cast %405 : vector<1x32x2048xbf16> to vector<32x2048xbf16>
    %cst_104 = arith.constant dense<0.000000e+00> : vector<16x2048xf32>
    %407 = tpu.matmul %404, %406, %cst_104 {dimension_numbers = #tpu.dot_dimension_numbers<[1], [0], [0], [1], [0, 0, 1, 1], [], []>} : vector<16x32xbf16>, vector<32x2048xbf16>, vector<16x2048xf32> -> vector<16x2048xf32>
    %c1_105 = arith.constant 1 : index
    %c0_106 = arith.constant 0 : index
    %408 = vector.load %arg3[%c1_105, %c0_106] : memref<2x2048xf32, #tpu.memory_space<vmem>>, vector<1x2048xf32>
    %409 = vector.broadcast %408 : vector<1x2048xf32> to vector<16x2048xf32>
    %410 = arith.addf %407, %409 : vector<16x2048xf32>
    %cst_107 = arith.constant 0.000000e+00 : f32
    %411 = vector.broadcast %cst_107 : f32 to vector<16x2048xf32>
    %412 = arith.maximumf %410, %411 : vector<16x2048xf32>
    %413 = arith.truncf %412 : vector<16x2048xf32> to vector<16x2048xbf16>
    %c1_108 = arith.constant 1 : index
    %c0_109 = arith.constant 0 : index
    %c0_110 = arith.constant 0 : index
    %414 = vector.load %arg4[%c1_108, %c0_109, %c0_110] : memref<2x2048x32xbf16, #tpu.memory_space<vmem>>, vector<1x2048x32xbf16>
    %415 = vector.shape_cast %414 : vector<1x2048x32xbf16> to vector<2048x32xbf16>
    %cst_111 = arith.constant dense<0.000000e+00> : vector<16x32xf32>
    %416 = tpu.matmul %413, %415, %cst_111 {dimension_numbers = #tpu.dot_dimension_numbers<[1], [0], [0], [1], [0, 0, 1, 1], [], []>} : vector<16x2048xbf16>, vector<2048x32xbf16>, vector<16x32xf32> -> vector<16x32xf32>
    %417 = vector.broadcast %226 : vector<1x32xf32> to vector<16x32xf32>
    %418 = arith.addf %416, %417 : vector<16x32xf32>
    %419 = arith.addf %403, %418 : vector<16x32xf32>
    %cst_112 = arith.constant dense<0.000000e+00> : vector<16xf32>
    %420 = vector.multi_reduction <add>, %419, %cst_112 [1] : vector<16x32xf32> to vector<16xf32>
    %421 = vector.shape_cast %420 : vector<16xf32> to vector<16x1xf32>
    %cst_113 = arith.constant 3.200000e+01 : f32
    %422 = vector.broadcast %cst_113 : f32 to vector<16x1xf32>
    %423 = arith.divf %421, %422 : vector<16x1xf32>
    %424 = vector.broadcast %423 : vector<16x1xf32> to vector<16x32xf32>
    %425 = arith.subf %419, %424 : vector<16x32xf32>
    %426 = arith.mulf %425, %425 : vector<16x32xf32>
    %cst_114 = arith.constant dense<0.000000e+00> : vector<16xf32>
    %427 = vector.multi_reduction <add>, %426, %cst_114 [1] : vector<16x32xf32> to vector<16xf32>
    %428 = vector.shape_cast %427 : vector<16xf32> to vector<16x1xf32>
    %cst_115 = arith.constant 3.200000e+01 : f32
    %429 = vector.broadcast %cst_115 : f32 to vector<16x1xf32>
    %430 = arith.divf %428, %429 : vector<16x1xf32>
    %431 = vector.broadcast %423 : vector<16x1xf32> to vector<16x32xf32>
    %432 = arith.subf %419, %431 : vector<16x32xf32>
    %cst_116 = arith.constant 9.99999974E-6 : f32
    %433 = vector.broadcast %cst_116 : f32 to vector<16x1xf32>
    %434 = arith.addf %430, %433 : vector<16x1xf32>
    %435 = math.rsqrt %434 : vector<16x1xf32>
    %436 = vector.broadcast %435 : vector<16x1xf32> to vector<16x32xf32>
    %437 = arith.mulf %432, %436 : vector<16x32xf32>
    %438 = vector.broadcast %227 : vector<1x32xf32> to vector<16x32xf32>
    %439 = arith.mulf %437, %438 : vector<16x32xf32>
    %440 = vector.broadcast %228 : vector<1x32xf32> to vector<16x32xf32>
    %441 = arith.addf %439, %440 : vector<16x32xf32>
    %442 = vector.extract_strided_slice %1 {offsets = [14, 0], sizes = [1, 128], strides = [1, 1]} : vector<16x128xf32> to vector<1x128xf32>
    %443 = arith.truncf %441 : vector<16x32xf32> to vector<16x32xbf16>
    %c2 = arith.constant 2 : index
    %c0_117 = arith.constant 0 : index
    %c0_118 = arith.constant 0 : index
    %444 = vector.load %arg1[%c2, %c0_117, %c0_118] : memref<3x32x128xbf16, #tpu.memory_space<vmem>>, vector<1x32x128xbf16>
    %445 = vector.shape_cast %444 : vector<1x32x128xbf16> to vector<32x128xbf16>
    %cst_119 = arith.constant dense<0.000000e+00> : vector<16x128xf32>
    %446 = tpu.matmul %443, %445, %cst_119 {dimension_numbers = #tpu.dot_dimension_numbers<[1], [0], [0], [1], [0, 0, 1, 1], [], []>} : vector<16x32xbf16>, vector<32x128xbf16>, vector<16x128xf32> -> vector<16x128xf32>
    %447 = vector.broadcast %442 : vector<1x128xf32> to vector<16x128xf32>
    %448 = arith.addf %446, %447 : vector<16x128xf32>
    %c0_120 = arith.constant 0 : index
    %c0_121 = arith.constant 0 : index
    %449 = vector.load %arg6[%c0_120, %c0_121] : memref<16x128xf32, #tpu.memory_space<vmem>>, vector<16x128xf32>
    tpu.vector_store %arg6[%c0_120, %c0_121], %448 {strides = array<i32>} : memref<16x128xf32, #tpu.memory_space<vmem>>, vector<16x128xf32>,
    return
  }
}

</mosaic_0001>

<bundles_post_ra>
// kernel: transformer_forward.1
= control target key start
LH: loop header
LB: loop body
LE: loop exit
PB: predicated region body
PF: predicated region fallthrough
CT: control target
= control target key end

     0   :  { %v9001_v0 = vmov 0.0   ;;  %vm9002_vm0 = vmmov 0   ;;  %vm45_vm1 = vcmask 261120   ;;  %v90_v6 = vlaneseq  ;;  %s9003_s30 = smov 64   ;;  %s9004_s7 = smov 96   ;;  %s10717_s1 = inlined_call_operand.vmem [shape: bf16[3,32,128], index: 1, kind: input, shape index: {}]   ;;  %s10718_s0 = inlined_call_operand.vmem [shape: f32[16,32], index: 0, kind: input, shape index: {}]   ;;  %s10719_s5 = inlined_call_operand.vmem [shape: f32[16,128], index: 5, kind: input, shape index: {}]   ;;  %s10720_s2 = inlined_call_operand.vmem [shape: bf16[2,32,2048], index: 2, kind: input, shape index: {}]   ;;  %s10721_s4 = inlined_call_operand.vmem [shape: bf16[2,2048,32], index: 4, kind: input, shape index: {}]   ;;  %s10722_s3 = inlined_call_operand.vmem [shape: f32[2,2048], index: 3, kind: input, shape index: {}]   ;;  %s10723_s6 = inlined_call_operand.vmem [shape: f32[16,128], index: 6, kind: output, shape index: {}]  }
   0x1   :  { %8408 = vmatprep.subr.bf16.mxu0 %v9001_v0  ;;  %v9058_v1 = vld [vmem:[%s10717_s1] sm:$0xff]   ;;  %8412 = vmatprep.mubr.msk.bf16.mxu0 %vm9002_vm0, %v9001_v0  ;;  %v9069_v2 = vld [vmem:[%s10717_s1 + $0x8] sm:$0xff]   ;;  %s9005_s8 = smov 88   ;;  %s9006_s9 = smov 120   ;;  %vm99_vm2 = vcmask 64512   ;;  %vm769_vm3 = vcmask 130048  }
   0x2   :  { %8416 = vmatprep.subr.mxu1 %v9001_v0  ;;  %8418 = vmatprep.mubr.msk.f32.mxu1 %vm9002_vm0, %v9001_v0  ;;  %v9074_v3 = vld [vmem:[%s10718_s0] sm:$0xff]  ;;  %v9079_v4 = vld [vmem:[%s10718_s0 + $0x8] sm:$0xff]  ;;  %v9089_v7 = vshrl.u32 %v90_v6, 7  ;;  %s9007_s10 = smov 80   ;;  %s9008_s11 = smov 112   ;;  %vm771_vm4 = vcmask 195584  }
   0x3   :  { %8409 = vmatpush3.bf16.msra.mxu0 %v9058_v1  ;;  %v32_v5 = vpack.c.bf16 %v9079_v4, %v9074_v3  ;;  %v9097_v9 = vld [vmem:[%s10719_s5] sm:$0xff]  ;;  %s9009_s12 = smov 104   ;;  %s9010_s13 = smov 72  }
   0x4   :  { %8410 = vmatprep.subr.bf16.mxu0 %v9001_v0  ;;  %v9092_v8 = vsub.s32 0, %v9089_v7  ;;  %s9011_s14 = smov 48   ;;  %s9012_s15 = smov 40  }
   0x5   :  { %s9013_s16 = smov 56   ;;  %s9014_s17 = smov 8  }
   0x6   :  { %v93_v10 = vrot.slane %v9097_v9, %v9092_v8  ;;  %s9015_s18 = smov 16   ;;  %s9016_s19 = smov 24  }
   0x7   :  { %8411 = vmatpush3.bf16.msra.mxu0 %v9069_v2  ;;  %s9017_s20 = smov 32  }
   0x8   :  { %8431 = vmatprep.subr.mxu0 %v9001_v0 }
   0xa   :  { %8413 = vmatmul.mubr.msk.bf16.vlgmr.msra.gmra.mrb[0].mxu0 %vm45_vm1, %v32_v5 }
   0xb   :  { %8433 = vmatprep.mubr.msk.f32.mxu0 %vm9002_vm0, %v9001_v0 }
  0xdd   :  { %v83_v11 = vpop.f32.mrb[0].mxu0 }
  0xde   :  { %v9101_v12 = vadd.f32 %v93_v10, %v83_v11  ;;  %v8414_v13 = vpop.f32.mrb[1].mxu0 }
  0xdf   :  { %v86_v14 = vpop.f32.mrb[2].mxu0 }
  0xe0   :  { %v9103_v15 = vadd.f32 %v93_v10, %v86_v14  ;;  %185 = vrot.lane.b32.xlu1 %v9101_v12, %s9003_s30  ;;  %97 = vrot.lane.b32.xlu0 %v9101_v12, %s9004_s7  ;;  %v8415_v16 = vpop.f32.mrb[3].mxu0 }
  0xe4   :  { %263 = vrot.lane.b32.xlu1 %v9101_v12, %s9005_s8 }
  0xe8   :  { %261 = vrot.lane.b32.xlu1 %v9101_v12, %s9006_s9 }
  0xec   :  { %428 = vrot.lane.b32.xlu1 %v9101_v12, %s9007_s10 }
  0xf0   :  { %426 = vrot.lane.b32.xlu1 %v9101_v12, %s9008_s11 }
  0xf4   :  { %591 = vrot.lane.b32.xlu1 %v9101_v12, %s9009_s12 }
 0x152   :  { %v98_v17 = vpop.permute.xlu0 %97  ;;  %v186_v18 = vpop.permute.xlu1 %185 }
 0x153   :  { %8417 = vmatpush3.xpose.msk.msra.mxu1 %vm99_vm2, %v98_v17 }
 0x154   :  { %8421 = vmatprep.subr.mxu1 %v9001_v0 }
 0x156   :  { %8419 = vmatmul.mubr.msk.f32.vlgmr.msra.gmra.mrb[0].mxu1 %vm99_vm2, %v9101_v12  ;;  %v264_v27 = vpop.permute.xlu1 %263 }
 0x157   :  { %8422 = vmatpush3.msra.mxu1 %v186_v18  ;;  %8423 = vmatprep.mubr.msk.f32.mxu1 %vm9002_vm0, %v9001_v0 }
 0x158   :  { %8426 = vmatprep.subr.mxu1 %v9001_v0 }
 0x15a   :  { %v262_v28 = vpop.permute.xlu1 %261 }
 0x15e   :  { %v429_v29 = vpop.permute.xlu1 %428 }
 0x162   :  { %v427_v30 = vpop.permute.xlu1 %426 }
 0x166   :  { %v592_v31 = vpop.permute.xlu1 %591 }
 0x229   :  { %v170_v19 = vpop.f32.mrb[0].mxu1 }
 0x22a   :  { %v8420_v20 = vpop.f32.mrb[1].mxu1  ;;  %v174_v21 = vsel %vm99_vm2, %v170_v19, -inf }
 0x22b   :  { %175 = vmax.xlane.f32.xlu0 %v174_v21 }
 0x241   :  { %593 = vrot.lane.b32.xlu0 %v9101_v12, %s9010_s13 }
 0x245   :  { %1102 = vrot.lane.b32.xlu0 %v9103_v15, %s9008_s11 }
 0x249   :  { %1267 = vrot.lane.b32.xlu0 %v9103_v15, %s9009_s12 }
 0x2b8   :  { %v176_v22 = vpop.xlane.xlu0 %175 }
 0x2b9   :  { %v177_v23 = vsub.f32 %v170_v19, %v176_v22 }
 0x2bb   :  { %v178_v24 = vmul.f32 1.442695, %v177_v23 }
 0x2bc   :  { %v594_v37 = vpop.permute.xlu0 %593 }
 0x2bd   :  { %8918 = vpow2.f32 %v178_v24 }
 0x2c0   :  { %v1103_v40 = vpop.permute.xlu0 %1102 }
 0x2c4   :  { %v1268_v42 = vpop.permute.xlu0 %1267 }
 0x2c7   :  { %v8919_v25 = vpop.eup %8918 }
 0x2c8   :  { %v180_v26 = vsel %vm99_vm2, %v8919_v25, 0.0 }
 0x2c9   :  { %181 = vadd.xlane.f32.xlu1 %v180_v26 }
 0x2da   :  { %774 = vrot.lane.b32.xlu1 %v9103_v15, %s9004_s7 }
 0x2de   :  { %939 = vrot.lane.b32.xlu1 %v9103_v15, %s9005_s8 }
 0x2e2   :  { %937 = vrot.lane.b32.xlu1 %v9103_v15, %s9006_s9 }
 0x2e6   :  { %1104 = vrot.lane.b32.xlu1 %v9103_v15, %s9007_s10 }
 0x2ea   :  { %1269 = vrot.lane.b32.xlu1 %v9103_v15, %s9010_s13 }
 0x356   :  { %v182_v32 = vpop.xlane.xlu1 %181 }
 0x357   :  { %8920 = vrcp.f32 %v182_v32 }
 0x35a   :  { %v775_v35 = vpop.permute.xlu1 %774 }
 0x35e   :  { %v940_v36 = vpop.permute.xlu1 %939 }
 0x361   :  { %v8921_v33 = vpop.eup %8920 }
 0x362   :  { %v184_v34 = vmul.f32 %v8921_v33, %v8919_v25  ;;  %v938_v38 = vpop.permute.xlu1 %937 }
 0x364   :  { %8424 = vmatmul.mubr.msk.f32.vlgmr.msra.gmra.mrb[2].mxu1 %vm99_vm2, %v184_v34 }
 0x365   :  { %8427 = vmatpush3.xpose.msk.msra.mxu1 %vm99_vm2, %v264_v27  ;;  %8428 = vmatprep.mubr.msk.f32.mxu1 %vm9002_vm0, %v9001_v0 }
 0x366   :  { %8436 = vmatprep.subr.mxu1 %v9001_v0  ;;  %v1105_v39 = vpop.permute.xlu1 %1104 }
 0x368   :  { %8429 = vmatmul.mubr.msk.f32.vlgmr.msra.gmra.mrb[4].mxu1 %vm99_vm2, %v262_v28 }
 0x369   :  { %8437 = vmatpush3.xpose.msk.msra.mxu1 %vm99_vm2, %v429_v29  ;;  %8438 = vmatprep.mubr.msk.f32.mxu1 %vm9002_vm0, %v9001_v0 }
 0x36a   :  { %8446 = vmatprep.subr.mxu1 %v9001_v0  ;;  %v1270_v41 = vpop.permute.xlu1 %1269 }
 0x36c   :  { %8439 = vmatmul.mubr.msk.f32.vlgmr.msra.gmra.mrb[6].mxu1 %vm99_vm2, %v427_v30 }
 0x36d   :  { %8447 = vmatpush3.xpose.msk.msra.mxu1 %vm99_vm2, %v594_v37  ;;  %8448 = vmatprep.mubr.msk.f32.mxu1 %vm9002_vm0, %v9001_v0 }
 0x36e   :  { %8456 = vmatprep.subr.mxu1 %v9001_v0 }
 0x370   :  { %8449 = vmatmul.mubr.msk.f32.vlgmr.msra.gmra.mrb[8].mxu1 %vm99_vm2, %v592_v31 }
 0x371   :  { %8457 = vmatpush3.xpose.msk.msra.mxu1 %vm99_vm2, %v775_v35  ;;  %8458 = vmatprep.mubr.msk.f32.mxu1 %vm9002_vm0, %v9001_v0 }
 0x372   :  { %8466 = vmatprep.subr.mxu1 %v9001_v0 }
 0x374   :  { %8459 = vmatmul.mubr.msk.f32.vlgmr.msra.gmra.mrb[10].mxu1 %vm99_vm2, %v9103_v15 }
 0x375   :  { %8467 = vmatpush3.xpose.msk.msra.mxu1 %vm99_vm2, %v940_v36  ;;  %8468 = vmatprep.mubr.msk.f32.mxu1 %vm9002_vm0, %v9001_v0 }
 0x376   :  { %8476 = vmatprep.subr.mxu1 %v9001_v0 }
 0x378   :  { %8469 = vmatmul.mubr.msk.f32.vlgmr.msra.gmra.mrb[12].mxu1 %vm99_vm2, %v938_v38 }
 0x379   :  { %8477 = vmatpush3.xpose.msk.msra.mxu1 %vm99_vm2, %v1105_v39  ;;  %8478 = vmatprep.mubr.msk.f32.mxu1 %vm9002_vm0, %v9001_v0 }
 0x37a   :  { %8486 = vmatprep.subr.mxu1 %v9001_v0 }
 0x37c   :  { %8479 = vmatmul.mubr.msk.f32.vlgmr.msra.gmra.mrb[14].mxu1 %vm99_vm2, %v1103_v40 }
 0x37d   :  { %8487 = vmatpush3.xpose.msk.msra.mxu1 %vm99_vm2, %v1270_v41  ;;  %8488 = vmatprep.mubr.msk.f32.mxu1 %vm9002_vm0, %v9001_v0 }
 0x37e   :  { %8496 = vmatprep.subr.bf16.mxu1 %v9001_v0 }
 0x380   :  { %8489 = vmatmul.mubr.msk.f32.vlgmr.msra.gmra.mrb[16].mxu1 %vm99_vm2, %v1268_v42 }
 0x381   :  { %8497 = vmatpush3.bf16.msra.mxu1 %v9058_v1  ;;  %8500 = vmatprep.mubr.msk.bf16.mxu1 %vm9002_vm0, %v9001_v0 }
 0x382   :  { %8498 = vmatprep.subr.bf16.mxu1 %v9001_v0 }
 0x385   :  { %8499 = vmatpush3.bf16.msra.mxu1 %v9069_v2 }
 0x437   :  { %v9186_v43 = vpop.f32.mrb[2].mxu1 }
 0x438   :  { %v8425_v44 = vpop.f32.mrb[3].mxu1 }
 0x43b   :  { %v335_v45 = vpop.f32.mrb[4].mxu1 }
 0x43c   :  { %v8430_v46 = vpop.f32.mrb[5].mxu1  ;;  %v339_v47 = vsel %vm99_vm2, %v335_v45, -inf }
 0x43d   :  { %340 = vmax.xlane.f32.xlu1 %v339_v47 }
 0x43f   :  { %v500_v48 = vpop.f32.mrb[6].mxu1 }
 0x440   :  { %v8440_v49 = vpop.f32.mrb[7].mxu1  ;;  %v504_v50 = vsel %vm99_vm2, %v500_v48, -inf }
 0x441   :  { %505 = vmax.xlane.f32.xlu0 %v504_v50 }
 0x443   :  { %v665_v51 = vpop.f32.mrb[8].mxu1 }
 0x444   :  { %v8450_v52 = vpop.f32.mrb[9].mxu1  ;;  %v669_v53 = vsel %vm99_vm2, %v665_v51, -inf }
 0x445   :  { %670 = vmax.xlane.f32.xlu0 %v669_v53 }
 0x447   :  { %v846_v54 = vpop.f32.mrb[10].mxu1 }
 0x448   :  { %v8460_v55 = vpop.f32.mrb[11].mxu1  ;;  %v850_v56 = vsel %vm99_vm2, %v846_v54, -inf }
 0x449   :  { %851 = vmax.xlane.f32.xlu1 %v850_v56 }
 0x44b   :  { %v1011_v57 = vpop.f32.mrb[12].mxu1 }
 0x44c   :  { %v8470_v58 = vpop.f32.mrb[13].mxu1  ;;  %v1015_v59 = vsel %vm99_vm2, %v1011_v57, -inf }
 0x44d   :  { %1016 = vmax.xlane.f32.xlu0 %v1015_v59 }
 0x44f   :  { %v1176_v60 = vpop.f32.mrb[14].mxu1 }
 0x450   :  { %v8480_v61 = vpop.f32.mrb[15].mxu1  ;;  %v1180_v62 = vsel %vm99_vm2, %v1176_v60, -inf }
 0x451   :  { %1181 = vmax.xlane.f32.xlu1 %v1180_v62 }
 0x453   :  { %v1341_v63 = vpop.f32.mrb[16].mxu1 }
 0x454   :  { %v8490_v1 = vpop.f32.mrb[17].mxu1  ;;  %v1345_v2 = vsel %vm99_vm2, %v1341_v63, -inf }
 0x455   :  { %1346 = vmax.xlane.f32.xlu0 %v1345_v2 }
 0x462   :  { %515 = vrot.lane.b32.xlu1 %v9101_v12, %s9011_s14 }
 0x466   :  { %680 = vrot.lane.b32.xlu1 %v9101_v12, %s9012_s15 }
 0x46b   :  { %350 = vrot.lane.b32.xlu0 %v9101_v12, %s9013_s16 }
 0x4ca   :  { %v341_v5 = vpop.xlane.xlu1 %340 }
 0x4cb   :  { %v342_v6 = vsub.f32 %v335_v45, %v341_v5 }
 0x4cd   :  { %v343_v10 = vmul.f32 1.442695, %v342_v6 }
 0x4ce   :  { %v506_v11 = vpop.xlane.xlu0 %505 }
 0x4cf   :  { %8922 = vpow2.f32 %v343_v10  ;;  %v507_v13 = vsub.f32 %v500_v48, %v506_v11 }
 0x4d1   :  { %v508_v14 = vmul.f32 1.442695, %v507_v13 }
 0x4d2   :  { %v671_v17 = vpop.xlane.xlu0 %670 }
 0x4d3   :  { %8924 = vpow2.f32 %v508_v14  ;;  %v672_v23 = vsub.f32 %v665_v51, %v671_v17 }
 0x4d5   :  { %v673_v26 = vmul.f32 1.442695, %v672_v23 }
 0x4d6   :  { %v852_v24 = vpop.xlane.xlu1 %851 }
 0x4d7   :  { %v853_v25 = vsub.f32 %v846_v54, %v852_v24  ;;  %8926 = vpow2.f32 %v673_v26  ;;  %v9247_v26 = vsub.s32 1, %v9089_v7 }
 0x4d9   :  { %v8923_v16 = vpop.eup %8922  ;;  %v854_v29 = vmul.f32 1.442695, %v853_v25 }
 0x4da   :  { %v345_v18 = vsel %vm99_vm2, %v8923_v16, 0.0  ;;  %v1017_v20 = vpop.xlane.xlu0 %1016 }
 0x4db   :  { %346 = vadd.xlane.f32.xlu1 %v345_v18  ;;  %v1018_v27 = vsub.f32 %v1011_v57, %v1017_v20  ;;  %8928 = vpow2.f32 %v854_v29 }
 0x4dd   :  { %v8925_v19 = vpop.eup %8924  ;;  %v1019_v31 = vmul.f32 1.442695, %v1018_v27 }
 0x4de   :  { %v510_v21 = vsel %vm99_vm2, %v8925_v19, 0.0  ;;  %v1182_v28 = vpop.xlane.xlu1 %1181 }
 0x4df   :  { %511 = vadd.xlane.f32.xlu0 %v510_v21  ;;  %v1183_v30 = vsub.f32 %v1176_v60, %v1182_v28  ;;  %8930 = vpow2.f32 %v1019_v31 }
 0x4e1   :  { %v1184_v33 = vmul.f32 1.442695, %v1183_v30  ;;  %v8927_v35 = vpop.eup %8926  ;;  %v1495_v30 = vrot.slane %v9097_v9, %v9247_v26 }
 0x4e2   :  { %v1347_v22 = vpop.xlane.xlu0 %1346  ;;  %v675_v37 = vsel %vm99_vm2, %v8927_v35, 0.0  ;;  %v516_v46 = vpop.permute.xlu1 %515 }
 0x4e3   :  { %v1348_v32 = vsub.f32 %v1341_v63, %v1347_v22  ;;  %8932 = vpow2.f32 %v1184_v33 }
 0x4e5   :  { %v1349_v34 = vmul.f32 1.442695, %v1348_v32  ;;  %v8929_v36 = vpop.eup %8928 }
 0x4e6   :  { %v351_v12 = vpop.permute.xlu0 %350  ;;  %v856_v41 = vsel %vm99_vm2, %v8929_v36, 0.0  ;;  %v681_v47 = vpop.permute.xlu1 %680 }
 0x4e7   :  { %8432 = vmatpush3.msra.mxu0 %v351_v12  ;;  %8934 = vpow2.f32 %v1349_v34 }
 0x4e8   :  { %8441 = vmatprep.subr.mxu0 %v9001_v0 }
 0x4e9   :  { %v8931_v38 = vpop.eup %8930 }
 0x4ea   :  { %v1021_v40 = vsel %vm99_vm2, %v8931_v38, 0.0 }
 0x4ec   :  { %1026 = vrot.lane.b32.xlu1 %v9103_v15, %s9013_s16 }
 0x4ed   :  { %v8933_v39 = vpop.eup %8932 }
 0x4ee   :  { %v1186_v45 = vsel %vm99_vm2, %v8933_v39, 0.0 }
 0x4f1   :  { %v9211_v42 = vpop.eup %8934 }
 0x4f2   :  { %v1351_v44 = vsel %vm99_vm2, %v9211_v42, 0.0 }
 0x4f5   :  { %861 = vrot.lane.b32.xlu0 %v9103_v15, %s9003_s30 }
 0x510   :  { %676 = vadd.xlane.f32.xlu1 %v675_v37 }
 0x514   :  { %1022 = vadd.xlane.f32.xlu1 %v1021_v40  ;;  %857 = vadd.xlane.f32.xlu0 %v856_v41 }
 0x518   :  { %1352 = vadd.xlane.f32.xlu1 %v1351_v44  ;;  %1187 = vadd.xlane.f32.xlu0 %v1186_v45 }
 0x529   :  { %1356 = vrot.lane.b32.xlu1 %v9103_v15, %s9012_s15 }
 0x52e   :  { %1191 = vrot.lane.b32.xlu0 %v9103_v15, %s9011_s14 }
 0x568   :  { %v347_v48 = vpop.xlane.xlu1 %346 }
 0x569   :  { %8936 = vrcp.f32 %v347_v48 }
 0x56c   :  { %v512_v49 = vpop.xlane.xlu0 %511  ;;  %v1027_v15 = vpop.permute.xlu1 %1026 }
 0x56d   :  { %8938 = vrcp.f32 %v512_v49 }
 0x570   :  { %v862_v54 = vpop.permute.xlu0 %861 }
 0x573   :  { %v8937_v50 = vpop.eup %8936 }
 0x574   :  { %v349_v51 = vmul.f32 %v8937_v50, %v8923_v16 }
 0x576   :  { %8434 = vmatmul.mubr.msk.f32.vlgmr.msra.gmra.mrb[4].mxu0 %vm99_vm2, %v349_v51 }
 0x577   :  { %v8939_v52 = vpop.eup %8938  ;;  %8442 = vmatpush3.msra.mxu0 %v516_v46  ;;  %8443 = vmatprep.mubr.msk.f32.mxu0 %vm9002_vm0, %v9001_v0 }
 0x578   :  { %v514_v53 = vmul.f32 %v8939_v52, %v8925_v19  ;;  %8451 = vmatprep.subr.mxu0 %v9001_v0 }
 0x57a   :  { %8444 = vmatmul.mubr.msk.f32.vlgmr.msra.gmra.mrb[6].mxu0 %vm99_vm2, %v514_v53 }
 0x57b   :  { %8452 = vmatpush3.msra.mxu0 %v681_v47  ;;  %8453 = vmatprep.mubr.msk.f32.mxu0 %vm9002_vm0, %v9001_v0 }
 0x57c   :  { %8461 = vmatprep.subr.mxu0 %v9001_v0 }
 0x59d   :  { %v677_v55 = vpop.xlane.xlu1 %676 }
 0x59e   :  { %8940 = vrcp.f32 %v677_v55 }
 0x5a1   :  { %v858_v56 = vpop.xlane.xlu0 %857  ;;  %v1023_v57 = vpop.xlane.xlu1 %1022 }
 0x5a2   :  { %8942 = vrcp.f32 %v858_v56 }
 0x5a3   :  { %8944 = vrcp.f32 %v1023_v57 }
 0x5a5   :  { %v1188_v58 = vpop.xlane.xlu0 %1187  ;;  %v1353_v61 = vpop.xlane.xlu1 %1352 }
 0x5a6   :  { %8946 = vrcp.f32 %v1188_v58 }
 0x5a7   :  { %8948 = vrcp.f32 %v1353_v61 }
 0x5a8   :  { %v8941_v59 = vpop.eup %8940 }
 0x5a9   :  { %v679_v60 = vmul.f32 %v8941_v59, %v8927_v35  ;;  %v1192_v6 = vpop.permute.xlu0 %1191  ;;  %v1357_v13 = vpop.permute.xlu1 %1356 }
 0x5ab   :  { %8454 = vmatmul.mubr.msk.f32.vlgmr.msra.gmra.mrb[8].mxu0 %vm99_vm2, %v679_v60 }
 0x5ac   :  { %v8943_v62 = vpop.eup %8942  ;;  %8462 = vmatpush3.msra.mxu0 %v862_v54  ;;  %8463 = vmatprep.mubr.msk.f32.mxu0 %vm9002_vm0, %v9001_v0 }
 0x5ad   :  { %v860_v63 = vmul.f32 %v8943_v62, %v8929_v36  ;;  %8471 = vmatprep.subr.mxu0 %v9001_v0  ;;  %v8945_v1 = vpop.eup %8944 }
 0x5ae   :  { %v1025_v2 = vmul.f32 %v8945_v1, %v8931_v38 }
 0x5af   :  { %8464 = vmatmul.mubr.msk.f32.vlgmr.msra.gmra.mrb[10].mxu0 %vm99_vm2, %v860_v63 }
 0x5b0   :  { %8472 = vmatpush3.msra.mxu0 %v1027_v15  ;;  %8473 = vmatprep.mubr.msk.f32.mxu0 %vm9002_vm0, %v9001_v0  ;;  %v8947_v5 = vpop.eup %8946 }
 0x5b1   :  { %8481 = vmatprep.subr.mxu0 %v9001_v0  ;;  %v1190_v10 = vmul.f32 %v8947_v5, %v8933_v39  ;;  %v8949_v11 = vpop.eup %8948 }
 0x5b2   :  { %v1355_v14 = vmul.f32 %v8949_v11, %v9211_v42  ;;  %v1552_v11 = vld [vmem:[%s10720_s2] sm:$0xff] }
 0x5b3   :  { %8474 = vmatmul.mubr.msk.f32.vlgmr.msra.gmra.mrb[12].mxu0 %vm99_vm2, %v1025_v2 }
 0x5b4   :  { %8482 = vmatpush3.msra.mxu0 %v1192_v6  ;;  %8483 = vmatprep.mubr.msk.f32.mxu0 %vm9002_vm0, %v9001_v0 }
 0x5b5   :  { %8491 = vmatprep.subr.mxu0 %v9001_v0 }
 0x5b7   :  { %8484 = vmatmul.mubr.msk.f32.vlgmr.msra.gmra.mrb[14].mxu0 %vm99_vm2, %v1190_v10 }
 0x5b8   :  { %8492 = vmatpush3.msra.mxu0 %v1357_v13  ;;  %8493 = vmatprep.mubr.msk.f32.mxu0 %vm9002_vm0, %v9001_v0  ;;  %v1560_v13 = vld [vmem:[%s10720_s2 + $0x40] sm:$0xff] }
 0x5bb   :  { %8494 = vmatmul.mubr.msk.f32.vlgmr.msra.gmra.mrb[16].mxu0 %vm99_vm2, %v1355_v14  ;;  %v1553_v14 = vld [vmem:[%s10720_s2 + $0x8] sm:$0xff] }
 0x649   :  { %v422_v16 = vpop.f32.mrb[4].mxu0 }
 0x64a   :  { %v8435_v17 = vpop.f32.mrb[5].mxu0 }
 0x64b   :  { %v1561_v17 = vld [vmem:[%s10720_s2 + $0x48] sm:$0xff] }
 0x64d   :  { %v587_v18 = vpop.f32.mrb[6].mxu0 }
 0x64e   :  { %v8445_v19 = vpop.f32.mrb[7].mxu0 }
 0x64f   :  { %v7314_v19 = vcombine.low %v1553_v14, %v1561_v17 }
 0x67e   :  { %v752_v20 = vpop.f32.mrb[8].mxu0 }
 0x67f   :  { %v8455_v21 = vpop.f32.mrb[9].mxu0 }
 0x680   :  { %v1568_v21 = vld [vmem:[%s10720_s2 + $0x80] sm:$0xff] }
 0x682   :  { %v933_v22 = vpop.f32.mrb[10].mxu0 }
 0x683   :  { %v8465_v12 = vpop.f32.mrb[11].mxu0 }
 0x684   :  { %v1569_v12 = vld [vmem:[%s10720_s2 + $0x88] sm:$0xff] }
 0x686   :  { %v1098_v23 = vpop.f32.mrb[12].mxu0 }
 0x687   :  { %v8626_v24 = vpack.i.bf16 %v1098_v23, %v422_v16  ;;  %v8475_v25 = vpop.f32.mrb[13].mxu0  ;;  %v7313_v16 = vcombine.high %v1552_v11, %v1560_v13 }
 0x689   :  { %8627 = vrot.lane.b32.xlu0 %v8626_v24, %s9014_s17  ;;  %1832 = vmatprep.subr.bf16.mxu0 %v7313_v16  ;;  %v1577_v24 = vld [vmem:[%s10720_s2 + $0xc8] sm:$0xff] }
 0x68a   :  { %v1263_v27 = vpop.f32.mrb[14].mxu0 }
 0x68b   :  { %v8631_v28 = vpack.i.bf16 %v1263_v27, %v587_v18  ;;  %v8485_v29 = vpop.f32.mrb[15].mxu0  ;;  %v7312_v18 = vcombine.low %v1552_v11, %v1560_v13  ;;  %v7330_v27 = vcombine.low %v1569_v12, %v1577_v24  ;;  %v1581_v11 = vld [vmem:[%s10720_s2 + $0xe8] sm:$0xff] }
 0x68c   :  { %v1554_v29 = vld [vmem:[%s10720_s2 + $0x10] sm:$0xff] }
 0x68d   :  { %8632 = vrot.lane.b32.xlu1 %v8631_v28, %s9015_s18  ;;  %1833 = vmatpush1.bf16.msra.mxu0 %v7312_v18  ;;  %v7331_v28 = vcombine.high %v1569_v12, %v1577_v24  ;;  %v1558_v18 = vld [vmem:[%s10720_s2 + $0x30] sm:$0xff] }
 0x68e   :  { %v1428_v31 = vpop.f32.mrb[16].mxu0 }
 0x68f   :  { %v8636_v32 = vpack.i.bf16 %v1428_v31, %v752_v20  ;;  %v8495_v33 = vpop.f32.mrb[17].mxu0  ;;  %v7315_v20 = vcombine.high %v1553_v14, %v1561_v17  ;;  %v1555_v31 = vld [vmem:[%s10720_s2 + $0x18] sm:$0xff] }
 0x691   :  { %8637 = vrot.lane.b32.xlu0 %v8636_v32, %s9016_s19  ;;  %1497 = vrot.lane.b32.xlu1 %v1495_v30, %s9004_s7  ;;  %v1562_v30 = vld [vmem:[%s10720_s2 + $0x50] sm:$0xff]  ;;  %v9018_v32 = vmov 0  }
 0x692   :  { %1875 = vmatprep.subr.bf16.mxu1 %v7315_v20  ;;  %1864 = vmatprep.mubr.bf16.mxu0 %v9018_v32  ;;  %v7317_v33 = vcombine.high %v1554_v29, %v1562_v30  ;;  %v1559_v20 = vld [vmem:[%s10720_s2 + $0x38] sm:$0xff] }
 0x6fb   :  { %v8628_v34 = vpop.permute.xlu0 %8627 }
 0x6fc   :  { %v8630_v36 = vunpack.i.h.bf16 %v8628_v34  ;;  %v8629_v37 = vunpack.i.l.bf16 %v8628_v34  ;;  %v1563_v34 = vld [vmem:[%s10720_s2 + $0x58] sm:$0xff] }
 0x6fe   :  { %v1444_v41 = vsel %vm99_vm2, %v933_v22, %v8630_v36  ;;  %v768_v9 = vsel %vm99_vm2, %v9186_v43, %v8629_v37  ;;  %v1576_v22 = vld [vmem:[%s10720_s2 + $0xc0] sm:$0xff]  ;;  %v7318_v36 = vcombine.low %v1555_v31, %v1563_v34  ;;  %v7319_v37 = vcombine.high %v1555_v31, %v1563_v34 }
 0x6ff   :  { %v8633_v35 = vpop.permute.xlu1 %8632  ;;  %v7329_v23 = vcombine.high %v1568_v21, %v1576_v22  ;;  %v7328_v25 = vcombine.low %v1568_v21, %v1576_v22  ;;  %v1567_v21 = vld [vmem:[%s10720_s2 + $0x78] sm:$0xff] }
 0x700   :  { %v8635_v38 = vunpack.i.h.bf16 %v8633_v35  ;;  %v8634_v39 = vunpack.i.l.bf16 %v8633_v35  ;;  %v7316_v35 = vcombine.low %v1554_v29, %v1562_v30  ;;  %v1583_v29 = vld [vmem:[%s10720_s2 + $0xf8] sm:$0xff]  ;;  %v7327_v31 = vcombine.high %v1559_v20, %v1567_v21 }
 0x701   :  { %1834 = vmatprep.subr.bf16.mxu0 %v7329_v23  ;;  %v7326_v34 = vcombine.low %v1559_v20, %v1567_v21 }
 0x702   :  { %v1445_v45 = vsel %vm769_vm3, %v1444_v41, %v8635_v38  ;;  %v770_v46 = vsel %vm769_vm3, %v768_v9, %v8634_v39  ;;  %1835 = vmatpush1.bf16.msra.mxu0 %v7328_v25  ;;  %v9313_v39 = vsub.s32 2, %v9089_v7  ;;  %v1574_v25 = vld [vmem:[%s10720_s2 + $0xb0] sm:$0xff] }
 0x703   :  { %v8638_v40 = vpop.permute.xlu0 %8637  ;;  %v1498_v50 = vpop.permute.xlu1 %1497  ;;  %1918 = vmatprep.subr.bf16.mxu0 %v7317_v33 }
 0x704   :  { %v8640_v42 = vunpack.i.h.bf16 %v8638_v40  ;;  %v8639_v44 = vunpack.i.l.bf16 %v8638_v40 }
 0x706   :  { %v1446_v47 = vsel %vm771_vm4, %v1445_v45, %v8640_v42  ;;  %v772_v48 = vsel %vm771_vm4, %v770_v46, %v8639_v44  ;;  %v9316_v42 = vsub.s32 3, %v9089_v7 }
 0x707   :  { %v1447_v49 = vpack.c.bf16 %v1446_v47, %v772_v48  ;;  %v8998_v47 = vld [vmem:[%s10719_s5] sm:$0xff] }
 0x708   :  { %v1542_v48 = vrot.slane %v8998_v47, %v9313_v39 }
 0x709   :  { %8501 = vmatmul.mubr.msk.bf16.vlgmr.msra.gmra.mrb[20].mxu1 %vm45_vm1, %v1447_v49 }
 0x70a   :  { %1876 = vmatpush1.bf16.msra.mxu1 %v7314_v19  ;;  %1907 = vmatprep.mubr.bf16.mxu1 %v9018_v32  ;;  %v1566_v19 = vld [vmem:[%s10720_s2 + $0x70] sm:$0xff] }
 0x70b   :  { %1877 = vmatprep.subr.bf16.mxu1 %v7331_v28  ;;  %v1575_v28 = vld [vmem:[%s10720_s2 + $0xb8] sm:$0xff]  ;;  %v7325_v30 = vcombine.high %v1558_v18, %v1566_v19  ;;  %v7324_v33 = vcombine.low %v1558_v18, %v1566_v19 }
 0x70e   :  { %1878 = vmatpush1.bf16.msra.mxu1 %v7330_v27  ;;  %v1582_v27 = vld [vmem:[%s10720_s2 + $0xf0] sm:$0xff] }
 0x70f   :  { %1961 = vmatprep.subr.bf16.mxu1 %v7319_v37  ;;  %v8658_v37 = vld [vmem:[%s10721_s4 + $0x40] sm:$0xff]  }
 0x7dc   :  { %v1485_v51 = vpop.f32.mrb[20].mxu1 }
 0x7dd   :  { %v1500_v52 = vadd.f32 %v1498_v50, %v1485_v51  ;;  %v8502_v53 = vpop.f32.mrb[21].mxu1  ;;  %v1548_v51 = vrot.slane %v8998_v47, %v9316_v42  ;;  %v8664_v47 = vld [vmem:[%s10721_s4 + $0x8] sm:$0xff]  }
 0x7de   :  { %v1488_v15 = vpop.f32.mrb[22].mxu1 }
 0x7df   :  { %v1501_v54 = vadd.f32 %v1498_v50, %v1488_v15  ;;  %1504 = vrot.lane.b32.xlu0 %v1500_v52, %s9017_s20  ;;  %v8503_v43 = vpop.f32.mrb[23].mxu1  ;;  %v1570_v15 = vld [vmem:[%s10720_s2 + $0x90] sm:$0xff] }
 0x7e0   :  { %v1571_v43 = vld [vmem:[%s10720_s2 + $0x98] sm:$0xff] }
 0x7e1   :  { %1506 = vrot.lane.b32.xlu1 %v1501_v54, %s9017_s20  ;;  %v1578_v54 = vld [vmem:[%s10720_s2 + $0xd0] sm:$0xff] }
 0x851   :  { %v1505_v55 = vpop.permute.xlu0 %1504 }
 0x852   :  { %v1510_v56 = vadd.f32 %v1505_v55, %v9074_v3  ;;  %v1579_v55 = vld [vmem:[%s10720_s2 + $0xd8] sm:$0xff] }
 0x853   :  { %v1507_v57 = vpop.permute.xlu1 %1506 }
 0x854   :  { %v1511_v58 = vadd.f32 %v1507_v57, %v9079_v4  ;;  %v1512_v59 = vsel %vm45_vm1, %v1510_v56, 0.0 }
 0x855   :  { %1513 = vadd.xlane.f32.xlu0 %v1512_v59  ;;  %v1556_v59 = vld [vmem:[%s10720_s2 + $0x20] sm:$0xff] }
 0x856   :  { %v1515_v60 = vsel %vm45_vm1, %v1511_v58, 0.0 }
 0x857   :  { %1516 = vadd.xlane.f32.xlu1 %v1515_v60  ;;  %v1564_v60 = vld [vmem:[%s10720_s2 + $0x60] sm:$0xff] }
 0x858   :  { %v7321_v13 = vcombine.high %v1556_v59, %v1564_v60  ;;  %v7320_v16 = vcombine.low %v1556_v59, %v1564_v60  ;;  %v8676_v59 = vld [vmem:[%s10721_s4 + $0x20] sm:$0xff]  }
 0x859   :  { %v8677_v60 = vld [vmem:[%s10721_s4 + $0xa0] sm:$0xff]  }
 0x8e2   :  { %v1514_v61 = vpop.xlane.xlu0 %1513 }
 0x8e3   :  { %v1519_v62 = vmul.f32 0.03125, %v1514_v61  ;;  %v1557_v61 = vld [vmem:[%s10720_s2 + $0x28] sm:$0xff] }
 0x8e4   :  { %v1517_v63 = vpop.xlane.xlu1 %1516 }
 0x8e5   :  { %v1521_v1 = vsub.f32 %v1510_v56, %v1519_v62  ;;  %v1520_v2 = vmul.f32 0.03125, %v1517_v63  ;;  %v1565_v62 = vld [vmem:[%s10720_s2 + $0x68] sm:$0xff] }
 0x8e6   :  { %v7323_v14 = vcombine.high %v1557_v61, %v1565_v62  ;;  %v7322_v17 = vcombine.low %v1557_v61, %v1565_v62  ;;  %v8678_v61 = vld [vmem:[%s10721_s4 + $0x68] sm:$0xff]  }
 0x8e7   :  { %v9268_v5 = vsub.f32 %v1511_v58, %v1520_v2  ;;  %v1523_v6 = vmul.f32 %v1521_v1, %v1521_v1  ;;  %v7335_v2 = vcombine.high %v1571_v43, %v1579_v55  ;;  %v8679_v62 = vld [vmem:[%s10721_s4 + $0xe8] sm:$0xff]  }
 0x8e9   :  { %v1525_v10 = vsel %vm45_vm1, %v1523_v6, 0.0  ;;  %v1524_v3 = vmul.f32 %v9268_v5, %v9268_v5  ;;  %v7334_v6 = vcombine.low %v1571_v43, %v1579_v55  ;;  %v8673_v43 = vld [vmem:[%s10721_s4 + $0x98] sm:$0xff]   ;;  %v8674_v55 = vld [vmem:[%s10721_s4 + $0x60] sm:$0xff]  }
 0x8ea   :  { %1526 = vadd.xlane.f32.xlu0 %v1525_v10  ;;  %v1572_v10 = vld [vmem:[%s10720_s2 + $0xa0] sm:$0xff] }
 0x8eb   :  { %v1528_v4 = vsel %vm45_vm1, %v1524_v3, 0.0  ;;  %v1580_v3 = vld [vmem:[%s10720_s2 + $0xe0] sm:$0xff] }
 0x8ec   :  { %v7337_v22 = vcombine.high %v1572_v10, %v1580_v3  ;;  %v7336_v23 = vcombine.low %v1572_v10, %v1580_v3  ;;  %v8685_v10 = vld [vmem:[%s10721_s4 + $0xb0] sm:$0xff]   ;;  %v8686_v3 = vld [vmem:[%s10721_s4 + $0x78] sm:$0xff]  }
 0x8ee   :  { %1529 = vadd.xlane.f32.xlu0 %v1528_v4  ;;  %v1573_v4 = vld [vmem:[%s10720_s2 + $0xa8] sm:$0xff] }
 0x8ef   :  { %v7339_v12 = vcombine.high %v1573_v4, %v1581_v11  ;;  %v7338_v24 = vcombine.low %v1573_v4, %v1581_v11  ;;  %v8687_v4 = vld [vmem:[%s10721_s4 + $0xf8] sm:$0xff]  }
 0x8f0   :  { %v8688_v11 = vld [vmem:[%s10721_s4 + $0x38] sm:$0xff]  }
 0x977   :  { %v1527_v38 = vpop.xlane.xlu0 %1526 }
 0x978   :  { %v1531_v40 = vmul.f32 0.03125, %v1527_v38  ;;  %v8659_v38 = vld [vmem:[%s10721_s4 + $0xc0] sm:$0xff]  }
 0x97a   :  { %v1533_v41 = vadd.f32 1e-05, %v1531_v40  ;;  %v7340_v40 = vcombine.low %v1574_v25, %v1582_v27 }
 0x97b   :  { %v1530_v9 = vpop.xlane.xlu0 %1529 }
 0x97c   :  { %8950 = vrsqrt.f32 %v1533_v41  ;;  %v1532_v44 = vmul.f32 0.03125, %v1530_v9  ;;  %v7342_v41 = vcombine.low %v1575_v28, %v1583_v29  ;;  %v8660_v9 = vld [vmem:[%s10721_s4] sm:$0xff]  }
 0x97e   :  { %v1534_v45 = vadd.f32 1e-05, %v1532_v44  ;;  %v8661_v44 = vld [vmem:[%s10721_s4 + $0x80] sm:$0xff]  }
 0x980   :  { %8952 = vrsqrt.f32 %v1534_v45  ;;  %v8662_v45 = vld [vmem:[%s10721_s4 + $0x48] sm:$0xff]  }
 0x986   :  { %v8951_v46 = vpop.eup %8950 }
 0x987   :  { %v1537_v49 = vmul.f32 %v8951_v46, %v1521_v1  ;;  %v7333_v1 = vcombine.high %v1570_v15, %v1578_v54  ;;  %v8663_v46 = vld [vmem:[%s10721_s4 + $0xc8] sm:$0xff]  }
 0x989   :  { %v1543_v52 = vmul.f32 %v1542_v48, %v1537_v49  ;;  %v8666_v49 = vld [vmem:[%s10721_s4 + $0x50] sm:$0xff]  }
 0x98a   :  { %v8953_v50 = vpop.eup %8952 }
 0x98b   :  { %v1538_v53 = vmul.f32 %v8953_v50, %v9268_v5  ;;  %v9336_v57 = vadd.f32 %v1548_v51, %v1543_v52  ;;  %v7332_v5 = vcombine.low %v1570_v15, %v1578_v54  ;;  %v8667_v50 = vld [vmem:[%s10721_s4 + $0xd0] sm:$0xff]   ;;  %v8671_v15 = vld [vmem:[%s10721_s4 + $0xd8] sm:$0xff]  }
 0x98c   :  { %v8669_v52 = vld [vmem:[%s10721_s4 + $0x90] sm:$0xff]   ;;  %v8672_v54 = vld [vmem:[%s10721_s4 + $0x18] sm:$0xff]  }
 0x98d   :  { %v1544_v56 = vmul.f32 %v1542_v48, %v1538_v53  ;;  %v8665_v48 = vld [vmem:[%s10721_s4 + $0x88] sm:$0xff]   ;;  %v8670_v53 = vld [vmem:[%s10721_s4 + $0x58] sm:$0xff]  }
 0x98f   :  { %v9338_v58 = vadd.f32 %v1548_v51, %v1544_v56  ;;  %v8668_v51 = vld [vmem:[%s10721_s4 + $0x10] sm:$0xff]   ;;  %v8675_v56 = vld [vmem:[%s10721_s4 + $0xe0] sm:$0xff]  }
 0x991   :  { %v9354_v63 = vpack.c.bf16 %v9338_v58, %v9336_v57 }
 0x993   :  { %7344 = vmatmul.mubr.msk.bf16.vlgmr.msra.gmra.mrb[20].mxu0 %vm45_vm1, %v9354_v63  ;;  %7345 = vmatmul.mubr.msk.bf16.vlgmr.msra.gmra.mrb[24].mxu1 %vm45_vm1, %v9354_v63 }
 0x994   :  { %1919 = vmatpush1.bf16.msra.mxu0 %v7316_v35  ;;  %1962 = vmatpush1.bf16.msra.mxu1 %v7318_v36  ;;  %v7341_v35 = vcombine.high %v1574_v25, %v1582_v27  ;;  %v7343_v36 = vcombine.high %v1575_v28, %v1583_v29  ;;  %v9530_v25 = vsub.s32 5, %v9089_v7  ;;  %v9533_v27 = vsub.s32 7, %v9089_v7 }
 0x995   :  { %1920 = vmatprep.subr.bf16.mxu0 %v7333_v1  ;;  %1963 = vmatprep.subr.bf16.mxu1 %v7335_v2  ;;  %v8681_v1 = vld [vmem:[%s10721_s4 + $0xa8] sm:$0xff]   ;;  %v8682_v2 = vld [vmem:[%s10721_s4 + $0x70] sm:$0xff]  }
 0x996   :  { %1950 = vmatprep.mubr.bf16.mxu0 %v9018_v32  ;;  %1993 = vmatprep.mubr.bf16.mxu1 %v9018_v32 }
 0x998   :  { %1921 = vmatpush1.bf16.msra.mxu0 %v7332_v5  ;;  %1964 = vmatpush1.bf16.msra.mxu1 %v7334_v6  ;;  %v8683_v5 = vld [vmem:[%s10721_s4 + $0xf0] sm:$0xff]  }
 0x999   :  { %2004 = vmatprep.subr.bf16.mxu0 %v7321_v13  ;;  %2047 = vmatprep.subr.bf16.mxu1 %v7323_v14  ;;  %v8684_v6 = vld [vmem:[%s10721_s4 + $0x30] sm:$0xff]   ;;  %v8689_v13 = vld [vmem:[%s10721_s4 + $0xb8] sm:$0xff]   ;;  %v8690_v14 = vld [vmem:[%s10721_s4 + $0x140] sm:$0xff]  }
 0x99b   :  { %7346 = vmatmul.mubr.msk.bf16.vlgmr.msra.gmra.mrb[24].mxu0 %vm45_vm1, %v9354_v63  ;;  %7347 = vmatmul.mubr.msk.bf16.vlgmr.msra.gmra.mrb[28].mxu1 %vm45_vm1, %v9354_v63 }
 0x99c   :  { %2005 = vmatpush1.bf16.msra.mxu0 %v7320_v16  ;;  %2048 = vmatpush1.bf16.msra.mxu1 %v7322_v17  ;;  %v8691_v16 = vld [vmem:[%s10721_s4 + $0x1c0] sm:$0xff]  }
 0x99d   :  { %2006 = vmatprep.subr.bf16.mxu0 %v7337_v22  ;;  %2049 = vmatprep.subr.bf16.mxu1 %v7339_v12  ;;  %v1584_v17 = vld [vmem:[%s10722_s3] ss:$2 sm:$0xff]  ;;  %v9524_v22 = vsub.s32 4, %v9089_v7  ;;  %v9527_v12 = vsub.s32 6, %v9089_v7 }
 0x99e   :  { %2036 = vmatprep.mubr.bf16.mxu0 %v9018_v32  ;;  %2079 = vmatprep.mubr.bf16.mxu1 %v9018_v32  ;;  %v1592_v18 = vrot.slane %v1584_v17, %v9092_v8  ;;  %v1600_v19 = vrot.slane %v1584_v17, %v9313_v39  ;;  %v1596_v20 = vrot.slane %v1584_v17, %v9247_v26 }
 0x99f   :  { %v1604_v21 = vrot.slane %v1584_v17, %v9316_v42  ;;  %v1612_v7 = vrot.slane %v1584_v17, %v9530_v25 }
 0x9a0   :  { %2007 = vmatpush1.bf16.msra.mxu0 %v7336_v23  ;;  %2050 = vmatpush1.bf16.msra.mxu1 %v7338_v24 }
 0x9a1   :  { %2090 = vmatprep.subr.bf16.mxu0 %v7325_v30  ;;  %2133 = vmatprep.subr.bf16.mxu1 %v7327_v31 }
 0x9a3   :  { %7348 = vmatmul.mubr.msk.bf16.vlgmr.msra.gmra.mrb[28].mxu0 %vm45_vm1, %v9354_v63  ;;  %7349 = vmatmul.mubr.msk.bf16.vlgmr.msra.gmra.mrb[32].mxu1 %vm45_vm1, %v9354_v63 }
 0x9a4   :  { %2091 = vmatpush1.bf16.msra.mxu0 %v7324_v33  ;;  %2134 = vmatpush1.bf16.msra.mxu1 %v7326_v34 }
 0x9a5   :  { %2092 = vmatprep.subr.bf16.mxu0 %v7341_v35  ;;  %2135 = vmatprep.subr.bf16.mxu1 %v7343_v36 }
 0x9a6   :  { %2122 = vmatprep.mubr.bf16.mxu0 %v9018_v32  ;;  %2165 = vmatprep.mubr.bf16.mxu1 %v9018_v32 }
 0x9a8   :  { %2093 = vmatpush1.bf16.msra.mxu0 %v7340_v40  ;;  %2136 = vmatpush1.bf16.msra.mxu1 %v7342_v41 }
 0x9a9   :  { %8015 = vmatprep.subr.bf16.mxu0 %v8658_v37  ;;  %8037 = vmatprep.subr.bf16.mxu1 %v8659_v38 }
 0x9ab   :  { %7350 = vmatmul.mubr.msk.bf16.vlgmr.msra.gmra.mrb[32].mxu0 %vm45_vm1, %v9354_v63  ;;  %7351 = vmatmul.mubr.msk.bf16.vlgmr.msra.gmra.mrb[36].mxu1 %vm45_vm1, %v9354_v63  ;;  %v8680_v63 = vld [vmem:[%s10721_s4 + $0x28] sm:$0xff]  }
 0x9ac   :  { %8016 = vmatpush3.bf16.msra.mxu0 %v8660_v9  ;;  %8038 = vmatpush3.bf16.msra.mxu1 %v8661_v44  ;;  %v1608_v9 = vrot.slane %v1584_v17, %v9524_v22  ;;  %v1616_v44 = vrot.slane %v1584_v17, %v9527_v12 }
 0x9ad   :  { %8017 = vmatprep.subr.bf16.mxu0 %v8662_v45  ;;  %8039 = vmatprep.subr.bf16.mxu1 %v8663_v46 }
 0x9b0   :  { %8018 = vmatpush3.bf16.msra.mxu0 %v8664_v47  ;;  %8040 = vmatpush3.bf16.msra.mxu1 %v8665_v48  ;;  %v1620_v47 = vrot.slane %v1584_v17, %v9533_v27 }
 0x9b1   :  { %8019 = vmatprep.subr.bf16.mxu0 %v8666_v49  ;;  %8041 = vmatprep.subr.bf16.mxu1 %v8667_v50 }
 0x9b4   :  { %8020 = vmatpush3.bf16.msra.mxu0 %v8668_v51  ;;  %8042 = vmatpush3.bf16.msra.mxu1 %v8669_v52 }
 0x9b5   :  { %8021 = vmatprep.subr.bf16.mxu0 %v8670_v53  ;;  %8043 = vmatprep.subr.bf16.mxu1 %v8671_v15 }
 0x9b8   :  { %8022 = vmatpush3.bf16.msra.mxu0 %v8672_v54  ;;  %8044 = vmatpush3.bf16.msra.mxu1 %v8673_v43  ;;  %v9542_v43 = vld [vmem:[%s10722_s3 + $0x10] ss:$2 sm:$0xff] }
 0x9b9   :  { %8023 = vmatprep.subr.bf16.mxu0 %v8674_v55  ;;  %8045 = vmatprep.subr.bf16.mxu1 %v8675_v56 }
 0x9bc   :  { %8024 = vmatpush3.bf16.msra.mxu0 %v8676_v59  ;;  %8046 = vmatpush3.bf16.msra.mxu1 %v8677_v60 }
 0x9bd   :  { %8025 = vmatprep.subr.bf16.mxu0 %v8678_v61  ;;  %8047 = vmatprep.subr.bf16.mxu1 %v8679_v62 }
 0x9c0   :  { %8026 = vmatpush3.bf16.msra.mxu0 %v8680_v63  ;;  %8048 = vmatpush3.bf16.msra.mxu1 %v8681_v1  ;;  %v8692_v63 = vld [vmem:[%s10721_s4 + $0x100] sm:$0xff]  }
 0x9c1   :  { %8027 = vmatprep.subr.bf16.mxu0 %v8682_v2  ;;  %8049 = vmatprep.subr.bf16.mxu1 %v8683_v5  ;;  %v8693_v1 = vld [vmem:[%s10721_s4 + $0x180] sm:$0xff]  }
 0x9c4   :  { %8028 = vmatpush3.bf16.msra.mxu0 %v8684_v6  ;;  %8050 = vmatpush3.bf16.msra.mxu1 %v8685_v10 }
 0x9c5   :  { %8029 = vmatprep.subr.bf16.mxu0 %v8686_v3  ;;  %8051 = vmatprep.subr.bf16.mxu1 %v8687_v4  ;;  %v8694_v3 = vld [vmem:[%s10721_s4 + $0x148] sm:$0xff]  }
 0x9c6   :  { %v8695_v4 = vld [vmem:[%s10721_s4 + $0x1c8] sm:$0xff]  }
 0x9c8   :  { %8030 = vmatpush3.bf16.msra.mxu0 %v8688_v11  ;;  %8052 = vmatpush3.bf16.msra.mxu1 %v8689_v13  ;;  %v1624_v11 = vrot.slane %v9542_v43, %v9092_v8 }
 0x9c9   :  { %8059 = vmatprep.subr.bf16.mxu0 %v8690_v14  ;;  %8081 = vmatprep.subr.bf16.mxu1 %v8691_v16 }
 0xa66   :  { %v1866_v23 = vpop.f32.mrb[20].mxu0  ;;  %v1909_v24 = vpop.f32.mrb[24].mxu1 }
 0xa67   :  { %v1867_v28 = vadd.f32 %v1866_v23, %v1592_v18  ;;  %v1910_v29 = vadd.f32 %v1909_v24, %v1600_v19  ;;  %v1868_v30 = vpop.f32.mrb[21].mxu0  ;;  %v1911_v31 = vpop.f32.mrb[25].mxu1  ;;  %v1628_v24 = vrot.slane %v9542_v43, %v9247_v26 }
 0xa68   :  { %v1869_v33 = vadd.f32 %v1868_v30, %v1596_v20  ;;  %v1912_v34 = vadd.f32 %v1911_v31, %v1604_v21  ;;  %v1870_v35 = vpop.f32.mrb[22].mxu0  ;;  %v1913_v36 = vpop.f32.mrb[26].mxu1  ;;  %v8696_v30 = vld [vmem:[%s10721_s4 + $0x108] sm:$0xff]  }
 0xa69   :  { %v1871_v37 = vadd.f32 %v1870_v35, %v1592_v18  ;;  %v1914_v38 = vadd.f32 %v1913_v36, %v1600_v19  ;;  %v1872_v40 = vpop.f32.mrb[23].mxu0  ;;  %v1915_v41 = vpop.f32.mrb[27].mxu1  ;;  %v2176_v48 = vmax.f32 %v1867_v28, 0.0  ;;  %v2178_v49 = vmax.f32 %v1910_v29, 0.0  ;;  %v8697_v31 = vld [vmem:[%s10721_s4 + $0x188] sm:$0xff]  }
 0xa6a   :  { %v1873_v45 = vadd.f32 %v1872_v40, %v1596_v20  ;;  %v1916_v46 = vadd.f32 %v1915_v41, %v1604_v21  ;;  %v2177_v52 = vmax.f32 %v1869_v33, 0.0  ;;  %v2179_v53 = vmax.f32 %v1912_v34, 0.0  ;;  %v8699_v40 = vld [vmem:[%s10721_s4 + $0x1d0] sm:$0xff]  }
 0xa6b   :  { %v2192_v50 = vmax.f32 %v1871_v37, 0.0  ;;  %v2194_v51 = vmax.f32 %v1914_v38, 0.0  ;;  %v1632_v18 = vrot.slane %v9542_v43, %v9313_v39  ;;  %v1636_v33 = vrot.slane %v9542_v43, %v9316_v42  ;;  %v8698_v38 = vld [vmem:[%s10721_s4 + $0x150] sm:$0xff]  }
 0xa6c   :  { %v2193_v15 = vmax.f32 %v1873_v45, 0.0  ;;  %v2195_v54 = vmax.f32 %v1916_v46, 0.0 }
 0xa6d   :  { %v2208_v55 = vpack.c.bf16 %v2192_v50, %v2176_v48  ;;  %v2210_v56 = vpack.c.bf16 %v2194_v51, %v2178_v49  ;;  %v8700_v51 = vld [vmem:[%s10721_s4 + $0x110] sm:$0xff]  }
 0xa6e   :  { %v2209_v59 = vpack.c.bf16 %v2193_v15, %v2177_v52  ;;  %v2211_v60 = vpack.c.bf16 %v2195_v54, %v2179_v53  ;;  %v1952_v61 = vpop.f32.mrb[24].mxu0  ;;  %v1995_v62 = vpop.f32.mrb[28].mxu1  ;;  %v8701_v52 = vld [vmem:[%s10721_s4 + $0x190] sm:$0xff]  }
 0xa6f   :  { %v1953_v2 = vadd.f32 %v1952_v61, %v1608_v9  ;;  %v1996_v5 = vadd.f32 %v1995_v62, %v1616_v44  ;;  %v1954_v6 = vpop.f32.mrb[25].mxu0  ;;  %v1997_v10 = vpop.f32.mrb[29].mxu1 }
 0xa70   :  { %v1955_v13 = vadd.f32 %v1954_v6, %v1612_v7  ;;  %v1998_v14 = vadd.f32 %v1997_v10, %v1620_v47  ;;  %v1956_v16 = vpop.f32.mrb[26].mxu0  ;;  %v1999_v17 = vpop.f32.mrb[30].mxu1  ;;  %3284 = vmatprep.mubr.bf16.mxu0 %v2209_v59  ;;  %3325 = vmatprep.mubr.bf16.mxu1 %v2211_v60  ;;  %v8703_v59 = vld [vmem:[%s10721_s4 + $0x1d8] sm:$0xff]  }
 0xa71   :  { %v1957_v19 = vadd.f32 %v1956_v16, %v1608_v9  ;;  %v2000_v20 = vadd.f32 %v1999_v17, %v1616_v44  ;;  %v1958_v21 = vpop.f32.mrb[27].mxu0  ;;  %v2001_v23 = vpop.f32.mrb[31].mxu1  ;;  %3285 = vmatmul.mubr.bf16.vlgmr.msra.gmra.mrb[36].mxu0 %v2208_v55  ;;  %3326 = vmatmul.mubr.bf16.vlgmr.msra.gmra.mrb[40].mxu1 %v2210_v56  ;;  %v2180_v34 = vmax.f32 %v1953_v2, 0.0  ;;  %v2182_v35 = vmax.f32 %v1996_v5, 0.0  ;;  %v8702_v56 = vld [vmem:[%s10721_s4 + $0x158] sm:$0xff]  }
 0xa72   :  { %v1959_v28 = vadd.f32 %v1958_v21, %v1612_v7  ;;  %v2002_v29 = vadd.f32 %v2001_v23, %v1620_v47  ;;  %8060 = vmatpush3.bf16.msra.mxu0 %v8692_v63  ;;  %8082 = vmatpush3.bf16.msra.mxu1 %v8693_v1  ;;  %v2181_v41 = vmax.f32 %v1955_v13, 0.0  ;;  %v2183_v9 = vmax.f32 %v1998_v14, 0.0  ;;  %v8704_v16 = vld [vmem:[%s10721_s4 + $0x118] sm:$0xff]   ;;  %v8706_v23 = vld [vmem:[%s10721_s4 + $0x160] sm:$0xff]  }
 0xa73   :  { %v2196_v36 = vmax.f32 %v1957_v19, 0.0  ;;  %v2198_v37 = vmax.f32 %v2000_v20, 0.0  ;;  %8061 = vmatprep.subr.bf16.mxu0 %v8694_v3  ;;  %8083 = vmatprep.subr.bf16.mxu1 %v8695_v4  ;;  %v1640_v1 = vrot.slane %v9542_v43, %v9524_v22  ;;  %v1648_v3 = vrot.slane %v9542_v43, %v9527_v12 }
 0xa74   :  { %v2197_v44 = vmax.f32 %v1959_v28, 0.0  ;;  %v2199_v45 = vmax.f32 %v2002_v29, 0.0  ;;  %v1644_v4 = vrot.slane %v9542_v43, %v9530_v25  ;;  %v1652_v17 = vrot.slane %v9542_v43, %v9533_v27 }
 0xa75   :  { %v9576_v46 = vpack.c.bf16 %v2196_v36, %v2180_v34  ;;  %v9578_v7 = vpack.c.bf16 %v2198_v37, %v2182_v35 }
 0xa76   :  { %v2213_v47 = vpack.c.bf16 %v2197_v44, %v2181_v41  ;;  %v2215_v48 = vpack.c.bf16 %v2199_v45, %v2183_v9  ;;  %8062 = vmatpush3.bf16.msra.mxu0 %v8696_v30  ;;  %8084 = vmatpush3.bf16.msra.mxu1 %v8697_v31  ;;  %v2038_v49 = vpop.f32.mrb[28].mxu0  ;;  %v2081_v50 = vpop.f32.mrb[32].mxu1 }
 0xa77   :  { %v2039_v53 = vadd.f32 %v2038_v49, %v1624_v11  ;;  %v2082_v15 = vadd.f32 %v2081_v50, %v1632_v18  ;;  %v2040_v54 = vpop.f32.mrb[29].mxu0  ;;  %v2083_v55 = vpop.f32.mrb[33].mxu1  ;;  %8063 = vmatprep.subr.bf16.mxu0 %v8698_v38  ;;  %8085 = vmatprep.subr.bf16.mxu1 %v8699_v40  ;;  %v8708_v38 = vld [vmem:[%s10721_s4 + $0x120] sm:$0xff]  }
 0xa78   :  { %v2041_v60 = vadd.f32 %v2040_v54, %v1628_v24  ;;  %v2084_v61 = vadd.f32 %v2083_v55, %v1636_v33  ;;  %v2042_v62 = vpop.f32.mrb[30].mxu0  ;;  %v2085_v63 = vpop.f32.mrb[34].mxu1  ;;  %3366 = vmatprep.mubr.bf16.mxu0 %v2213_v47  ;;  %3407 = vmatprep.mubr.bf16.mxu1 %v2215_v48  ;;  %v8709_v40 = vld [vmem:[%s10721_s4 + $0x1a0] sm:$0xff]   ;;  %v8710_v47 = vld [vmem:[%s10721_s4 + $0x168] sm:$0xff]  }
 0xa79   :  { %v2043_v2 = vadd.f32 %v2042_v62, %v1624_v11  ;;  %v2086_v5 = vadd.f32 %v2085_v63, %v1632_v18  ;;  %v2044_v6 = vpop.f32.mrb[31].mxu0  ;;  %v2087_v10 = vpop.f32.mrb[35].mxu1  ;;  %v8705_v11 = vld [vmem:[%s10721_s4 + $0x198] sm:$0xff]   ;;  %v2184_v18 = vmax.f32 %v2039_v53, 0.0  ;;  %v2186_v19 = vmax.f32 %v2082_v15, 0.0  ;;  %v8711_v48 = vld [vmem:[%s10721_s4 + $0x1e8] sm:$0xff]  }
 0xa7a   :  { %v2045_v13 = vadd.f32 %v2044_v6, %v1628_v24  ;;  %v2088_v14 = vadd.f32 %v2087_v10, %v1636_v33  ;;  %8064 = vmatpush3.bf16.msra.mxu0 %v8700_v51  ;;  %8086 = vmatpush3.bf16.msra.mxu1 %v8701_v52  ;;  %v8707_v24 = vld [vmem:[%s10721_s4 + $0x1e0] sm:$0xff]   ;;  %v2185_v28 = vmax.f32 %v2041_v60, 0.0  ;;  %v2187_v29 = vmax.f32 %v2084_v61, 0.0  ;;  %v8712_v60 = vld [vmem:[%s10721_s4 + $0x128] sm:$0xff]   ;;  %v8715_v6 = vld [vmem:[%s10721_s4 + $0x1f0] sm:$0xff]  }
 0xa7b   :  { %v2200_v20 = vmax.f32 %v2043_v2, 0.0  ;;  %v2202_v21 = vmax.f32 %v2086_v5, 0.0  ;;  %8065 = vmatprep.subr.bf16.mxu0 %v8702_v56  ;;  %8087 = vmatprep.subr.bf16.mxu1 %v8703_v59  ;;  %v8713_v61 = vld [vmem:[%s10721_s4 + $0x1a8] sm:$0xff]  }
 0xa7c   :  { %v2201_v30 = vmax.f32 %v2045_v13, 0.0  ;;  %v2203_v31 = vmax.f32 %v2088_v14, 0.0 }
 0xa7d   :  { %v9612_v33 = vpack.c.bf16 %v2200_v20, %v2184_v18  ;;  %v9614_v43 = vpack.c.bf16 %v2202_v21, %v2186_v19  ;;  %v8716_v18 = vld [vmem:[%s10721_s4 + $0x130] sm:$0xff]   ;;  %v8718_v20 = vld [vmem:[%s10721_s4 + $0x178] sm:$0xff]  }
 0xa7e   :  { %v9616_v34 = vpack.c.bf16 %v2201_v30, %v2185_v28  ;;  %v9618_v35 = vpack.c.bf16 %v2203_v31, %v2187_v29  ;;  %8066 = vmatpush3.bf16.msra.mxu0 %v8704_v16  ;;  %8088 = vmatpush3.bf16.msra.mxu1 %v8705_v11  ;;  %v2124_v36 = vpop.f32.mrb[32].mxu0  ;;  %v2167_v37 = vpop.f32.mrb[36].mxu1  ;;  %v8717_v19 = vld [vmem:[%s10721_s4 + $0x1b0] sm:$0xff]   ;;  %v8719_v21 = vld [vmem:[%s10721_s4 + $0x1f8] sm:$0xff]   ;;  %v8722_v28 = vld [vmem:[%s10721_s4 + $0x240] sm:$0xff]  }
 0xa7f   :  { %v2125_v41 = vadd.f32 %v2124_v36, %v1640_v1  ;;  %v2168_v9 = vadd.f32 %v2167_v37, %v1648_v3  ;;  %v2126_v44 = vpop.f32.mrb[33].mxu0  ;;  %v2169_v45 = vpop.f32.mrb[37].mxu1  ;;  %8067 = vmatprep.subr.bf16.mxu0 %v8706_v23  ;;  %8089 = vmatprep.subr.bf16.mxu1 %v8707_v24  ;;  %v8720_v23 = vld [vmem:[%s10721_s4 + $0x138] sm:$0xff]   ;;  %v8723_v29 = vld [vmem:[%s10721_s4 + $0x2c0] sm:$0xff]   ;;  %v8726_v36 = vld [vmem:[%s10721_s4 + $0x248] sm:$0xff]  }
 0xa80   :  { %v2127_v49 = vadd.f32 %v2126_v44, %v1644_v4  ;;  %v2170_v50 = vadd.f32 %v2169_v45, %v1652_v17  ;;  %v2128_v51 = vpop.f32.mrb[34].mxu0  ;;  %v2171_v52 = vpop.f32.mrb[38].mxu1  ;;  %v8721_v24 = vld [vmem:[%s10721_s4 + $0x1b8] sm:$0xff]   ;;  %v8724_v30 = vld [vmem:[%s10721_s4 + $0x200] sm:$0xff]   ;;  %v8727_v37 = vld [vmem:[%s10721_s4 + $0x2c8] sm:$0xff]  }
 0xa81   :  { %v2129_v53 = vadd.f32 %v2128_v51, %v1640_v1  ;;  %v2172_v15 = vadd.f32 %v2171_v52, %v1648_v3  ;;  %v2130_v54 = vpop.f32.mrb[35].mxu0  ;;  %v2173_v55 = vpop.f32.mrb[39].mxu1  ;;  %v2188_v62 = vmax.f32 %v2125_v41, 0.0  ;;  %v2190_v63 = vmax.f32 %v2168_v9, 0.0  ;;  %v8714_v1 = vld [vmem:[%s10721_s4 + $0x170] sm:$0xff]   ;;  %v8725_v31 = vld [vmem:[%s10721_s4 + $0x280] sm:$0xff]  }
 0xa82   :  { %v2131_v56 = vadd.f32 %v2130_v54, %v1644_v4  ;;  %v2174_v59 = vadd.f32 %v2173_v55, %v1652_v17  ;;  %8068 = vmatpush3.bf16.msra.mxu0 %v8708_v38  ;;  %8090 = vmatpush3.bf16.msra.mxu1 %v8709_v40  ;;  %v2189_v10 = vmax.f32 %v2127_v49, 0.0  ;;  %v2191_v3 = vmax.f32 %v2170_v50, 0.0  ;;  %v8728_v38 = vld [vmem:[%s10721_s4 + $0x208] sm:$0xff]   ;;  %v8734_v41 = vld [vmem:[%s10721_s4 + $0x258] sm:$0xff]   ;;  %v8740_v49 = vld [vmem:[%s10721_s4 + $0x220] sm:$0xff]  }
 0xa83   :  { %v2204_v2 = vmax.f32 %v2129_v53, 0.0  ;;  %v2206_v5 = vmax.f32 %v2172_v15, 0.0  ;;  %8069 = vmatprep.subr.bf16.mxu0 %v8710_v47  ;;  %8091 = vmatprep.subr.bf16.mxu1 %v8711_v48  ;;  %v8729_v40 = vld [vmem:[%s10721_s4 + $0x288] sm:$0xff]   ;;  %v8735_v9 = vld [vmem:[%s10721_s4 + $0x2d8] sm:$0xff]   ;;  %v8738_v47 = vld [vmem:[%s10721_s4 + $0x260] sm:$0xff]  }
 0xa84   :  { %v2205_v4 = vmax.f32 %v2131_v56, 0.0  ;;  %v2207_v13 = vmax.f32 %v2174_v59, 0.0  ;;  %v8736_v44 = vld [vmem:[%s10721_s4 + $0x218] sm:$0xff]   ;;  %v8739_v48 = vld [vmem:[%s10721_s4 + $0x2e0] sm:$0xff]   ;;  %v8742_v51 = vld [vmem:[%s10721_s4 + $0x268] sm:$0xff]  }
 0xa85   :  { %v9644_v14 = vpack.c.bf16 %v2204_v2, %v2188_v62  ;;  %v9646_v16 = vpack.c.bf16 %v2206_v5, %v2190_v63  ;;  %v8737_v45 = vld [vmem:[%s10721_s4 + $0x298] sm:$0xff]   ;;  %v8741_v50 = vld [vmem:[%s10721_s4 + $0x2a0] sm:$0xff]   ;;  %v8743_v52 = vld [vmem:[%s10721_s4 + $0x2e8] sm:$0xff]  }
 0xa86   :  { %v9648_v11 = vpack.c.bf16 %v2205_v4, %v2189_v10  ;;  %v9650_v17 = vpack.c.bf16 %v2207_v13, %v2191_v3  ;;  %8070 = vmatpush3.bf16.msra.mxu0 %v8712_v60  ;;  %8092 = vmatpush3.bf16.msra.mxu1 %v8713_v61  ;;  %v8744_v53 = vld [vmem:[%s10721_s4 + $0x228] sm:$0xff]   ;;  %v8746_v54 = vld [vmem:[%s10721_s4 + $0x270] sm:$0xff]   ;;  %v8750_v60 = vld [vmem:[%s10721_s4 + $0x278] sm:$0xff]  }
 0xa87   :  { %8071 = vmatprep.subr.bf16.mxu0 %v8714_v1  ;;  %8093 = vmatprep.subr.bf16.mxu1 %v8715_v6  ;;  %v8745_v15 = vld [vmem:[%s10721_s4 + $0x2a8] sm:$0xff]   ;;  %v8747_v55 = vld [vmem:[%s10721_s4 + $0x2f0] sm:$0xff]   ;;  %v8751_v61 = vld [vmem:[%s10721_s4 + $0x2f8] sm:$0xff]  }
 0xa88   :  { %v8748_v56 = vld [vmem:[%s10721_s4 + $0x230] sm:$0xff]   ;;  %v8752_v62 = vld [vmem:[%s10721_s4 + $0x238] sm:$0xff]   ;;  %v8754_v2 = vld [vmem:[%s10721_s4 + $0x340] sm:$0xff]  }
 0xa89   :  { %v8749_v59 = vld [vmem:[%s10721_s4 + $0x2b0] sm:$0xff]   ;;  %v8753_v63 = vld [vmem:[%s10721_s4 + $0x2b8] sm:$0xff]   ;;  %v8755_v5 = vld [vmem:[%s10721_s4 + $0x3c0] sm:$0xff]  }
 0xa8a   :  { %8072 = vmatpush3.bf16.msra.mxu0 %v8716_v18  ;;  %8094 = vmatpush3.bf16.msra.mxu1 %v8717_v19  ;;  %v8756_v1 = vld [vmem:[%s10721_s4 + $0x300] sm:$0xff]   ;;  %v8758_v10 = vld [vmem:[%s10721_s4 + $0x348] sm:$0xff]   ;;  %v8765_v18 = vld [vmem:[%s10721_s4 + $0x390] sm:$0xff]  }
 0xa8b   :  { %8073 = vmatprep.subr.bf16.mxu0 %v8718_v20  ;;  %8095 = vmatprep.subr.bf16.mxu1 %v8719_v21  ;;  %v8757_v6 = vld [vmem:[%s10721_s4 + $0x380] sm:$0xff]   ;;  %v8759_v3 = vld [vmem:[%s10721_s4 + $0x3c8] sm:$0xff]   ;;  %v8767_v19 = vld [vmem:[%s10721_s4 + $0x3d8] sm:$0xff]  }
 0xa8c   :  { %v8760_v4 = vld [vmem:[%s10721_s4 + $0x308] sm:$0xff]   ;;  %v8768_v20 = vld [vmem:[%s10721_s4 + $0x318] sm:$0xff]  }
 0xa8d   :  { %v8761_v13 = vld [vmem:[%s10721_s4 + $0x388] sm:$0xff]   ;;  %v8769_v21 = vld [vmem:[%s10721_s4 + $0x398] sm:$0xff]  }
 0xa8e   :  { %8074 = vmatpush3.bf16.msra.mxu0 %v8720_v23  ;;  %8096 = vmatpush3.bf16.msra.mxu1 %v8721_v24  ;;  %v8770_v23 = vld [vmem:[%s10721_s4 + $0x360] sm:$0xff]  }
 0xa8f   :  { %8103 = vmatprep.subr.bf16.mxu0 %v8722_v28  ;;  %8125 = vmatprep.subr.bf16.mxu1 %v8723_v29  ;;  %v8771_v24 = vld [vmem:[%s10721_s4 + $0x3e0] sm:$0xff]  }
 0xa90   :  { %v8772_v28 = vld [vmem:[%s10721_s4 + $0x320] sm:$0xff]  }
 0xa91   :  { %3367 = vmatmul.mubr.bf16.vlgmr.msra.gmra.mrb[40].mxu0 %v9576_v46  ;;  %3408 = vmatmul.mubr.bf16.vlgmr.msra.gmra.mrb[44].mxu1 %v9578_v7  ;;  %v8730_v46 = vld [vmem:[%s10721_s4 + $0x250] sm:$0xff]   ;;  %v8773_v29 = vld [vmem:[%s10721_s4 + $0x3a0] sm:$0xff]  }
 0xa92   :  { %8104 = vmatpush3.bf16.msra.mxu0 %v8724_v30  ;;  %3448 = vmatprep.mubr.bf16.mxu0 %v9616_v34  ;;  %v8731_v7 = vld [vmem:[%s10721_s4 + $0x2d0] sm:$0xff]   ;;  %v8774_v30 = vld [vmem:[%s10721_s4 + $0x368] sm:$0xff]  }
 0xa93   :  { %8126 = vmatpush3.bf16.msra.mxu1 %v8725_v31  ;;  %3489 = vmatprep.mubr.bf16.mxu1 %v9618_v35  ;;  %v8732_v34 = vld [vmem:[%s10721_s4 + $0x210] sm:$0xff]   ;;  %v8775_v31 = vld [vmem:[%s10721_s4 + $0x3e8] sm:$0xff]  }
 0xa94   :  { %8105 = vmatprep.subr.bf16.mxu0 %v8726_v36  ;;  %8127 = vmatprep.subr.bf16.mxu1 %v8727_v37  ;;  %v8733_v35 = vld [vmem:[%s10721_s4 + $0x290] sm:$0xff]   ;;  %v8776_v36 = vld [vmem:[%s10721_s4 + $0x328] sm:$0xff]  }
 0xa95   :  { %v8777_v37 = vld [vmem:[%s10721_s4 + $0x3a8] sm:$0xff]  }
 0xa96   :  { %8106 = vmatpush3.bf16.msra.mxu0 %v8728_v38  ;;  %v8778_v38 = vld [vmem:[%s10721_s4 + $0x370] sm:$0xff]  }
 0xa97   :  { %8128 = vmatpush3.bf16.msra.mxu1 %v8729_v40  ;;  %8107 = vmatprep.subr.bf16.mxu0 %v8730_v46  ;;  %v8779_v40 = vld [vmem:[%s10721_s4 + $0x3f0] sm:$0xff]  }
 0xa98   :  { %8129 = vmatprep.subr.bf16.mxu1 %v8731_v7  ;;  %v8780_v46 = vld [vmem:[%s10721_s4 + $0x330] sm:$0xff]  }
 0xa99   :  { %v8781_v7 = vld [vmem:[%s10721_s4 + $0x3b0] sm:$0xff]  }
 0xa9a   :  { %8108 = vmatpush3.bf16.msra.mxu0 %v8732_v34  ;;  %v8782_v34 = vld [vmem:[%s10721_s4 + $0x378] sm:$0xff]  }
 0xa9b   :  { %8130 = vmatpush3.bf16.msra.mxu1 %v8733_v35  ;;  %8109 = vmatprep.subr.bf16.mxu0 %v8734_v41  ;;  %v8783_v35 = vld [vmem:[%s10721_s4 + $0x3f8] sm:$0xff]  }
 0xa9c   :  { %8131 = vmatprep.subr.bf16.mxu1 %v8735_v9  ;;  %v8784_v41 = vld [vmem:[%s10721_s4 + $0x338] sm:$0xff]  }
 0xa9d   :  { %v8785_v9 = vld [vmem:[%s10721_s4 + $0x3b8] sm:$0xff]  }
 0xa9e   :  { %8110 = vmatpush3.bf16.msra.mxu0 %v8736_v44 }
 0xa9f   :  { %8132 = vmatpush3.bf16.msra.mxu1 %v8737_v45  ;;  %8111 = vmatprep.subr.bf16.mxu0 %v8738_v47  ;;  %v9881_v47 = vld [vmem:[%s10719_s5] sm:$0xff] }
 0xaa0   :  { %8133 = vmatprep.subr.bf16.mxu1 %v8739_v48  ;;  %v2483_v48 = vrot.slane %v9881_v47, %v9524_v22 }
 0xaa2   :  { %8112 = vmatpush3.bf16.msra.mxu0 %v8740_v49 }
 0xaa3   :  { %8134 = vmatpush3.bf16.msra.mxu1 %v8741_v50  ;;  %8113 = vmatprep.subr.bf16.mxu0 %v8742_v51 }
 0xaa4   :  { %8135 = vmatprep.subr.bf16.mxu1 %v8743_v52 }
 0xaa6   :  { %8114 = vmatpush3.bf16.msra.mxu0 %v8744_v53 }
 0xaa7   :  { %8136 = vmatpush3.bf16.msra.mxu1 %v8745_v15  ;;  %8115 = vmatprep.subr.bf16.mxu0 %v8746_v54 }
 0xaa8   :  { %8137 = vmatprep.subr.bf16.mxu1 %v8747_v55 }
 0xaaa   :  { %8116 = vmatpush3.bf16.msra.mxu0 %v8748_v56 }
 0xaab   :  { %8138 = vmatpush3.bf16.msra.mxu1 %v8749_v59  ;;  %8117 = vmatprep.subr.bf16.mxu0 %v8750_v60 }
 0xaac   :  { %8139 = vmatprep.subr.bf16.mxu1 %v8751_v61 }
 0xaae   :  { %8118 = vmatpush3.bf16.msra.mxu0 %v8752_v62 }
 0xaaf   :  { %8140 = vmatpush3.bf16.msra.mxu1 %v8753_v63  ;;  %8147 = vmatprep.subr.bf16.mxu0 %v8754_v2 }
 0xab0   :  { %8169 = vmatprep.subr.bf16.mxu1 %v8755_v5 }
 0xab1   :  { %3449 = vmatmul.mubr.bf16.vlgmr.msra.gmra.mrb[44].mxu0 %v9612_v33  ;;  %v8762_v33 = vld [vmem:[%s10721_s4 + $0x350] sm:$0xff]  }
 0xab2   :  { %3490 = vmatmul.mubr.bf16.vlgmr.msra.gmra.mrb[48].mxu1 %v9614_v43  ;;  %8148 = vmatpush3.bf16.msra.mxu0 %v8756_v1  ;;  %v8763_v43 = vld [vmem:[%s10721_s4 + $0x3d0] sm:$0xff]  }
 0xab3   :  { %3530 = vmatprep.mubr.bf16.mxu0 %v9648_v11  ;;  %8170 = vmatpush3.bf16.msra.mxu1 %v8757_v6  ;;  %v8764_v11 = vld [vmem:[%s10721_s4 + $0x310] sm:$0xff]  }
 0xab4   :  { %3571 = vmatprep.mubr.bf16.mxu1 %v9650_v17  ;;  %8149 = vmatprep.subr.bf16.mxu0 %v8758_v10  ;;  %v8766_v17 = vld [vmem:[%s10721_s4 + $0x358] sm:$0xff]  }
 0xab5   :  { %8171 = vmatprep.subr.bf16.mxu1 %v8759_v3 }
 0xab6   :  { %8150 = vmatpush3.bf16.msra.mxu0 %v8760_v4 }
 0xab7   :  { %8172 = vmatpush3.bf16.msra.mxu1 %v8761_v13  ;;  %8151 = vmatprep.subr.bf16.mxu0 %v8762_v33 }
 0xab8   :  { %8173 = vmatprep.subr.bf16.mxu1 %v8763_v43 }
 0xaba   :  { %8152 = vmatpush3.bf16.msra.mxu0 %v8764_v11 }
 0xabb   :  { %8174 = vmatpush3.bf16.msra.mxu1 %v8765_v18  ;;  %8153 = vmatprep.subr.bf16.mxu0 %v8766_v17 }
 0xabc   :  { %8175 = vmatprep.subr.bf16.mxu1 %v8767_v19 }
 0xabe   :  { %8154 = vmatpush3.bf16.msra.mxu0 %v8768_v20 }
 0xabf   :  { %8176 = vmatpush3.bf16.msra.mxu1 %v8769_v21  ;;  %8155 = vmatprep.subr.bf16.mxu0 %v8770_v23 }
 0xac0   :  { %8177 = vmatprep.subr.bf16.mxu1 %v8771_v24 }
 0xac2   :  { %8156 = vmatpush3.bf16.msra.mxu0 %v8772_v28 }
 0xac3   :  { %8178 = vmatpush3.bf16.msra.mxu1 %v8773_v29  ;;  %8157 = vmatprep.subr.bf16.mxu0 %v8774_v30 }
 0xac4   :  { %8179 = vmatprep.subr.bf16.mxu1 %v8775_v31 }
 0xac6   :  { %8158 = vmatpush3.bf16.msra.mxu0 %v8776_v36 }
 0xac7   :  { %8180 = vmatpush3.bf16.msra.mxu1 %v8777_v37  ;;  %8159 = vmatprep.subr.bf16.mxu0 %v8778_v38 }
 0xac8   :  { %8181 = vmatprep.subr.bf16.mxu1 %v8779_v40 }
 0xaca   :  { %8160 = vmatpush3.bf16.msra.mxu0 %v8780_v46 }
 0xacb   :  { %8182 = vmatpush3.bf16.msra.mxu1 %v8781_v7  ;;  %8161 = vmatprep.subr.bf16.mxu0 %v8782_v34 }
 0xacc   :  { %8183 = vmatprep.subr.bf16.mxu1 %v8783_v35 }
 0xace   :  { %8162 = vmatpush3.bf16.msra.mxu0 %v8784_v41 }
 0xacf   :  { %8184 = vmatpush3.bf16.msra.mxu1 %v8785_v9  ;;  %8504 = vmatprep.subr.bf16.mxu0 %v9001_v0 }
 0xad0   :  { %8512 = vmatprep.subr.mxu1 %v9001_v0 }
 0xad1   :  { %3531 = vmatmul.mubr.bf16.vlgmr.msra.gmra.mrb[48].mxu0 %v9644_v14 }
 0xad2   :  { %3572 = vmatmul.mubr.bf16.vlgmr.msra.gmra.mrb[52].mxu1 %v9646_v16  ;;  %8508 = vmatprep.mubr.msk.bf16.mxu0 %vm9002_vm0, %v9001_v0 }
 0xad3   :  { %8514 = vmatprep.mubr.msk.f32.mxu1 %vm9002_vm0, %v9001_v0 }
 0xb44   :  { %v8031_v44 = vpop.f32.mrb[36].mxu0  ;;  %v8053_v45 = vpop.f32.mrb[40].mxu1 }
 0xb45   :  { %v8032_v49 = vpop.f32.mrb[37].mxu0  ;;  %v8054_v14 = vpop.f32.mrb[41].mxu1 }
 0xb46   :  { %v8033_v50 = vadd.f32 %v8032_v49, %v8031_v44  ;;  %v8055_v16 = vadd.f32 %v8054_v14, %v8053_v45  ;;  %v8034_v51 = vpop.f32.mrb[38].mxu0  ;;  %v8056_v52 = vpop.f32.mrb[42].mxu1 }
 0xb47   :  { %v8035_v53 = vpop.f32.mrb[39].mxu0  ;;  %v8057_v15 = vpop.f32.mrb[43].mxu1 }
 0xb48   :  { %v3287_v54 = vadd.f32 %v8033_v50, %v2483_v48  ;;  %v8036_v55 = vadd.f32 %v8035_v53, %v8034_v51  ;;  %v8058_v56 = vadd.f32 %v8057_v15, %v8056_v52 }
 0xb4a   :  { %v3328_v59 = vadd.f32 %v8055_v16, %v3287_v54  ;;  %v3290_v60 = vadd.f32 %v8036_v55, %v2483_v48 }
 0xb4c   :  { %v3331_v61 = vadd.f32 %v8058_v56, %v3290_v60 }
 0xb64   :  { %v8075_v62 = vpop.f32.mrb[40].mxu0  ;;  %v8097_v63 = vpop.f32.mrb[44].mxu1 }
 0xb65   :  { %v8076_v2 = vpop.f32.mrb[41].mxu0  ;;  %v8098_v5 = vpop.f32.mrb[45].mxu1 }
 0xb66   :  { %v8077_v1 = vadd.f32 %v8076_v2, %v8075_v62  ;;  %v8099_v6 = vadd.f32 %v8098_v5, %v8097_v63  ;;  %v8078_v10 = vpop.f32.mrb[42].mxu0  ;;  %v8100_v3 = vpop.f32.mrb[46].mxu1 }
 0xb67   :  { %v8079_v4 = vpop.f32.mrb[43].mxu0  ;;  %v8101_v13 = vpop.f32.mrb[47].mxu1 }
 0xb68   :  { %v3369_v33 = vadd.f32 %v8077_v1, %v3328_v59  ;;  %v8080_v43 = vadd.f32 %v8079_v4, %v8078_v10  ;;  %v8102_v11 = vadd.f32 %v8101_v13, %v8100_v3 }
 0xb6a   :  { %v3410_v18 = vadd.f32 %v8099_v6, %v3369_v33  ;;  %v3372_v17 = vadd.f32 %v8080_v43, %v3331_v61  ;;  %v9900_v33 = vld [vmem:[%s10717_s1 + $0x18] sm:$0xff]  }
 0xb6c   :  { %v3413_v19 = vadd.f32 %v8102_v11, %v3372_v17 }
 0xb84   :  { %v8119_v20 = vpop.f32.mrb[44].mxu0 }
 0xb85   :  { %v8141_v21 = vpop.f32.mrb[48].mxu1  ;;  %v8120_v23 = vpop.f32.mrb[45].mxu0 }
 0xb86   :  { %v8121_v24 = vadd.f32 %v8120_v23, %v8119_v20  ;;  %v8142_v28 = vpop.f32.mrb[49].mxu1  ;;  %v8122_v29 = vpop.f32.mrb[46].mxu0 }
 0xb87   :  { %v8143_v30 = vadd.f32 %v8142_v28, %v8141_v21  ;;  %v8144_v31 = vpop.f32.mrb[50].mxu1  ;;  %v8123_v36 = vpop.f32.mrb[47].mxu0  ;;  %v3611_v21 = vrot.slane %v9881_v47, %v9530_v25 }
 0xb88   :  { %v3451_v37 = vadd.f32 %v8121_v24, %v3410_v18  ;;  %v8124_v38 = vadd.f32 %v8123_v36, %v8122_v29  ;;  %v8145_v40 = vpop.f32.mrb[51].mxu1 }
 0xb89   :  { %v8146_v46 = vadd.f32 %v8145_v40, %v8144_v31  ;;  %v3617_v31 = vrot.slane %v9881_v47, %v9527_v12 }
 0xb8a   :  { %v3492_v7 = vadd.f32 %v8143_v30, %v3451_v37  ;;  %v3454_v34 = vadd.f32 %v8124_v38, %v3413_v19 }
 0xb8c   :  { %v3495_v35 = vadd.f32 %v8146_v46, %v3454_v34  ;;  %v3685_v46 = vrot.slane %v9881_v47, %v9533_v27 }
 0xba4   :  { %v8163_v41 = vpop.f32.mrb[48].mxu0 }
 0xba5   :  { %v8185_v9 = vpop.f32.mrb[52].mxu1  ;;  %v8164_v44 = vpop.f32.mrb[49].mxu0 }
 0xba6   :  { %v8165_v45 = vadd.f32 %v8164_v44, %v8163_v41  ;;  %v8186_v48 = vpop.f32.mrb[53].mxu1  ;;  %v8166_v49 = vpop.f32.mrb[50].mxu0 }
 0xba7   :  { %v8187_v14 = vadd.f32 %v8186_v48, %v8185_v9  ;;  %v8188_v50 = vpop.f32.mrb[54].mxu1  ;;  %v8167_v16 = vpop.f32.mrb[51].mxu0 }
 0xba8   :  { %v3533_v51 = vadd.f32 %v8165_v45, %v3492_v7  ;;  %v8168_v52 = vadd.f32 %v8167_v16, %v8166_v49  ;;  %v8189_v53 = vpop.f32.mrb[55].mxu1 }
 0xba9   :  { %v8190_v15 = vadd.f32 %v8189_v53, %v8188_v50 }
 0xbaa   :  { %v3574_v54 = vadd.f32 %v8187_v14, %v3533_v51  ;;  %v3536_v55 = vadd.f32 %v8168_v52, %v3495_v35 }
 0xbac   :  { %v3577_v56 = vadd.f32 %v8190_v15, %v3536_v55  ;;  %v3580_v59 = vadd.f32 %v3574_v54, %v9336_v57 }
 0xbae   :  { %v3582_v60 = vsel %vm45_vm1, %v3580_v59, 0.0  ;;  %v3581_v61 = vadd.f32 %v3577_v56, %v9338_v58  ;;  %v9894_v58 = vld [vmem:[%s10717_s1 + $0x10] sm:$0xff]  }
 0xbaf   :  { %3583 = vadd.xlane.f32.xlu1 %v3582_v60  ;;  %8505 = vmatpush3.bf16.msra.mxu0 %v9894_v58 }
 0xbb0   :  { %v3585_v62 = vsel %vm45_vm1, %v3581_v61, 0.0  ;;  %8506 = vmatprep.subr.bf16.mxu0 %v9001_v0 }
 0xbb1   :  { %3586 = vadd.xlane.f32.xlu0 %v3585_v62 }
 0xbb3   :  { %8507 = vmatpush3.bf16.msra.mxu0 %v9900_v33 }
 0xbb4   :  { %8517 = vmatprep.subr.mxu0 %v9001_v0 }
 0xc3c   :  { %v3584_v63 = vpop.xlane.xlu1 %3583 }
 0xc3d   :  { %v3588_v2 = vmul.f32 0.03125, %v3584_v63 }
 0xc3e   :  { %v3587_v5 = vpop.xlane.xlu0 %3586 }
 0xc3f   :  { %v3590_v1 = vsub.f32 %v3580_v59, %v3588_v2  ;;  %v3589_v6 = vmul.f32 0.03125, %v3587_v5 }
 0xc41   :  { %v3591_v10 = vsub.f32 %v3581_v61, %v3589_v6  ;;  %v3592_v3 = vmul.f32 %v3590_v1, %v3590_v1 }
 0xc43   :  { %v3594_v4 = vsel %vm45_vm1, %v3592_v3, 0.0  ;;  %v3593_v13 = vmul.f32 %v3591_v10, %v3591_v10 }
 0xc44   :  { %3595 = vadd.xlane.f32.xlu1 %v3594_v4 }
 0xc45   :  { %v3597_v57 = vsel %vm45_vm1, %v3593_v13, 0.0 }
 0xc46   :  { %3598 = vadd.xlane.f32.xlu0 %v3597_v57 }
 0xcd1   :  { %v3596_v43 = vpop.xlane.xlu1 %3595 }
 0xcd2   :  { %v3600_v11 = vmul.f32 0.03125, %v3596_v43 }
 0xcd3   :  { %v3599_v18 = vpop.xlane.xlu0 %3598 }
 0xcd4   :  { %v3602_v17 = vadd.f32 1e-05, %v3600_v11  ;;  %v3601_v19 = vmul.f32 0.03125, %v3599_v18 }
 0xcd6   :  { %8954 = vrsqrt.f32 %v3602_v17  ;;  %v3603_v20 = vadd.f32 1e-05, %v3601_v19 }
 0xcd8   :  { %8956 = vrsqrt.f32 %v3603_v20 }
 0xce0   :  { %v8955_v23 = vpop.eup %8954 }
 0xce1   :  { %v3606_v24 = vmul.f32 %v8955_v23, %v3590_v1 }
 0xce2   :  { %v8957_v28 = vpop.eup %8956 }
 0xce3   :  { %v3612_v29 = vmul.f32 %v3611_v21, %v3606_v24  ;;  %v3607_v30 = vmul.f32 %v8957_v28, %v3591_v10 }
 0xce5   :  { %v3613_v36 = vmul.f32 %v3611_v21, %v3607_v30  ;;  %v9909_v37 = vadd.f32 %v3617_v31, %v3612_v29 }
 0xce7   :  { %v9911_v38 = vadd.f32 %v3617_v31, %v3613_v36 }
 0xce9   :  { %v3625_v40 = vpack.c.bf16 %v9911_v38, %v9909_v37 }
 0xceb   :  { %8509 = vmatmul.mubr.msk.bf16.vlgmr.msra.gmra.mrb[52].mxu0 %vm45_vm1, %v3625_v40 }
 0xcec   :  { %8519 = vmatprep.mubr.msk.f32.mxu0 %vm9002_vm0, %v9001_v0 }
 0xdbe   :  { %v3675_v7 = vpop.f32.mrb[52].mxu0 }
 0xdbf   :  { %v9920_v34 = vadd.f32 %v3685_v46, %v3675_v7  ;;  %v8510_v35 = vpop.f32.mrb[53].mxu0 }
 0xdc0   :  { %v3678_v41 = vpop.f32.mrb[54].mxu0 }
 0xdc1   :  { %3854 = vrot.lane.b32.xlu0 %v9920_v34, %s9005_s8  ;;  %3689 = vrot.lane.b32.xlu1 %v9920_v34, %s9004_s7  ;;  %v8511_v9 = vpop.f32.mrb[55].mxu0  ;;  %v9934_v47 = vadd.f32 %v3685_v46, %v3678_v41 }
 0xdc5   :  { %4017 = vrot.lane.b32.xlu0 %v9920_v34, %s9008_s11  ;;  %3852 = vrot.lane.b32.xlu1 %v9920_v34, %s9006_s9 }
 0xdc9   :  { %4182 = vrot.lane.b32.xlu0 %v9920_v34, %s9009_s12  ;;  %4019 = vrot.lane.b32.xlu1 %v9920_v34, %s9007_s10 }
 0xdcd   :  { %4184 = vrot.lane.b32.xlu1 %v9920_v34, %s9010_s13  ;;  %4528 = vrot.lane.b32.xlu0 %v9934_v47, %s9005_s8 }
 0xdd1   :  { %4693 = vrot.lane.b32.xlu0 %v9934_v47, %s9007_s10  ;;  %4363 = vrot.lane.b32.xlu1 %v9934_v47, %s9004_s7 }
 0xdd5   :  { %4858 = vrot.lane.b32.xlu0 %v9934_v47, %s9010_s13  ;;  %4526 = vrot.lane.b32.xlu1 %v9934_v47, %s9006_s9 }
 0xdd9   :  { %3776 = vrot.lane.b32.xlu0 %v9920_v34, %s9003_s30  ;;  %4691 = vrot.lane.b32.xlu1 %v9934_v47, %s9008_s11 }
 0xddd   :  { %4856 = vrot.lane.b32.xlu1 %v9934_v47, %s9009_s12 }
 0xde1   :  { %3941 = vrot.lane.b32.xlu1 %v9920_v34, %s9013_s16 }
 0xe33   :  { %v3855_v44 = vpop.permute.xlu0 %3854  ;;  %v3690_v45 = vpop.permute.xlu1 %3689 }
 0xe34   :  { %8513 = vmatpush3.xpose.msk.msra.mxu1 %vm99_vm2, %v3690_v45 }
 0xe35   :  { %8522 = vmatprep.subr.mxu1 %v9001_v0 }
 0xe37   :  { %v4018_v48 = vpop.permute.xlu0 %4017  ;;  %8515 = vmatmul.mubr.msk.f32.vlgmr.msra.gmra.mrb[18].mxu1 %vm99_vm2, %v9920_v34  ;;  %v3853_v49 = vpop.permute.xlu1 %3852 }
 0xe38   :  { %8523 = vmatpush3.xpose.msk.msra.mxu1 %vm99_vm2, %v3855_v44  ;;  %8524 = vmatprep.mubr.msk.f32.mxu1 %vm9002_vm0, %v9001_v0 }
 0xe39   :  { %8532 = vmatprep.subr.mxu1 %v9001_v0 }
 0xe3b   :  { %v4183_v14 = vpop.permute.xlu0 %4182  ;;  %8525 = vmatmul.mubr.msk.f32.vlgmr.msra.gmra.mrb[56].mxu1 %vm99_vm2, %v3853_v49  ;;  %v4020_v50 = vpop.permute.xlu1 %4019 }
 0xe3c   :  { %8533 = vmatpush3.xpose.msk.msra.mxu1 %vm99_vm2, %v4020_v50  ;;  %8534 = vmatprep.mubr.msk.f32.mxu1 %vm9002_vm0, %v9001_v0 }
 0xe3d   :  { %8542 = vmatprep.subr.mxu1 %v9001_v0 }
 0xe3f   :  { %8535 = vmatmul.mubr.msk.f32.vlgmr.msra.gmra.mrb[58].mxu1 %vm99_vm2, %v4018_v48  ;;  %v4185_v16 = vpop.permute.xlu1 %4184  ;;  %v4529_v51 = vpop.permute.xlu0 %4528 }
 0xe40   :  { %8543 = vmatpush3.xpose.msk.msra.mxu1 %vm99_vm2, %v4185_v16  ;;  %8544 = vmatprep.mubr.msk.f32.mxu1 %vm9002_vm0, %v9001_v0 }
 0xe41   :  { %8552 = vmatprep.subr.mxu1 %v9001_v0 }
 0xe43   :  { %8545 = vmatmul.mubr.msk.f32.vlgmr.msra.gmra.mrb[60].mxu1 %vm99_vm2, %v4183_v14  ;;  %v4694_v52 = vpop.permute.xlu0 %4693  ;;  %v4364_v53 = vpop.permute.xlu1 %4363 }
 0xe44   :  { %8553 = vmatpush3.xpose.msk.msra.mxu1 %vm99_vm2, %v4364_v53  ;;  %8554 = vmatprep.mubr.msk.f32.mxu1 %vm9002_vm0, %v9001_v0 }
 0xe45   :  { %8562 = vmatprep.subr.mxu1 %v9001_v0 }
 0xe47   :  { %v4859_v15 = vpop.permute.xlu0 %4858  ;;  %8555 = vmatmul.mubr.msk.f32.vlgmr.msra.gmra.mrb[62].mxu1 %vm99_vm2, %v9934_v47  ;;  %v4527_v54 = vpop.permute.xlu1 %4526 }
 0xe48   :  { %8563 = vmatpush3.xpose.msk.msra.mxu1 %vm99_vm2, %v4529_v51  ;;  %8564 = vmatprep.mubr.msk.f32.mxu1 %vm9002_vm0, %v9001_v0 }
 0xe49   :  { %8572 = vmatprep.subr.mxu1 %v9001_v0 }
 0xe4b   :  { %v3777_v55 = vpop.permute.xlu0 %3776  ;;  %8565 = vmatmul.mubr.msk.f32.vlgmr.msra.gmra.mrb[64].mxu1 %vm99_vm2, %v4527_v54  ;;  %v4692_v56 = vpop.permute.xlu1 %4691 }
 0xe4c   :  { %8518 = vmatpush3.msra.mxu0 %v3777_v55  ;;  %8573 = vmatpush3.xpose.msk.msra.mxu1 %vm99_vm2, %v4694_v52 }
 0xe4d   :  { %8574 = vmatprep.mubr.msk.f32.mxu1 %vm9002_vm0, %v9001_v0  ;;  %8582 = vmatprep.subr.mxu1 %v9001_v0 }
 0xe4e   :  { %8527 = vmatprep.subr.mxu0 %v9001_v0 }
 0xe4f   :  { %8575 = vmatmul.mubr.msk.f32.vlgmr.msra.gmra.mrb[66].mxu1 %vm99_vm2, %v4692_v56  ;;  %v4857_v59 = vpop.permute.xlu1 %4856 }
 0xe50   :  { %8583 = vmatpush3.xpose.msk.msra.mxu1 %vm99_vm2, %v4859_v15  ;;  %8584 = vmatprep.mubr.msk.f32.mxu1 %vm9002_vm0, %v9001_v0 }
 0xe51   :  { %8592 = vmatprep.subr.bf16.mxu1 %v9001_v0 }
 0xe53   :  { %8585 = vmatmul.mubr.msk.f32.vlgmr.msra.gmra.mrb[68].mxu1 %vm99_vm2, %v4857_v59  ;;  %v10014_v28 = vpop.permute.xlu1 %3941 }
 0xe54   :  { %8593 = vmatpush3.bf16.msra.mxu1 %v9894_v58  ;;  %8596 = vmatprep.mubr.msk.bf16.mxu1 %vm9002_vm0, %v9001_v0 }
 0xe55   :  { %8594 = vmatprep.subr.bf16.mxu1 %v9001_v0 }
 0xe58   :  { %8595 = vmatpush3.bf16.msra.mxu1 %v9900_v33 }
 0xf0a   :  { %v3761_v60 = vpop.f32.mrb[18].mxu1 }
 0xf0b   :  { %v8516_v61 = vpop.f32.mrb[19].mxu1  ;;  %v3765_v62 = vsel %vm99_vm2, %v3761_v60, -inf }
 0xf0c   :  { %3766 = vmax.xlane.f32.xlu0 %v3765_v62 }
 0xf0e   :  { %v3926_v63 = vpop.f32.mrb[56].mxu1 }
 0xf0f   :  { %v8526_v2 = vpop.f32.mrb[57].mxu1  ;;  %v3930_v5 = vsel %vm99_vm2, %v3926_v63, -inf }
 0xf10   :  { %3931 = vmax.xlane.f32.xlu1 %v3930_v5 }
 0xf12   :  { %v4091_v1 = vpop.f32.mrb[58].mxu1 }
 0xf13   :  { %v8536_v6 = vpop.f32.mrb[59].mxu1  ;;  %v4095_v10 = vsel %vm99_vm2, %v4091_v1, -inf }
 0xf14   :  { %4096 = vmax.xlane.f32.xlu0 %v4095_v10 }
 0xf16   :  { %v4256_v3 = vpop.f32.mrb[60].mxu1 }
 0xf17   :  { %v8546_v4 = vpop.f32.mrb[61].mxu1  ;;  %v4260_v13 = vsel %vm99_vm2, %v4256_v3, -inf }
 0xf18   :  { %4261 = vmax.xlane.f32.xlu0 %v4260_v13 }
 0xf1a   :  { %v4435_v57 = vpop.f32.mrb[62].mxu1 }
 0xf1b   :  { %v8556_v58 = vpop.f32.mrb[63].mxu1  ;;  %v4439_v33 = vsel %vm99_vm2, %v4435_v57, -inf }
 0xf1c   :  { %4440 = vmax.xlane.f32.xlu1 %v4439_v33 }
 0xf1e   :  { %v4600_v43 = vpop.f32.mrb[64].mxu1 }
 0xf1f   :  { %v8566_v11 = vpop.f32.mrb[65].mxu1  ;;  %v4604_v18 = vsel %vm99_vm2, %v4600_v43, -inf }
 0xf20   :  { %4605 = vmax.xlane.f32.xlu0 %v4604_v18 }
 0xf22   :  { %v4765_v17 = vpop.f32.mrb[66].mxu1 }
 0xf23   :  { %v8576_v19 = vpop.f32.mrb[67].mxu1  ;;  %v4769_v20 = vsel %vm99_vm2, %v4765_v17, -inf }
 0xf24   :  { %4770 = vmax.xlane.f32.xlu1 %v4769_v20 }
 0xf26   :  { %v4930_v21 = vpop.f32.mrb[68].mxu1 }
 0xf27   :  { %v8586_v23 = vpop.f32.mrb[69].mxu1  ;;  %v4934_v24 = vsel %vm99_vm2, %v4930_v21, -inf }
 0xf28   :  { %4935 = vmax.xlane.f32.xlu0 %v4934_v24 }
 0xf35   :  { %4271 = vrot.lane.b32.xlu1 %v9920_v34, %s9012_s15 }
 0xf3e   :  { %4106 = vrot.lane.b32.xlu0 %v9920_v34, %s9011_s14 }
 0xf99   :  { %v3767_v29 = vpop.xlane.xlu0 %3766 }
 0xf9a   :  { %v3768_v30 = vsub.f32 %v3761_v60, %v3767_v29 }
 0xf9c   :  { %v3769_v31 = vmul.f32 1.442695, %v3768_v30 }
 0xf9d   :  { %v3932_v36 = vpop.xlane.xlu1 %3931 }
 0xf9e   :  { %8958 = vpow2.f32 %v3769_v31  ;;  %v3933_v40 = vsub.f32 %v3926_v63, %v3932_v36 }
 0xfa0   :  { %v3934_v46 = vmul.f32 1.442695, %v3933_v40 }
 0xfa1   :  { %v4097_v7 = vpop.xlane.xlu0 %4096 }
 0xfa2   :  { %8960 = vpow2.f32 %v3934_v46  ;;  %v4098_v35 = vsub.f32 %v4091_v1, %v4097_v7 }
 0xfa4   :  { %v4099_v41 = vmul.f32 1.442695, %v4098_v35 }
 0xfa5   :  { %v4262_v9 = vpop.xlane.xlu0 %4261 }
 0xfa6   :  { %8962 = vpow2.f32 %v4099_v41  ;;  %v4263_v44 = vsub.f32 %v4256_v3, %v4262_v9 }
 0xfa8   :  { %v8959_v45 = vpop.eup %8958  ;;  %v4264_v48 = vmul.f32 1.442695, %v4263_v44 }
 0xfa9   :  { %v3771_v34 = vsel %vm99_vm2, %v8959_v45, 0.0  ;;  %v4441_v53 = vpop.xlane.xlu1 %4440 }
 0xfaa   :  { %8964 = vpow2.f32 %v4264_v48  ;;  %3772 = vadd.xlane.f32.xlu1 %v3771_v34  ;;  %v4442_v15 = vsub.f32 %v4435_v57, %v4441_v53 }
 0xfac   :  { %v8961_v49 = vpop.eup %8960  ;;  %v4443_v59 = vmul.f32 1.442695, %v4442_v15 }
 0xfad   :  { %v3936_v14 = vsel %vm99_vm2, %v8961_v49, 0.0  ;;  %v4606_v54 = vpop.xlane.xlu0 %4605 }
 0xfae   :  { %3937 = vadd.xlane.f32.xlu0 %v3936_v14  ;;  %v4607_v56 = vsub.f32 %v4600_v43, %v4606_v54  ;;  %8966 = vpow2.f32 %v4443_v59 }
 0xfb0   :  { %v8963_v50 = vpop.eup %8962  ;;  %v4608_v62 = vmul.f32 1.442695, %v4607_v56 }
 0xfb1   :  { %v4101_v16 = vsel %vm99_vm2, %v8963_v50, 0.0  ;;  %v4771_v55 = vpop.xlane.xlu1 %4770 }
 0xfb2   :  { %4102 = vadd.xlane.f32.xlu1 %v4101_v16  ;;  %v4772_v60 = vsub.f32 %v4765_v17, %v4771_v55  ;;  %8968 = vpow2.f32 %v4608_v62 }
 0xfb4   :  { %v10019_v51 = vpop.eup %8964  ;;  %v4773_v63 = vmul.f32 1.442695, %v4772_v60 }
 0xfb5   :  { %v4266_v52 = vsel %vm99_vm2, %v10019_v51, 0.0  ;;  %v4936_v61 = vpop.xlane.xlu0 %4935  ;;  %v4272_v33 = vpop.permute.xlu1 %4271 }
 0xfb6   :  { %4267 = vadd.xlane.f32.xlu0 %v4266_v52  ;;  %v4937_v2 = vsub.f32 %v4930_v21, %v4936_v61  ;;  %8970 = vpow2.f32 %v4773_v63 }
 0xfb8   :  { %v4938_v5 = vmul.f32 1.442695, %v4937_v2  ;;  %v8967_v1 = vpop.eup %8966 }
 0xfb9   :  { %v4445_v10 = vsel %vm99_vm2, %v8967_v1, 0.0  ;;  %v4107_v43 = vpop.permute.xlu0 %4106 }
 0xfba   :  { %8972 = vpow2.f32 %v4938_v5 }
 0xfbc   :  { %v10027_v6 = vpop.eup %8968 }
 0xfbd   :  { %v4610_v4 = vsel %vm99_vm2, %v10027_v6, 0.0 }
 0xfc0   :  { %v10030_v3 = vpop.eup %8970 }
 0xfc1   :  { %v4775_v13 = vsel %vm99_vm2, %v10030_v3, 0.0 }
 0xfc3   :  { %4615 = vrot.lane.b32.xlu1 %v9934_v47, %s9013_s16 }
 0xfc4   :  { %v10036_v57 = vpop.eup %8972 }
 0xfc5   :  { %v4940_v58 = vsel %vm99_vm2, %v10036_v57, 0.0 }
 0xfcc   :  { %4450 = vrot.lane.b32.xlu0 %v9934_v47, %s9003_s30 }
 0xfe7   :  { %4446 = vadd.xlane.f32.xlu1 %v4445_v10 }
 0xfeb   :  { %4611 = vadd.xlane.f32.xlu0 %v4610_v4  ;;  %4776 = vadd.xlane.f32.xlu1 %v4775_v13 }
 0xfef   :  { %4941 = vadd.xlane.f32.xlu1 %v4940_v58 }
0x1000   :  { %4945 = vrot.lane.b32.xlu1 %v9934_v47, %s9012_s15 }
0x1001   :  { %4780 = vrot.lane.b32.xlu0 %v9934_v47, %s9011_s14 }
0x1037   :  { %v3773_v11 = vpop.xlane.xlu1 %3772 }
0x1038   :  { %8974 = vrcp.f32 %v3773_v11 }
0x103b   :  { %v3938_v18 = vpop.xlane.xlu0 %3937 }
0x103c   :  { %8976 = vrcp.f32 %v3938_v18 }
0x103f   :  { %v4103_v17 = vpop.xlane.xlu1 %4102 }
0x1040   :  { %8978 = vrcp.f32 %v4103_v17 }
0x1042   :  { %v8975_v19 = vpop.eup %8974 }
0x1043   :  { %v3775_v20 = vmul.f32 %v8975_v19, %v8959_v45  ;;  %v4268_v21 = vpop.xlane.xlu0 %4267  ;;  %v4616_v36 = vpop.permute.xlu1 %4615 }
0x1044   :  { %8980 = vrcp.f32 %v4268_v21 }
0x1045   :  { %8520 = vmatmul.mubr.msk.f32.vlgmr.msra.gmra.mrb[18].mxu0 %vm99_vm2, %v3775_v20 }
0x1046   :  { %v8977_v23 = vpop.eup %8976  ;;  %8528 = vmatpush3.msra.mxu0 %v10014_v28  ;;  %8529 = vmatprep.mubr.msk.f32.mxu0 %vm9002_vm0, %v9001_v0 }
0x1047   :  { %v3940_v47 = vmul.f32 %v8977_v23, %v8961_v49  ;;  %8537 = vmatprep.subr.mxu0 %v9001_v0  ;;  %v4451_v31 = vpop.permute.xlu0 %4450 }
0x1049   :  { %8530 = vmatmul.mubr.msk.f32.vlgmr.msra.gmra.mrb[56].mxu0 %vm99_vm2, %v3940_v47 }
0x104a   :  { %v8979_v24 = vpop.eup %8978  ;;  %8538 = vmatpush3.msra.mxu0 %v4107_v43  ;;  %8539 = vmatprep.mubr.msk.f32.mxu0 %vm9002_vm0, %v9001_v0 }
0x104b   :  { %v4105_v29 = vmul.f32 %v8979_v24, %v8963_v50  ;;  %8547 = vmatprep.subr.mxu0 %v9001_v0 }
0x104d   :  { %8540 = vmatmul.mubr.msk.f32.vlgmr.msra.gmra.mrb[58].mxu0 %vm99_vm2, %v4105_v29 }
0x104e   :  { %v8981_v30 = vpop.eup %8980  ;;  %8548 = vmatpush3.msra.mxu0 %v4272_v33  ;;  %8549 = vmatprep.mubr.msk.f32.mxu0 %vm9002_vm0, %v9001_v0 }
0x104f   :  { %v4270_v28 = vmul.f32 %v8981_v30, %v10019_v51  ;;  %8557 = vmatprep.subr.mxu0 %v9001_v0 }
0x1051   :  { %8550 = vmatmul.mubr.msk.f32.vlgmr.msra.gmra.mrb[60].mxu0 %vm99_vm2, %v4270_v28 }
0x1052   :  { %8558 = vmatpush3.msra.mxu0 %v4451_v31  ;;  %8559 = vmatprep.mubr.msk.f32.mxu0 %vm9002_vm0, %v9001_v0 }
0x1053   :  { %8567 = vmatprep.subr.mxu0 %v9001_v0 }
0x1074   :  { %v4447_v40 = vpop.xlane.xlu1 %4446 }
0x1075   :  { %8982 = vrcp.f32 %v4447_v40 }
0x1078   :  { %v4612_v46 = vpop.xlane.xlu0 %4611  ;;  %v4777_v7 = vpop.xlane.xlu1 %4776 }
0x1079   :  { %8984 = vrcp.f32 %v4612_v46 }
0x107a   :  { %8986 = vrcp.f32 %v4777_v7 }
0x107c   :  { %v4942_v35 = vpop.xlane.xlu1 %4941  ;;  %v4781_v34 = vpop.permute.xlu0 %4780 }
0x107d   :  { %8988 = vrcp.f32 %v4942_v35 }
0x107f   :  { %v8983_v41 = vpop.eup %8982 }
0x1080   :  { %v4449_v9 = vmul.f32 %v8983_v41, %v8967_v1  ;;  %v4946_v50 = vpop.permute.xlu1 %4945  ;;  %v10082_v1 = vld [vmem:[%s10719_s5 + $0x8] sm:$0xff] }
0x1082   :  { %8560 = vmatmul.mubr.msk.f32.vlgmr.msra.gmra.mrb[62].mxu0 %vm99_vm2, %v4449_v9 }
0x1083   :  { %v8985_v44 = vpop.eup %8984  ;;  %8568 = vmatpush3.msra.mxu0 %v4616_v36  ;;  %8569 = vmatprep.mubr.msk.f32.mxu0 %vm9002_vm0, %v9001_v0 }
0x1084   :  { %v4614_v45 = vmul.f32 %v8985_v44, %v10027_v6  ;;  %8577 = vmatprep.subr.mxu0 %v9001_v0  ;;  %v8987_v48 = vpop.eup %8986 }
0x1085   :  { %v4779_v49 = vmul.f32 %v8987_v48, %v10030_v3  ;;  %v5084_v3 = vrot.slane %v10082_v1, %v9092_v8 }
0x1086   :  { %8570 = vmatmul.mubr.msk.f32.vlgmr.msra.gmra.mrb[64].mxu0 %vm99_vm2, %v4614_v45 }
0x1087   :  { %8578 = vmatpush3.msra.mxu0 %v4781_v34  ;;  %8579 = vmatprep.mubr.msk.f32.mxu0 %vm9002_vm0, %v9001_v0  ;;  %v8989_v14 = vpop.eup %8988 }
0x1088   :  { %8587 = vmatprep.subr.mxu0 %v9001_v0  ;;  %v4944_v16 = vmul.f32 %v8989_v14, %v10036_v57 }
0x108a   :  { %8580 = vmatmul.mubr.msk.f32.vlgmr.msra.gmra.mrb[66].mxu0 %vm99_vm2, %v4779_v49 }
0x108b   :  { %8588 = vmatpush3.msra.mxu0 %v4946_v50  ;;  %8589 = vmatprep.mubr.msk.f32.mxu0 %vm9002_vm0, %v9001_v0 }
0x108e   :  { %8590 = vmatmul.mubr.msk.f32.vlgmr.msra.gmra.mrb[68].mxu0 %vm99_vm2, %v4944_v16 }
0x108f   :  { %5454 = vmatprep.mubr.bf16.mxu0 %v9018_v32 }
0x1118   :  { %v3848_v51 = vpop.f32.mrb[18].mxu0 }
0x1119   :  { %v8521_v52 = vpop.f32.mrb[19].mxu0 }
0x111c   :  { %v4013_v53 = vpop.f32.mrb[56].mxu0 }
0x111d   :  { %v8531_v15 = vpop.f32.mrb[57].mxu0 }
0x1120   :  { %v4178_v54 = vpop.f32.mrb[58].mxu0 }
0x1121   :  { %v8541_v55 = vpop.f32.mrb[59].mxu0 }
0x1124   :  { %v4343_v56 = vpop.f32.mrb[60].mxu0 }
0x1125   :  { %v8551_v59 = vpop.f32.mrb[61].mxu0 }
0x1126   :  { %v7520_v59 = vld [vmem:[%s10720_s2 + $0x140] sm:$0xff] }
0x1155   :  { %v4522_v60 = vpop.f32.mrb[62].mxu0 }
0x1156   :  { %v8561_v61 = vpop.f32.mrb[63].mxu0 }
0x1159   :  { %v4687_v62 = vpop.f32.mrb[64].mxu0 }
0x115a   :  { %v8641_v63 = vpack.i.bf16 %v4687_v62, %v4013_v53  ;;  %v8571_v2 = vpop.f32.mrb[65].mxu0  ;;  %v7521_v62 = vld [vmem:[%s10720_s2 + $0x148] sm:$0xff] }
0x115c   :  { %8642 = vrot.lane.b32.xlu0 %v8641_v63, %s9014_s17 }
0x115d   :  { %v4852_v5 = vpop.f32.mrb[66].mxu0 }
0x115e   :  { %v8646_v6 = vpack.i.bf16 %v4852_v5, %v4178_v54  ;;  %v8581_v10 = vpop.f32.mrb[67].mxu0 }
0x115f   :  { %v7536_v10 = vld [vmem:[%s10720_s2 + $0x1c0] sm:$0xff] }
0x1160   :  { %8647 = vrot.lane.b32.xlu1 %v8646_v6, %s9015_s18  ;;  %v7528_v6 = vld [vmem:[%s10720_s2 + $0x180] sm:$0xff] }
0x1161   :  { %v5017_v4 = vpop.f32.mrb[68].mxu0 }
0x1162   :  { %v8651_v13 = vpack.i.bf16 %v5017_v4, %v4343_v56  ;;  %v8591_v57 = vpop.f32.mrb[69].mxu0  ;;  %v7563_v4 = vcombine.high %v7528_v6, %v7536_v10 }
0x1163   :  { %v7562_v57 = vcombine.low %v7528_v6, %v7536_v10  ;;  %v7518_v10 = vld [vmem:[%s10720_s2 + $0x130] sm:$0xff] }
0x1164   :  { %8652 = vrot.lane.b32.xlu0 %v8651_v13, %s9016_s19  ;;  %5086 = vrot.lane.b32.xlu1 %v5084_v3, %s9004_s7  ;;  %v7529_v3 = vld [vmem:[%s10720_s2 + $0x188] sm:$0xff] }
0x1165   :  { %v7537_v13 = vld [vmem:[%s10720_s2 + $0x1c8] sm:$0xff] }
0x11ce   :  { %v8643_v58 = vpop.permute.xlu0 %8642 }
0x11cf   :  { %v8645_v43 = vunpack.i.h.bf16 %v8643_v58  ;;  %v8644_v11 = vunpack.i.l.bf16 %v8643_v58  ;;  %v7564_v58 = vcombine.low %v7529_v3, %v7537_v13 }
0x11d1   :  { %v5033_v20 = vsel %vm99_vm2, %v4522_v60, %v8645_v43  ;;  %v4359_v21 = vsel %vm99_vm2, %v3848_v51, %v8644_v11  ;;  %v7513_v60 = vld [vmem:[%s10720_s2 + $0x108] sm:$0xff]  ;;  %v7514_v43 = vld [vmem:[%s10720_s2 + $0x110] sm:$0xff] }
0x11d2   :  { %v8648_v33 = vpop.permute.xlu1 %8647  ;;  %v7548_v2 = vcombine.low %v7513_v60, %v7521_v62  ;;  %v7549_v5 = vcombine.high %v7513_v60, %v7521_v62  ;;  %v7522_v11 = vld [vmem:[%s10720_s2 + $0x150] sm:$0xff]  ;;  %v7540_v60 = vld [vmem:[%s10720_s2 + $0x1e0] sm:$0xff]  ;;  %v7541_v62 = vld [vmem:[%s10720_s2 + $0x1e8] sm:$0xff] }
0x11d3   :  { %v8650_v18 = vunpack.i.h.bf16 %v8648_v33  ;;  %v8649_v17 = vunpack.i.l.bf16 %v8648_v33  ;;  %v7565_v33 = vcombine.high %v7529_v3, %v7537_v13  ;;  %v7526_v3 = vld [vmem:[%s10720_s2 + $0x170] sm:$0xff]  ;;  %v7527_v13 = vld [vmem:[%s10720_s2 + $0x178] sm:$0xff] }
0x11d4   :  { %5465 = vmatprep.subr.bf16.mxu1 %v7549_v5 }
0x11d5   :  { %v5034_v24 = vsel %vm769_vm3, %v5033_v20, %v8650_v18  ;;  %v4360_v29 = vsel %vm769_vm3, %v4359_v21, %v8649_v17  ;;  %v7515_v18 = vld [vmem:[%s10720_s2 + $0x118] sm:$0xff]  ;;  %v7550_v17 = vcombine.low %v7514_v43, %v7522_v11 }
0x11d6   :  { %v8653_v19 = vpop.permute.xlu0 %8652  ;;  %v5087_v36 = vpop.permute.xlu1 %5086  ;;  %v7523_v20 = vld [vmem:[%s10720_s2 + $0x158] sm:$0xff] }
0x11d7   :  { %v8655_v23 = vunpack.i.h.bf16 %v8653_v19  ;;  %v8654_v47 = vunpack.i.l.bf16 %v8653_v19  ;;  %v7551_v19 = vcombine.high %v7514_v43, %v7522_v11  ;;  %v7552_v21 = vcombine.low %v7515_v18, %v7523_v20  ;;  %v7534_v11 = vld [vmem:[%s10720_s2 + $0x1b0] sm:$0xff] }
0x11d9   :  { %v5035_v30 = vsel %vm771_vm4, %v5034_v24, %v8655_v23  ;;  %v4361_v28 = vsel %vm771_vm4, %v4360_v29, %v8654_v47  ;;  %v7553_v23 = vcombine.high %v7515_v18, %v7523_v20  ;;  %v7542_v18 = vld [vmem:[%s10720_s2 + $0x1f0] sm:$0xff]  ;;  %v7558_v20 = vcombine.low %v7518_v10, %v7526_v3 }
0x11da   :  { %v5036_v31 = vpack.c.bf16 %v5035_v30, %v4361_v28 }
0x11dc   :  { %8597 = vmatmul.mubr.msk.bf16.vlgmr.msra.gmra.mrb[72].mxu1 %vm45_vm1, %v5036_v31 }
0x11dd   :  { %5497 = vmatprep.mubr.bf16.mxu1 %v9018_v32  ;;  %5466 = vmatpush1.bf16.msra.mxu1 %v7548_v2 }
0x11de   :  { %5467 = vmatprep.subr.bf16.mxu1 %v7565_v33  ;;  %v7559_v33 = vcombine.high %v7518_v10, %v7526_v3 }
0x11e1   :  { %5468 = vmatpush1.bf16.msra.mxu1 %v7564_v58 }
0x11e2   :  { %5551 = vmatprep.subr.bf16.mxu1 %v7553_v23  ;;  %v7575_v23 = vcombine.high %v7534_v11, %v7542_v18 }
0x12af   :  { %v5074_v40 = vpop.f32.mrb[72].mxu1 }
0x12b0   :  { %v5089_v46 = vadd.f32 %v5087_v36, %v5074_v40  ;;  %v8598_v7 = vpop.f32.mrb[73].mxu1  ;;  %v5130_v40 = vrot.slane %v10082_v1, %v9247_v26 }
0x12b1   :  { %v5077_v35 = vpop.f32.mrb[74].mxu1 }
0x12b2   :  { %v5090_v41 = vadd.f32 %v5087_v36, %v5077_v35  ;;  %5093 = vrot.lane.b32.xlu0 %v5089_v46, %s9017_s20  ;;  %v8599_v9 = vpop.f32.mrb[75].mxu1  ;;  %v5136_v35 = vrot.slane %v10082_v1, %v9313_v39 }
0x12b4   :  { %5095 = vrot.lane.b32.xlu1 %v5090_v41, %s9017_s20 }
0x1324   :  { %v5094_v44 = vpop.permute.xlu0 %5093 }
0x1325   :  { %v5099_v45 = vadd.f32 %v5094_v44, %v9909_v37 }
0x1326   :  { %v5096_v48 = vpop.permute.xlu1 %5095 }
0x1327   :  { %v5100_v34 = vadd.f32 %v5096_v48, %v9911_v38  ;;  %v5101_v49 = vsel %vm45_vm1, %v5099_v45, 0.0  ;;  %v7512_v38 = vld [vmem:[%s10720_s2 + $0x100] sm:$0xff]  ;;  %v7538_v48 = vld [vmem:[%s10720_s2 + $0x1d0] sm:$0xff] }
0x1328   :  { %5102 = vadd.xlane.f32.xlu0 %v5101_v49  ;;  %v7547_v61 = vcombine.high %v7512_v38, %v7520_v59  ;;  %v7546_v63 = vcombine.low %v7512_v38, %v7520_v59  ;;  %v7539_v49 = vld [vmem:[%s10720_s2 + $0x1d8] sm:$0xff]  ;;  %v7532_v59 = vld [vmem:[%s10720_s2 + $0x1a0] sm:$0xff] }
0x1329   :  { %v5104_v14 = vsel %vm45_vm1, %v5100_v34, 0.0  ;;  %v7571_v5 = vcombine.high %v7532_v59, %v7540_v60 }
0x132a   :  { %5105 = vadd.xlane.f32.xlu1 %v5104_v14  ;;  %5422 = vmatprep.subr.bf16.mxu0 %v7547_v61  ;;  %v7533_v61 = vld [vmem:[%s10720_s2 + $0x1a8] sm:$0xff] }
0x132b   :  { %5423 = vmatpush1.bf16.msra.mxu0 %v7546_v63  ;;  %v7573_v6 = vcombine.high %v7533_v61, %v7541_v62  ;;  %v7572_v58 = vcombine.low %v7533_v61, %v7541_v62  ;;  %v8817_v61 = vld [vmem:[%s10721_s4 + $0x4f8] sm:$0xff]  }
0x132c   :  { %5424 = vmatprep.subr.bf16.mxu0 %v7563_v4  ;;  %v7519_v4 = vld [vmem:[%s10720_s2 + $0x138] sm:$0xff] }
0x132d   :  { %v7561_v43 = vcombine.high %v7519_v4, %v7527_v13  ;;  %v8818_v62 = vld [vmem:[%s10721_s4 + $0x438] sm:$0xff]  }
0x132f   :  { %5425 = vmatpush1.bf16.msra.mxu0 %v7562_v57  ;;  %v7570_v57 = vcombine.low %v7532_v59, %v7540_v60  ;;  %v8815_v59 = vld [vmem:[%s10721_s4 + $0x4b0] sm:$0xff]   ;;  %v8816_v60 = vld [vmem:[%s10721_s4 + $0x478] sm:$0xff]  }
0x1330   :  { %5508 = vmatprep.subr.bf16.mxu0 %v7551_v19  ;;  %v7543_v19 = vld [vmem:[%s10720_s2 + $0x1f8] sm:$0xff] }
0x13b5   :  { %v5103_v50 = vpop.xlane.xlu0 %5102 }
0x13b6   :  { %v5107_v16 = vmul.f32 0.03125, %v5103_v50 }
0x13b7   :  { %v5106_v51 = vpop.xlane.xlu1 %5105 }
0x13b8   :  { %v5109_v52 = vsub.f32 %v5099_v45, %v5107_v16  ;;  %v5108_v53 = vmul.f32 0.03125, %v5106_v51  ;;  %v7530_v45 = vld [vmem:[%s10720_s2 + $0x190] sm:$0xff] }
0x13b9   :  { %v7567_v16 = vcombine.high %v7530_v45, %v7538_v48 }
0x13ba   :  { %v5110_v15 = vsub.f32 %v5100_v34, %v5108_v53  ;;  %v5111_v54 = vmul.f32 %v5109_v52, %v5109_v52  ;;  %v7531_v34 = vld [vmem:[%s10720_s2 + $0x198] sm:$0xff]  ;;  %v7524_v53 = vld [vmem:[%s10720_s2 + $0x160] sm:$0xff] }
0x13bb   :  { %v7569_v51 = vcombine.high %v7531_v34, %v7539_v49 }
0x13bc   :  { %v5113_v55 = vsel %vm45_vm1, %v5111_v54, 0.0  ;;  %v5112_v56 = vmul.f32 %v5110_v15, %v5110_v15  ;;  %v7525_v54 = vld [vmem:[%s10720_s2 + $0x168] sm:$0xff] }
0x13bd   :  { %5114 = vadd.xlane.f32.xlu0 %v5113_v55  ;;  %v7566_v55 = vcombine.low %v7530_v45, %v7538_v48  ;;  %v8800_v45 = vld [vmem:[%s10721_s4 + $0x458] sm:$0xff]  }
0x13be   :  { %v5116_v37 = vsel %vm45_vm1, %v5112_v56, 0.0  ;;  %v7568_v56 = vcombine.low %v7531_v34, %v7539_v49  ;;  %v8801_v48 = vld [vmem:[%s10721_s4 + $0x4d8] sm:$0xff]  }
0x13bf   :  { %v8802_v34 = vld [vmem:[%s10721_s4 + $0x418] sm:$0xff]  }
0x13c0   :  { %v8803_v49 = vld [vmem:[%s10721_s4 + $0x498] sm:$0xff]  }
0x13c1   :  { %5117 = vadd.xlane.f32.xlu0 %v5116_v37 }
0x144a   :  { %v5115_v47 = vpop.xlane.xlu0 %5114 }
0x144b   :  { %v5119_v24 = vmul.f32 0.03125, %v5115_v47 }
0x144d   :  { %v5121_v29 = vadd.f32 1e-05, %v5119_v24  ;;  %v7574_v24 = vcombine.low %v7534_v11, %v7542_v18 }
0x144e   :  { %v5118_v30 = vpop.xlane.xlu0 %5117 }
0x144f   :  { %8990 = vrsqrt.f32 %v5121_v29  ;;  %v5120_v28 = vmul.f32 0.03125, %v5118_v30  ;;  %v8788_v30 = vld [vmem:[%s10721_s4 + $0x440] sm:$0xff]  }
0x1451   :  { %v5122_v31 = vadd.f32 1e-05, %v5120_v28  ;;  %v8789_v28 = vld [vmem:[%s10721_s4 + $0x4c0] sm:$0xff]  }
0x1453   :  { %8992 = vrsqrt.f32 %v5122_v31  ;;  %v8790_v31 = vld [vmem:[%s10721_s4 + $0x400] sm:$0xff]  }
0x1459   :  { %v8991_v36 = vpop.eup %8990 }
0x145a   :  { %v5125_v46 = vmul.f32 %v8991_v36, %v5109_v52  ;;  %v7516_v52 = vld [vmem:[%s10720_s2 + $0x120] sm:$0xff] }
0x145b   :  { %v7555_v37 = vcombine.high %v7516_v52, %v7524_v53  ;;  %v7554_v63 = vcombine.low %v7516_v52, %v7524_v53  ;;  %v8791_v36 = vld [vmem:[%s10721_s4 + $0x480] sm:$0xff]   ;;  %v8808_v53 = vld [vmem:[%s10721_s4 + $0x468] sm:$0xff]  }
0x145c   :  { %v5131_v41 = vmul.f32 %v5130_v40, %v5125_v46  ;;  %v8794_v46 = vld [vmem:[%s10721_s4 + $0x408] sm:$0xff]   ;;  %v8807_v52 = vld [vmem:[%s10721_s4 + $0x4a0] sm:$0xff]  }
0x145d   :  { %v8993_v7 = vpop.eup %8992 }
0x145e   :  { %v5126_v9 = vmul.f32 %v8993_v7, %v5110_v15  ;;  %v10157_v1 = vadd.f32 %v5136_v35, %v5131_v41  ;;  %v7517_v15 = vld [vmem:[%s10720_s2 + $0x128] sm:$0xff]  ;;  %v8797_v41 = vld [vmem:[%s10721_s4 + $0x4d0] sm:$0xff]  }
0x145f   :  { %v7557_v38 = vcombine.high %v7517_v15, %v7525_v54  ;;  %v7556_v2 = vcombine.low %v7517_v15, %v7525_v54  ;;  %v8795_v7 = vld [vmem:[%s10721_s4 + $0x488] sm:$0xff]  }
0x1460   :  { %v5132_v44 = vmul.f32 %v5130_v40, %v5126_v9  ;;  %v8792_v40 = vld [vmem:[%s10721_s4 + $0x448] sm:$0xff]   ;;  %v8798_v9 = vld [vmem:[%s10721_s4 + $0x410] sm:$0xff]  }
0x1461   :  { %v8809_v15 = vld [vmem:[%s10721_s4 + $0x4e8] sm:$0xff]  }
0x1462   :  { %v10159_v14 = vadd.f32 %v5136_v35, %v5132_v44  ;;  %v8796_v35 = vld [vmem:[%s10721_s4 + $0x450] sm:$0xff]   ;;  %v8810_v54 = vld [vmem:[%s10721_s4 + $0x428] sm:$0xff]  }
0x1463   :  { %v8799_v44 = vld [vmem:[%s10721_s4 + $0x490] sm:$0xff]  }
0x1464   :  { %v10163_v50 = vpack.c.bf16 %v10159_v14, %v10157_v1 }
0x1466   :  { %7578 = vmatmul.mubr.msk.bf16.vlgmr.msra.gmra.mrb[72].mxu0 %vm45_vm1, %v10163_v50  ;;  %7579 = vmatmul.mubr.msk.bf16.vlgmr.msra.gmra.mrb[76].mxu1 %vm45_vm1, %v10163_v50 }
0x1467   :  { %5509 = vmatpush1.bf16.msra.mxu0 %v7550_v17  ;;  %5552 = vmatpush1.bf16.msra.mxu1 %v7552_v21  ;;  %v7535_v17 = vld [vmem:[%s10720_s2 + $0x1b8] sm:$0xff]  ;;  %v7560_v21 = vcombine.low %v7519_v4, %v7527_v13 }
0x1468   :  { %5510 = vmatprep.subr.bf16.mxu0 %v7567_v16  ;;  %5553 = vmatprep.subr.bf16.mxu1 %v7569_v51  ;;  %v7577_v47 = vcombine.high %v7535_v17, %v7543_v19  ;;  %v7576_v29 = vcombine.low %v7535_v17, %v7543_v19  ;;  %v8805_v16 = vld [vmem:[%s10721_s4 + $0x4e0] sm:$0xff]  }
0x1469   :  { %5540 = vmatprep.mubr.bf16.mxu0 %v9018_v32  ;;  %5583 = vmatprep.mubr.bf16.mxu1 %v9018_v32  ;;  %v8806_v51 = vld [vmem:[%s10721_s4 + $0x420] sm:$0xff]  }
0x146b   :  { %5511 = vmatpush1.bf16.msra.mxu0 %v7566_v55  ;;  %5554 = vmatpush1.bf16.msra.mxu1 %v7568_v56  ;;  %v8811_v55 = vld [vmem:[%s10721_s4 + $0x4a8] sm:$0xff]   ;;  %v8812_v56 = vld [vmem:[%s10721_s4 + $0x470] sm:$0xff]  }
0x146c   :  { %5594 = vmatprep.subr.bf16.mxu0 %v7555_v37  ;;  %5637 = vmatprep.subr.bf16.mxu1 %v7557_v38  ;;  %v8813_v37 = vld [vmem:[%s10721_s4 + $0x4f0] sm:$0xff]  }
0x146d   :  { %v8814_v38 = vld [vmem:[%s10721_s4 + $0x430] sm:$0xff]  }
0x146e   :  { %7580 = vmatmul.mubr.msk.bf16.vlgmr.msra.gmra.mrb[76].mxu0 %vm45_vm1, %v10163_v50  ;;  %7581 = vmatmul.mubr.msk.bf16.vlgmr.msra.gmra.mrb[80].mxu1 %vm45_vm1, %v10163_v50 }
0x146f   :  { %5595 = vmatpush1.bf16.msra.mxu0 %v7554_v63  ;;  %5638 = vmatpush1.bf16.msra.mxu1 %v7556_v2  ;;  %v8819_v63 = vld [vmem:[%s10721_s4 + $0x4b8] sm:$0xff]   ;;  %v8820_v2 = vld [vmem:[%s10721_s4 + $0x540] sm:$0xff]  }
0x1470   :  { %5596 = vmatprep.subr.bf16.mxu0 %v7571_v5  ;;  %5639 = vmatprep.subr.bf16.mxu1 %v7573_v6  ;;  %v8821_v5 = vld [vmem:[%s10721_s4 + $0x5c0] sm:$0xff]  }
0x1471   :  { %5626 = vmatprep.mubr.bf16.mxu0 %v9018_v32  ;;  %5669 = vmatprep.mubr.bf16.mxu1 %v9018_v32  ;;  %v7544_v6 = vld [vmem:[%s10722_s3 + $0x1] ss:$2 sm:$0xff] }
0x1472   :  { %v5182_v10 = vrot.slane %v7544_v6, %v9092_v8  ;;  %v5190_v3 = vrot.slane %v7544_v6, %v9313_v39  ;;  %v5186_v4 = vrot.slane %v7544_v6, %v9247_v26  ;;  %v5194_v13 = vrot.slane %v7544_v6, %v9316_v42 }
0x1473   :  { %5597 = vmatpush1.bf16.msra.mxu0 %v7570_v57  ;;  %5640 = vmatpush1.bf16.msra.mxu1 %v7572_v58 }
0x1474   :  { %5680 = vmatprep.subr.bf16.mxu0 %v7559_v33  ;;  %5723 = vmatprep.subr.bf16.mxu1 %v7561_v43 }
0x1476   :  { %7582 = vmatmul.mubr.msk.bf16.vlgmr.msra.gmra.mrb[80].mxu0 %vm45_vm1, %v10163_v50  ;;  %7583 = vmatmul.mubr.msk.bf16.vlgmr.msra.gmra.mrb[84].mxu1 %vm45_vm1, %v10163_v50 }
0x1477   :  { %5681 = vmatpush1.bf16.msra.mxu0 %v7558_v20  ;;  %5724 = vmatpush1.bf16.msra.mxu1 %v7560_v21 }
0x1478   :  { %5682 = vmatprep.subr.bf16.mxu0 %v7575_v23  ;;  %5725 = vmatprep.subr.bf16.mxu1 %v7577_v47 }
0x1479   :  { %5712 = vmatprep.mubr.bf16.mxu0 %v9018_v32  ;;  %5755 = vmatprep.mubr.bf16.mxu1 %v9018_v32  ;;  %v8793_v32 = vld [vmem:[%s10721_s4 + $0x4c8] sm:$0xff]  }
0x147b   :  { %5683 = vmatpush1.bf16.msra.mxu0 %v7574_v24  ;;  %5726 = vmatpush1.bf16.msra.mxu1 %v7576_v29 }
0x147c   :  { %8229 = vmatprep.subr.bf16.mxu0 %v8788_v30  ;;  %8251 = vmatprep.subr.bf16.mxu1 %v8789_v28  ;;  %v5198_v30 = vrot.slane %v7544_v6, %v9524_v22  ;;  %v5206_v28 = vrot.slane %v7544_v6, %v9527_v12 }
0x147e   :  { %7584 = vmatmul.mubr.msk.bf16.vlgmr.msra.gmra.mrb[84].mxu0 %vm45_vm1, %v10163_v50  ;;  %7585 = vmatmul.mubr.msk.bf16.vlgmr.msra.gmra.mrb[88].mxu1 %vm45_vm1, %v10163_v50  ;;  %v8804_v50 = vld [vmem:[%s10721_s4 + $0x460] sm:$0xff]  }
0x147f   :  { %8230 = vmatpush3.bf16.msra.mxu0 %v8790_v31  ;;  %8252 = vmatpush3.bf16.msra.mxu1 %v8791_v36 }
0x1480   :  { %8231 = vmatprep.subr.bf16.mxu0 %v8792_v40  ;;  %8253 = vmatprep.subr.bf16.mxu1 %v8793_v32  ;;  %v5202_v40 = vrot.slane %v7544_v6, %v9530_v25  ;;  %v5210_v32 = vrot.slane %v7544_v6, %v9533_v27 }
0x1483   :  { %8232 = vmatpush3.bf16.msra.mxu0 %v8794_v46  ;;  %8254 = vmatpush3.bf16.msra.mxu1 %v8795_v7 }
0x1484   :  { %8233 = vmatprep.subr.bf16.mxu0 %v8796_v35  ;;  %8255 = vmatprep.subr.bf16.mxu1 %v8797_v41 }
0x1487   :  { %8234 = vmatpush3.bf16.msra.mxu0 %v8798_v9  ;;  %8256 = vmatpush3.bf16.msra.mxu1 %v8799_v44 }
0x1488   :  { %8235 = vmatprep.subr.bf16.mxu0 %v8800_v45  ;;  %8257 = vmatprep.subr.bf16.mxu1 %v8801_v48 }
0x148b   :  { %8236 = vmatpush3.bf16.msra.mxu0 %v8802_v34  ;;  %8258 = vmatpush3.bf16.msra.mxu1 %v8803_v49  ;;  %v10351_v34 = vld [vmem:[%s10722_s3 + $0x11] ss:$2 sm:$0xff] }
0x148c   :  { %8237 = vmatprep.subr.bf16.mxu0 %v8804_v50  ;;  %8259 = vmatprep.subr.bf16.mxu1 %v8805_v16  ;;  %v5222_v6 = vrot.slane %v10351_v34, %v9313_v39  ;;  %v8827_v39 = vld [vmem:[%s10721_s4 + $0x588] sm:$0xff]  }
0x148f   :  { %8238 = vmatpush3.bf16.msra.mxu0 %v8806_v51  ;;  %8260 = vmatpush3.bf16.msra.mxu1 %v8807_v52 }
0x1490   :  { %8239 = vmatprep.subr.bf16.mxu0 %v8808_v53  ;;  %8261 = vmatprep.subr.bf16.mxu1 %v8809_v15  ;;  %v8822_v15 = vld [vmem:[%s10721_s4 + $0x500] sm:$0xff]  }
0x1493   :  { %8240 = vmatpush3.bf16.msra.mxu0 %v8810_v54  ;;  %8262 = vmatpush3.bf16.msra.mxu1 %v8811_v55  ;;  %v8823_v54 = vld [vmem:[%s10721_s4 + $0x580] sm:$0xff]  }
0x1494   :  { %8241 = vmatprep.subr.bf16.mxu0 %v8812_v56  ;;  %8263 = vmatprep.subr.bf16.mxu1 %v8813_v37 }
0x1497   :  { %8242 = vmatpush3.bf16.msra.mxu0 %v8814_v38  ;;  %8264 = vmatpush3.bf16.msra.mxu1 %v8815_v59  ;;  %v8824_v59 = vld [vmem:[%s10721_s4 + $0x548] sm:$0xff]  }
0x1498   :  { %8243 = vmatprep.subr.bf16.mxu0 %v8816_v60  ;;  %8265 = vmatprep.subr.bf16.mxu1 %v8817_v61  ;;  %v8825_v60 = vld [vmem:[%s10721_s4 + $0x5c8] sm:$0xff]   ;;  %v5214_v61 = vrot.slane %v10351_v34, %v9092_v8 }
0x149b   :  { %8244 = vmatpush3.bf16.msra.mxu0 %v8818_v62  ;;  %8266 = vmatpush3.bf16.msra.mxu1 %v8819_v63 }
0x149c   :  { %8273 = vmatprep.subr.bf16.mxu0 %v8820_v2  ;;  %8295 = vmatprep.subr.bf16.mxu1 %v8821_v5 }
0x1539   :  { %v5456_v57 = vpop.f32.mrb[72].mxu0  ;;  %v5499_v58 = vpop.f32.mrb[76].mxu1 }
0x153a   :  { %v5457_v33 = vadd.f32 %v5456_v57, %v5182_v10  ;;  %v5500_v43 = vadd.f32 %v5499_v58, %v5190_v3  ;;  %v5458_v11 = vpop.f32.mrb[73].mxu0  ;;  %v5501_v18 = vpop.f32.mrb[77].mxu1  ;;  %v5218_v57 = vrot.slane %v10351_v34, %v9247_v26  ;;  %v8828_v26 = vld [vmem:[%s10721_s4 + $0x550] sm:$0xff]  }
0x153b   :  { %v5459_v17 = vadd.f32 %v5458_v11, %v5186_v4  ;;  %v5502_v19 = vadd.f32 %v5501_v18, %v5194_v13  ;;  %v5460_v20 = vpop.f32.mrb[74].mxu0  ;;  %v5503_v21 = vpop.f32.mrb[78].mxu1 }
0x153c   :  { %v5461_v23 = vadd.f32 %v5460_v20, %v5182_v10  ;;  %v5504_v47 = vadd.f32 %v5503_v21, %v5190_v3  ;;  %v5462_v24 = vpop.f32.mrb[75].mxu0  ;;  %v5505_v29 = vpop.f32.mrb[79].mxu1  ;;  %v5766_v46 = vmax.f32 %v5457_v33, 0.0  ;;  %v5768_v7 = vmax.f32 %v5500_v43, 0.0  ;;  %v8826_v33 = vld [vmem:[%s10721_s4 + $0x508] sm:$0xff]   ;;  %v8829_v20 = vld [vmem:[%s10721_s4 + $0x5d0] sm:$0xff]  }
0x153d   :  { %v5463_v31 = vadd.f32 %v5462_v24, %v5186_v4  ;;  %v5506_v36 = vadd.f32 %v5505_v29, %v5194_v13  ;;  %v5767_v9 = vmax.f32 %v5459_v17, 0.0  ;;  %v5769_v44 = vmax.f32 %v5502_v19, 0.0 }
0x153e   :  { %v5782_v35 = vmax.f32 %v5461_v23, 0.0  ;;  %v5784_v41 = vmax.f32 %v5504_v47, 0.0  ;;  %v5226_v43 = vrot.slane %v10351_v34, %v9316_v42 }
0x153f   :  { %v5783_v45 = vmax.f32 %v5463_v31, 0.0  ;;  %v5785_v48 = vmax.f32 %v5506_v36, 0.0 }
0x1540   :  { %v5798_v49 = vpack.c.bf16 %v5782_v35, %v5766_v46  ;;  %v5800_v50 = vpack.c.bf16 %v5784_v41, %v5768_v7  ;;  %v8831_v46 = vld [vmem:[%s10721_s4 + $0x590] sm:$0xff]  }
0x1541   :  { %v5799_v16 = vpack.c.bf16 %v5783_v45, %v5767_v9  ;;  %v5801_v51 = vpack.c.bf16 %v5785_v48, %v5769_v44  ;;  %v5542_v52 = vpop.f32.mrb[76].mxu0  ;;  %v5585_v53 = vpop.f32.mrb[80].mxu1  ;;  %v8832_v44 = vld [vmem:[%s10721_s4 + $0x558] sm:$0xff]  }
0x1542   :  { %v5543_v55 = vadd.f32 %v5542_v52, %v5198_v30  ;;  %v5586_v56 = vadd.f32 %v5585_v53, %v5206_v28  ;;  %v5544_v37 = vpop.f32.mrb[77].mxu0  ;;  %v5587_v38 = vpop.f32.mrb[81].mxu1  ;;  %v8833_v45 = vld [vmem:[%s10721_s4 + $0x5d8] sm:$0xff]  }
0x1543   :  { %v5545_v62 = vadd.f32 %v5544_v37, %v5202_v40  ;;  %v5588_v63 = vadd.f32 %v5587_v38, %v5210_v32  ;;  %v5546_v2 = vpop.f32.mrb[78].mxu0  ;;  %v5589_v5 = vpop.f32.mrb[82].mxu1  ;;  %6875 = vmatprep.mubr.bf16.mxu0 %v5799_v16  ;;  %6916 = vmatprep.mubr.bf16.mxu1 %v5801_v51  ;;  %v5230_v51 = vrot.slane %v10351_v34, %v9524_v22 }
0x1544   :  { %v5547_v10 = vadd.f32 %v5546_v2, %v5198_v30  ;;  %v5590_v3 = vadd.f32 %v5589_v5, %v5206_v28  ;;  %v5548_v4 = vpop.f32.mrb[79].mxu0  ;;  %v5591_v13 = vpop.f32.mrb[83].mxu1  ;;  %6876 = vmatmul.mubr.bf16.vlgmr.msra.gmra.mrb[88].mxu0 %v5798_v49  ;;  %6917 = vmatmul.mubr.bf16.vlgmr.msra.gmra.mrb[92].mxu1 %v5800_v50  ;;  %v5770_v11 = vmax.f32 %v5543_v55, 0.0  ;;  %v5772_v18 = vmax.f32 %v5586_v56, 0.0 }
0x1545   :  { %v5549_v58 = vadd.f32 %v5548_v4, %v5202_v40  ;;  %v5592_v8 = vadd.f32 %v5591_v13, %v5210_v32  ;;  %8274 = vmatpush3.bf16.msra.mxu0 %v8822_v15  ;;  %8296 = vmatpush3.bf16.msra.mxu1 %v8823_v54  ;;  %v5771_v21 = vmax.f32 %v5545_v62, 0.0  ;;  %v5773_v23 = vmax.f32 %v5588_v63, 0.0  ;;  %v8830_v32 = vld [vmem:[%s10721_s4 + $0x510] sm:$0xff]  }
0x1546   :  { %v5786_v17 = vmax.f32 %v5547_v10, 0.0  ;;  %v5788_v19 = vmax.f32 %v5590_v3, 0.0  ;;  %8275 = vmatprep.subr.bf16.mxu0 %v8824_v59  ;;  %8297 = vmatprep.subr.bf16.mxu1 %v8825_v60  ;;  %v5238_v55 = vrot.slane %v10351_v34, %v9527_v12  ;;  %v5234_v56 = vrot.slane %v10351_v34, %v9530_v25  ;;  %v8834_v59 = vld [vmem:[%s10721_s4 + $0x518] sm:$0xff]   ;;  %v8837_v10 = vld [vmem:[%s10721_s4 + $0x5e0] sm:$0xff]  }
0x1547   :  { %v5787_v47 = vmax.f32 %v5549_v58, 0.0  ;;  %v5789_v24 = vmax.f32 %v5592_v8, 0.0  ;;  %v8835_v60 = vld [vmem:[%s10721_s4 + $0x598] sm:$0xff]  }
0x1548   :  { %v10385_v29 = vpack.c.bf16 %v5786_v17, %v5770_v11  ;;  %v10387_v30 = vpack.c.bf16 %v5788_v19, %v5772_v18  ;;  %v8839_v11 = vld [vmem:[%s10721_s4 + $0x5a0] sm:$0xff]  }
0x1549   :  { %v5803_v28 = vpack.c.bf16 %v5787_v47, %v5771_v21  ;;  %v5805_v31 = vpack.c.bf16 %v5789_v24, %v5773_v23  ;;  %8276 = vmatpush3.bf16.msra.mxu0 %v8826_v33  ;;  %8298 = vmatpush3.bf16.msra.mxu1 %v8827_v39  ;;  %v5628_v36 = vpop.f32.mrb[80].mxu0  ;;  %v5671_v40 = vpop.f32.mrb[84].mxu1  ;;  %v8841_v21 = vld [vmem:[%s10721_s4 + $0x5e8] sm:$0xff]  }
0x154a   :  { %v5629_v7 = vadd.f32 %v5628_v36, %v5214_v61  ;;  %v5672_v35 = vadd.f32 %v5671_v40, %v5222_v6  ;;  %v5630_v41 = vpop.f32.mrb[81].mxu0  ;;  %v5673_v9 = vpop.f32.mrb[85].mxu1  ;;  %8277 = vmatprep.subr.bf16.mxu0 %v8828_v26  ;;  %8299 = vmatprep.subr.bf16.mxu1 %v8829_v20  ;;  %v8840_v20 = vld [vmem:[%s10721_s4 + $0x568] sm:$0xff]  }
0x154b   :  { %v5631_v48 = vadd.f32 %v5630_v41, %v5218_v57  ;;  %v5674_v49 = vadd.f32 %v5673_v9, %v5226_v43  ;;  %v5632_v50 = vpop.f32.mrb[82].mxu0  ;;  %v5675_v16 = vpop.f32.mrb[86].mxu1  ;;  %6957 = vmatprep.mubr.bf16.mxu0 %v5803_v28  ;;  %6998 = vmatprep.mubr.bf16.mxu1 %v5805_v31  ;;  %v8843_v41 = vld [vmem:[%s10721_s4 + $0x5a8] sm:$0xff]  }
0x154c   :  { %v5633_v52 = vadd.f32 %v5632_v50, %v5214_v61  ;;  %v5676_v53 = vadd.f32 %v5675_v16, %v5222_v6  ;;  %v5634_v15 = vpop.f32.mrb[83].mxu0  ;;  %v5677_v54 = vpop.f32.mrb[87].mxu1  ;;  %v5242_v61 = vrot.slane %v10351_v34, %v9533_v27  ;;  %v5774_v62 = vmax.f32 %v5629_v7, 0.0  ;;  %v8836_v6 = vld [vmem:[%s10721_s4 + $0x560] sm:$0xff]   ;;  %v8845_v50 = vld [vmem:[%s10721_s4 + $0x5f0] sm:$0xff]  }
0x154d   :  { %v5635_v37 = vadd.f32 %v5634_v15, %v5218_v57  ;;  %v5678_v38 = vadd.f32 %v5677_v54, %v5226_v43  ;;  %8278 = vmatpush3.bf16.msra.mxu0 %v8830_v32  ;;  %8300 = vmatpush3.bf16.msra.mxu1 %v8831_v46  ;;  %v5776_v63 = vmax.f32 %v5672_v35, 0.0  ;;  %v5775_v3 = vmax.f32 %v5631_v48, 0.0  ;;  %v8838_v43 = vld [vmem:[%s10721_s4 + $0x520] sm:$0xff]   ;;  %v8842_v35 = vld [vmem:[%s10721_s4 + $0x528] sm:$0xff]  }
0x154e   :  { %v5790_v2 = vmax.f32 %v5633_v52, 0.0  ;;  %v5792_v5 = vmax.f32 %v5676_v53, 0.0  ;;  %8279 = vmatprep.subr.bf16.mxu0 %v8832_v44  ;;  %8301 = vmatprep.subr.bf16.mxu1 %v8833_v45  ;;  %v5777_v4 = vmax.f32 %v5674_v49, 0.0  ;;  %v8844_v49 = vld [vmem:[%s10721_s4 + $0x570] sm:$0xff]  }
0x154f   :  { %v5791_v13 = vmax.f32 %v5635_v37, 0.0  ;;  %v5793_v57 = vmax.f32 %v5678_v38, 0.0  ;;  %v8846_v37 = vld [vmem:[%s10721_s4 + $0x530] sm:$0xff]  }
0x1550   :  { %v10421_v58 = vpack.c.bf16 %v5790_v2, %v5774_v62  ;;  %v10423_v27 = vpack.c.bf16 %v5792_v5, %v5776_v63  ;;  %v8847_v38 = vld [vmem:[%s10721_s4 + $0x5b0] sm:$0xff]   ;;  %v8851_v62 = vld [vmem:[%s10721_s4 + $0x5b8] sm:$0xff]   ;;  %v8852_v63 = vld [vmem:[%s10721_s4 + $0x640] sm:$0xff]  }
0x1551   :  { %v10425_v34 = vpack.c.bf16 %v5791_v13, %v5775_v3  ;;  %v10427_v8 = vpack.c.bf16 %v5793_v57, %v5777_v4  ;;  %8280 = vmatpush3.bf16.msra.mxu0 %v8834_v59  ;;  %8302 = vmatpush3.bf16.msra.mxu1 %v8835_v60  ;;  %v5714_v33 = vpop.f32.mrb[84].mxu0  ;;  %v5757_v39 = vpop.f32.mrb[88].mxu1  ;;  %v8848_v59 = vld [vmem:[%s10721_s4 + $0x578] sm:$0xff]   ;;  %v8853_v2 = vld [vmem:[%s10721_s4 + $0x6c0] sm:$0xff]   ;;  %v8857_v3 = vld [vmem:[%s10721_s4 + $0x6c8] sm:$0xff]  }
0x1552   :  { %v5715_v18 = vadd.f32 %v5714_v33, %v5230_v51  ;;  %v5758_v17 = vadd.f32 %v5757_v39, %v5238_v55  ;;  %v5716_v19 = vpop.f32.mrb[85].mxu0  ;;  %v5759_v26 = vpop.f32.mrb[89].mxu1  ;;  %8281 = vmatprep.subr.bf16.mxu0 %v8836_v6  ;;  %8303 = vmatprep.subr.bf16.mxu1 %v8837_v10  ;;  %v8849_v60 = vld [vmem:[%s10721_s4 + $0x5f8] sm:$0xff]   ;;  %v8854_v5 = vld [vmem:[%s10721_s4 + $0x600] sm:$0xff]   ;;  %v8856_v10 = vld [vmem:[%s10721_s4 + $0x648] sm:$0xff]  }
0x1553   :  { %v5717_v23 = vadd.f32 %v5716_v19, %v5234_v56  ;;  %v5760_v47 = vadd.f32 %v5759_v26, %v5242_v61  ;;  %v5718_v24 = vpop.f32.mrb[86].mxu0  ;;  %v5761_v28 = vpop.f32.mrb[90].mxu1  ;;  %v8855_v6 = vld [vmem:[%s10721_s4 + $0x680] sm:$0xff]   ;;  %v8858_v4 = vld [vmem:[%s10721_s4 + $0x608] sm:$0xff]   ;;  %v8862_v57 = vld [vmem:[%s10721_s4 + $0x610] sm:$0xff]  }
0x1554   :  { %v5719_v31 = vadd.f32 %v5718_v24, %v5230_v51  ;;  %v5762_v36 = vadd.f32 %v5761_v28, %v5238_v55  ;;  %v5720_v40 = vpop.f32.mrb[87].mxu0  ;;  %v5763_v32 = vpop.f32.mrb[91].mxu1  ;;  %v5778_v9 = vmax.f32 %v5715_v18, 0.0  ;;  %v5780_v44 = vmax.f32 %v5758_v17, 0.0  ;;  %v8859_v13 = vld [vmem:[%s10721_s4 + $0x688] sm:$0xff]   ;;  %v8865_v33 = vld [vmem:[%s10721_s4 + $0x6d8] sm:$0xff]  }
0x1555   :  { %v5721_v46 = vadd.f32 %v5720_v40, %v5234_v56  ;;  %v5764_v7 = vadd.f32 %v5763_v32, %v5242_v61  ;;  %8282 = vmatpush3.bf16.msra.mxu0 %v8838_v43  ;;  %8304 = vmatpush3.bf16.msra.mxu1 %v8839_v11  ;;  %v5779_v16 = vmax.f32 %v5717_v23, 0.0  ;;  %v5781_v51 = vmax.f32 %v5760_v47, 0.0  ;;  %v8850_v61 = vld [vmem:[%s10721_s4 + $0x538] sm:$0xff]   ;;  %v8868_v11 = vld [vmem:[%s10721_s4 + $0x660] sm:$0xff]   ;;  %v8872_v26 = vld [vmem:[%s10721_s4 + $0x668] sm:$0xff]  }
0x1556   :  { %v5794_v45 = vmax.f32 %v5719_v31, 0.0  ;;  %v5796_v48 = vmax.f32 %v5762_v36, 0.0  ;;  %8283 = vmatprep.subr.bf16.mxu0 %v8840_v20  ;;  %8305 = vmatprep.subr.bf16.mxu1 %v8841_v21  ;;  %v8866_v39 = vld [vmem:[%s10721_s4 + $0x618] sm:$0xff]   ;;  %v8869_v18 = vld [vmem:[%s10721_s4 + $0x6e0] sm:$0xff]   ;;  %v8873_v20 = vld [vmem:[%s10721_s4 + $0x6e8] sm:$0xff]  }
0x1557   :  { %v5795_v52 = vmax.f32 %v5721_v46, 0.0  ;;  %v5797_v53 = vmax.f32 %v5764_v7, 0.0  ;;  %v8867_v43 = vld [vmem:[%s10721_s4 + $0x698] sm:$0xff]   ;;  %v8870_v17 = vld [vmem:[%s10721_s4 + $0x620] sm:$0xff]   ;;  %v8874_v21 = vld [vmem:[%s10721_s4 + $0x628] sm:$0xff]  }
0x1558   :  { %v10453_v15 = vpack.c.bf16 %v5794_v45, %v5778_v9  ;;  %v10455_v54 = vpack.c.bf16 %v5796_v48, %v5780_v44  ;;  %v8871_v19 = vld [vmem:[%s10721_s4 + $0x6a0] sm:$0xff]   ;;  %v8875_v23 = vld [vmem:[%s10721_s4 + $0x6a8] sm:$0xff]   ;;  %v8876_v47 = vld [vmem:[%s10721_s4 + $0x670] sm:$0xff]  }
0x1559   :  { %v10457_v55 = vpack.c.bf16 %v5795_v52, %v5779_v16  ;;  %v10459_v56 = vpack.c.bf16 %v5797_v53, %v5781_v51  ;;  %8284 = vmatpush3.bf16.msra.mxu0 %v8842_v35  ;;  %8306 = vmatpush3.bf16.msra.mxu1 %v8843_v41  ;;  %v8877_v24 = vld [vmem:[%s10721_s4 + $0x6f0] sm:$0xff]   ;;  %v8880_v36 = vld [vmem:[%s10721_s4 + $0x678] sm:$0xff]   ;;  %v8884_v7 = vld [vmem:[%s10721_s4 + $0x740] sm:$0xff]  }
0x155a   :  { %8285 = vmatprep.subr.bf16.mxu0 %v8844_v49  ;;  %8307 = vmatprep.subr.bf16.mxu1 %v8845_v50  ;;  %v8878_v28 = vld [vmem:[%s10721_s4 + $0x630] sm:$0xff]   ;;  %v8881_v40 = vld [vmem:[%s10721_s4 + $0x6f8] sm:$0xff]   ;;  %v8885_v35 = vld [vmem:[%s10721_s4 + $0x7c0] sm:$0xff]  }
0x155b   :  { %v8879_v31 = vld [vmem:[%s10721_s4 + $0x6b0] sm:$0xff]   ;;  %v8882_v32 = vld [vmem:[%s10721_s4 + $0x638] sm:$0xff]   ;;  %v8886_v41 = vld [vmem:[%s10721_s4 + $0x700] sm:$0xff]  }
0x155c   :  { %v8883_v46 = vld [vmem:[%s10721_s4 + $0x6b8] sm:$0xff]   ;;  %v8887_v9 = vld [vmem:[%s10721_s4 + $0x780] sm:$0xff]   ;;  %v8888_v44 = vld [vmem:[%s10721_s4 + $0x748] sm:$0xff]  }
0x155d   :  { %8286 = vmatpush3.bf16.msra.mxu0 %v8846_v37  ;;  %8308 = vmatpush3.bf16.msra.mxu1 %v8847_v38  ;;  %v8889_v45 = vld [vmem:[%s10721_s4 + $0x7c8] sm:$0xff]   ;;  %v8894_v50 = vld [vmem:[%s10721_s4 + $0x710] sm:$0xff]   ;;  %v8896_v51 = vld [vmem:[%s10721_s4 + $0x758] sm:$0xff]  }
0x155e   :  { %8287 = vmatprep.subr.bf16.mxu0 %v8848_v59  ;;  %8309 = vmatprep.subr.bf16.mxu1 %v8849_v60  ;;  %v8890_v48 = vld [vmem:[%s10721_s4 + $0x708] sm:$0xff]   ;;  %v8895_v16 = vld [vmem:[%s10721_s4 + $0x790] sm:$0xff]   ;;  %v8897_v52 = vld [vmem:[%s10721_s4 + $0x7d8] sm:$0xff]  }
0x155f   :  { %v8891_v49 = vld [vmem:[%s10721_s4 + $0x788] sm:$0xff]   ;;  %v8898_v53 = vld [vmem:[%s10721_s4 + $0x718] sm:$0xff]   ;;  %v8901_v37 = vld [vmem:[%s10721_s4 + $0x7e0] sm:$0xff]  }
0x1560   :  { %v8902_v38 = vld [vmem:[%s10721_s4 + $0x720] sm:$0xff]   ;;  %v8904_v60 = vld [vmem:[%s10721_s4 + $0x768] sm:$0xff]  }
0x1561   :  { %8288 = vmatpush3.bf16.msra.mxu0 %v8850_v61  ;;  %8310 = vmatpush3.bf16.msra.mxu1 %v8851_v62  ;;  %v8903_v59 = vld [vmem:[%s10721_s4 + $0x7a0] sm:$0xff]   ;;  %v8905_v61 = vld [vmem:[%s10721_s4 + $0x7e8] sm:$0xff]  }
0x1562   :  { %8317 = vmatprep.subr.bf16.mxu0 %v8852_v63  ;;  %8339 = vmatprep.subr.bf16.mxu1 %v8853_v2  ;;  %v8906_v62 = vld [vmem:[%s10721_s4 + $0x728] sm:$0xff]   ;;  %v8908_v2 = vld [vmem:[%s10721_s4 + $0x770] sm:$0xff]  }
0x1563   :  { %v8907_v63 = vld [vmem:[%s10721_s4 + $0x7a8] sm:$0xff]  }
0x1564   :  { %6958 = vmatmul.mubr.bf16.vlgmr.msra.gmra.mrb[92].mxu0 %v10385_v29  ;;  %6999 = vmatmul.mubr.bf16.vlgmr.msra.gmra.mrb[96].mxu1 %v10387_v30  ;;  %v8860_v29 = vld [vmem:[%s10721_s4 + $0x650] sm:$0xff]  }
0x1565   :  { %8318 = vmatpush3.bf16.msra.mxu0 %v8854_v5  ;;  %7039 = vmatprep.mubr.bf16.mxu0 %v10425_v34  ;;  %v8861_v30 = vld [vmem:[%s10721_s4 + $0x6d0] sm:$0xff]  }
0x1566   :  { %8340 = vmatpush3.bf16.msra.mxu1 %v8855_v6  ;;  %7080 = vmatprep.mubr.bf16.mxu1 %v10427_v8  ;;  %v8863_v34 = vld [vmem:[%s10721_s4 + $0x690] sm:$0xff]   ;;  %v8864_v8 = vld [vmem:[%s10721_s4 + $0x658] sm:$0xff]  }
0x1567   :  { %8319 = vmatprep.subr.bf16.mxu0 %v8856_v10  ;;  %8341 = vmatprep.subr.bf16.mxu1 %v8857_v3  ;;  %v8909_v5 = vld [vmem:[%s10721_s4 + $0x7f0] sm:$0xff]   ;;  %v8912_v3 = vld [vmem:[%s10721_s4 + $0x778] sm:$0xff]  }
0x1568   :  { %v8910_v6 = vld [vmem:[%s10721_s4 + $0x730] sm:$0xff]  }
0x1569   :  { %8320 = vmatpush3.bf16.msra.mxu0 %v8858_v4  ;;  %v8911_v10 = vld [vmem:[%s10721_s4 + $0x7b0] sm:$0xff]   ;;  %v8913_v4 = vld [vmem:[%s10721_s4 + $0x7f8] sm:$0xff]  }
0x156a   :  { %8342 = vmatpush3.bf16.msra.mxu1 %v8859_v13  ;;  %8321 = vmatprep.subr.bf16.mxu0 %v8860_v29  ;;  %v8914_v13 = vld [vmem:[%s10721_s4 + $0x738] sm:$0xff]  }
0x156b   :  { %8343 = vmatprep.subr.bf16.mxu1 %v8861_v30  ;;  %v8915_v29 = vld [vmem:[%s10721_s4 + $0x7b8] sm:$0xff]  }
0x156d   :  { %8322 = vmatpush3.bf16.msra.mxu0 %v8862_v57 }
0x156e   :  { %8344 = vmatpush3.bf16.msra.mxu1 %v8863_v34  ;;  %8323 = vmatprep.subr.bf16.mxu0 %v8864_v8  ;;  %v10687_v34 = vld [vmem:[%s10719_s5 + $0x8] sm:$0xff] }
0x156f   :  { %8345 = vmatprep.subr.bf16.mxu1 %v8865_v33  ;;  %v6074_v8 = vrot.slane %v10687_v34, %v9316_v42 }
0x1571   :  { %8324 = vmatpush3.bf16.msra.mxu0 %v8866_v39 }
0x1572   :  { %8346 = vmatpush3.bf16.msra.mxu1 %v8867_v43  ;;  %8325 = vmatprep.subr.bf16.mxu0 %v8868_v11 }
0x1573   :  { %8347 = vmatprep.subr.bf16.mxu1 %v8869_v18 }
0x1575   :  { %8326 = vmatpush3.bf16.msra.mxu0 %v8870_v17 }
0x1576   :  { %8348 = vmatpush3.bf16.msra.mxu1 %v8871_v19  ;;  %8327 = vmatprep.subr.bf16.mxu0 %v8872_v26 }
0x1577   :  { %8349 = vmatprep.subr.bf16.mxu1 %v8873_v20 }
0x1579   :  { %8328 = vmatpush3.bf16.msra.mxu0 %v8874_v21 }
0x157a   :  { %8350 = vmatpush3.bf16.msra.mxu1 %v8875_v23  ;;  %8329 = vmatprep.subr.bf16.mxu0 %v8876_v47 }
0x157b   :  { %8351 = vmatprep.subr.bf16.mxu1 %v8877_v24 }
0x157d   :  { %8330 = vmatpush3.bf16.msra.mxu0 %v8878_v28 }
0x157e   :  { %8352 = vmatpush3.bf16.msra.mxu1 %v8879_v31  ;;  %8331 = vmatprep.subr.bf16.mxu0 %v8880_v36 }
0x157f   :  { %8353 = vmatprep.subr.bf16.mxu1 %v8881_v40 }
0x1581   :  { %8332 = vmatpush3.bf16.msra.mxu0 %v8882_v32 }
0x1582   :  { %8354 = vmatpush3.bf16.msra.mxu1 %v8883_v46  ;;  %8361 = vmatprep.subr.bf16.mxu0 %v8884_v7 }
0x1583   :  { %8383 = vmatprep.subr.bf16.mxu1 %v8885_v35 }
0x1584   :  { %7040 = vmatmul.mubr.bf16.vlgmr.msra.gmra.mrb[96].mxu0 %v10421_v58  ;;  %v8892_v58 = vld [vmem:[%s10721_s4 + $0x750] sm:$0xff]  }
0x1585   :  { %7081 = vmatmul.mubr.bf16.vlgmr.msra.gmra.mrb[100].mxu1 %v10423_v27  ;;  %8362 = vmatpush3.bf16.msra.mxu0 %v8886_v41  ;;  %v8893_v27 = vld [vmem:[%s10721_s4 + $0x7d0] sm:$0xff]  }
0x1586   :  { %7121 = vmatprep.mubr.bf16.mxu0 %v10457_v55  ;;  %8384 = vmatpush3.bf16.msra.mxu1 %v8887_v9  ;;  %v8899_v55 = vld [vmem:[%s10721_s4 + $0x798] sm:$0xff]  }
0x1587   :  { %7162 = vmatprep.mubr.bf16.mxu1 %v10459_v56  ;;  %8363 = vmatprep.subr.bf16.mxu0 %v8888_v44  ;;  %v8900_v56 = vld [vmem:[%s10721_s4 + $0x760] sm:$0xff]  }
0x1588   :  { %8385 = vmatprep.subr.bf16.mxu1 %v8889_v45 }
0x1589   :  { %8364 = vmatpush3.bf16.msra.mxu0 %v8890_v48 }
0x158a   :  { %8386 = vmatpush3.bf16.msra.mxu1 %v8891_v49  ;;  %8365 = vmatprep.subr.bf16.mxu0 %v8892_v58 }
0x158b   :  { %8387 = vmatprep.subr.bf16.mxu1 %v8893_v27 }
0x158d   :  { %8366 = vmatpush3.bf16.msra.mxu0 %v8894_v50 }
0x158e   :  { %8388 = vmatpush3.bf16.msra.mxu1 %v8895_v16  ;;  %8367 = vmatprep.subr.bf16.mxu0 %v8896_v51 }
0x158f   :  { %8389 = vmatprep.subr.bf16.mxu1 %v8897_v52 }
0x1591   :  { %8368 = vmatpush3.bf16.msra.mxu0 %v8898_v53 }
0x1592   :  { %8390 = vmatpush3.bf16.msra.mxu1 %v8899_v55  ;;  %8369 = vmatprep.subr.bf16.mxu0 %v8900_v56 }
0x1593   :  { %8391 = vmatprep.subr.bf16.mxu1 %v8901_v37 }
0x1595   :  { %8370 = vmatpush3.bf16.msra.mxu0 %v8902_v38 }
0x1596   :  { %8392 = vmatpush3.bf16.msra.mxu1 %v8903_v59  ;;  %8371 = vmatprep.subr.bf16.mxu0 %v8904_v60 }
0x1597   :  { %8393 = vmatprep.subr.bf16.mxu1 %v8905_v61 }
0x1599   :  { %8372 = vmatpush3.bf16.msra.mxu0 %v8906_v62 }
0x159a   :  { %8394 = vmatpush3.bf16.msra.mxu1 %v8907_v63  ;;  %8373 = vmatprep.subr.bf16.mxu0 %v8908_v2 }
0x159b   :  { %8395 = vmatprep.subr.bf16.mxu1 %v8909_v5 }
0x159d   :  { %8374 = vmatpush3.bf16.msra.mxu0 %v8910_v6 }
0x159e   :  { %8396 = vmatpush3.bf16.msra.mxu1 %v8911_v10  ;;  %8375 = vmatprep.subr.bf16.mxu0 %v8912_v3 }
0x159f   :  { %8397 = vmatprep.subr.bf16.mxu1 %v8913_v4 }
0x15a1   :  { %8376 = vmatpush3.bf16.msra.mxu0 %v8914_v13 }
0x15a2   :  { %8398 = vmatpush3.bf16.msra.mxu1 %v8915_v29  ;;  %8600 = vmatprep.subr.bf16.mxu0 %v9001_v0 }
0x15a4   :  { %7122 = vmatmul.mubr.bf16.vlgmr.msra.gmra.mrb[100].mxu0 %v10453_v15 }
0x15a5   :  { %7163 = vmatmul.mubr.bf16.vlgmr.msra.gmra.mrb[104].mxu1 %v10455_v54  ;;  %8604 = vmatprep.mubr.msk.bf16.mxu0 %vm9002_vm0, %v9001_v0 }
0x1617   :  { %v8245_v30 = vpop.f32.mrb[88].mxu0  ;;  %v8267_v57 = vpop.f32.mrb[92].mxu1 }
0x1618   :  { %v8246_v33 = vpop.f32.mrb[89].mxu0  ;;  %v8268_v39 = vpop.f32.mrb[93].mxu1 }
0x1619   :  { %v8247_v43 = vadd.f32 %v8246_v33, %v8245_v30  ;;  %v8269_v11 = vadd.f32 %v8268_v39, %v8267_v57  ;;  %v8248_v15 = vpop.f32.mrb[90].mxu0  ;;  %v8270_v18 = vpop.f32.mrb[94].mxu1 }
0x161a   :  { %v8249_v54 = vpop.f32.mrb[91].mxu0  ;;  %v8271_v17 = vpop.f32.mrb[95].mxu1 }
0x161b   :  { %v6878_v19 = vadd.f32 %v8247_v43, %v6074_v8  ;;  %v8250_v26 = vadd.f32 %v8249_v54, %v8248_v15  ;;  %v8272_v20 = vadd.f32 %v8271_v17, %v8270_v18 }
0x161d   :  { %v6919_v21 = vadd.f32 %v8269_v11, %v6878_v19  ;;  %v6881_v23 = vadd.f32 %v8250_v26, %v6074_v8 }
0x161f   :  { %v6922_v47 = vadd.f32 %v8272_v20, %v6881_v23 }
0x1637   :  { %v8289_v24 = vpop.f32.mrb[92].mxu0  ;;  %v8311_v28 = vpop.f32.mrb[96].mxu1 }
0x1638   :  { %v8290_v31 = vpop.f32.mrb[93].mxu0  ;;  %v8312_v36 = vpop.f32.mrb[97].mxu1 }
0x1639   :  { %v8291_v40 = vadd.f32 %v8290_v31, %v8289_v24  ;;  %v8313_v42 = vadd.f32 %v8312_v36, %v8311_v28  ;;  %v8292_v32 = vpop.f32.mrb[94].mxu0  ;;  %v8314_v46 = vpop.f32.mrb[98].mxu1 }
0x163a   :  { %v8293_v7 = vpop.f32.mrb[95].mxu0  ;;  %v8315_v35 = vpop.f32.mrb[99].mxu1 }
0x163b   :  { %v6960_v41 = vadd.f32 %v8291_v40, %v6919_v21  ;;  %v8294_v9 = vadd.f32 %v8293_v7, %v8292_v32  ;;  %v8316_v44 = vadd.f32 %v8315_v35, %v8314_v46  ;;  %v8917_v40 = vld [vmem:[%s10717_s1 + $0x28] sm:$0xff]  }
0x163d   :  { %v7001_v45 = vadd.f32 %v8313_v42, %v6960_v41  ;;  %v6963_v48 = vadd.f32 %v8294_v9, %v6922_v47  ;;  %v7202_v9 = vrot.slane %v10687_v34, %v9524_v22 }
0x163f   :  { %v7004_v49 = vadd.f32 %v8316_v44, %v6963_v48 }
0x1657   :  { %v8333_v58 = vpop.f32.mrb[96].mxu0 }
0x1658   :  { %v8355_v27 = vpop.f32.mrb[100].mxu1  ;;  %v8334_v50 = vpop.f32.mrb[97].mxu0 }
0x1659   :  { %v8335_v16 = vadd.f32 %v8334_v50, %v8333_v58  ;;  %v8356_v51 = vpop.f32.mrb[101].mxu1  ;;  %v8336_v52 = vpop.f32.mrb[98].mxu0 }
0x165a   :  { %v8357_v53 = vadd.f32 %v8356_v51, %v8355_v27  ;;  %v8358_v55 = vpop.f32.mrb[102].mxu1  ;;  %v8337_v56 = vpop.f32.mrb[99].mxu0 }
0x165b   :  { %v7042_v37 = vadd.f32 %v8335_v16, %v7001_v45  ;;  %v8338_v38 = vadd.f32 %v8337_v56, %v8336_v52  ;;  %v8359_v59 = vpop.f32.mrb[103].mxu1  ;;  %v7220_v52 = vrot.slane %v10687_v34, %v9527_v12 }
0x165c   :  { %v8360_v60 = vadd.f32 %v8359_v59, %v8358_v55 }
0x165d   :  { %v7083_v61 = vadd.f32 %v8357_v53, %v7042_v37  ;;  %v7045_v62 = vadd.f32 %v8338_v38, %v7004_v49 }
0x165f   :  { %v7086_v63 = vadd.f32 %v8360_v60, %v7045_v62 }
0x1677   :  { %v8377_v2 = vpop.f32.mrb[100].mxu0 }
0x1678   :  { %v8399_v5 = vpop.f32.mrb[104].mxu1  ;;  %v8378_v6 = vpop.f32.mrb[101].mxu0 }
0x1679   :  { %v8379_v10 = vadd.f32 %v8378_v6, %v8377_v2  ;;  %v8400_v3 = vpop.f32.mrb[105].mxu1  ;;  %v8380_v4 = vpop.f32.mrb[102].mxu0 }
0x167a   :  { %v8401_v13 = vadd.f32 %v8400_v3, %v8399_v5  ;;  %v8402_v29 = vpop.f32.mrb[106].mxu1  ;;  %v8381_v30 = vpop.f32.mrb[103].mxu0 }
0x167b   :  { %v7124_v57 = vadd.f32 %v8379_v10, %v7083_v61  ;;  %v8382_v8 = vadd.f32 %v8381_v30, %v8380_v4  ;;  %v8403_v33 = vpop.f32.mrb[107].mxu1 }
0x167c   :  { %v8404_v39 = vadd.f32 %v8403_v33, %v8402_v29 }
0x167d   :  { %v7165_v43 = vadd.f32 %v8401_v13, %v7124_v57  ;;  %v7127_v11 = vadd.f32 %v8382_v8, %v7086_v63 }
0x167f   :  { %v7168_v15 = vadd.f32 %v8404_v39, %v7127_v11  ;;  %v7171_v18 = vadd.f32 %v7165_v43, %v10157_v1 }
0x1681   :  { %v7173_v54 = vsel %vm45_vm1, %v7171_v18, 0.0  ;;  %v7172_v17 = vadd.f32 %v7168_v15, %v10159_v14  ;;  %v8916_v14 = vld [vmem:[%s10717_s1 + $0x20] sm:$0xff]  }
0x1682   :  { %7174 = vadd.xlane.f32.xlu1 %v7173_v54  ;;  %8601 = vmatpush3.bf16.msra.mxu0 %v8916_v14 }
0x1683   :  { %v7176_v19 = vsel %vm45_vm1, %v7172_v17, 0.0  ;;  %8602 = vmatprep.subr.bf16.mxu0 %v9001_v0  ;;  %v7208_v0 = vrot.slane %v10687_v34, %v9530_v25 }
0x1684   :  { %7177 = vadd.xlane.f32.xlu0 %v7176_v19 }
0x1686   :  { %8603 = vmatpush3.bf16.msra.mxu0 %v8917_v40 }
0x170f   :  { %v7175_v26 = vpop.xlane.xlu1 %7174 }
0x1710   :  { %v7179_v20 = vmul.f32 0.03125, %v7175_v26 }
0x1711   :  { %v7178_v21 = vpop.xlane.xlu0 %7177 }
0x1712   :  { %v7181_v23 = vsub.f32 %v7171_v18, %v7179_v20  ;;  %v7180_v47 = vmul.f32 0.03125, %v7178_v21 }
0x1714   :  { %v7182_v24 = vsub.f32 %v7172_v17, %v7180_v47  ;;  %v7183_v28 = vmul.f32 %v7181_v23, %v7181_v23 }
0x1716   :  { %v7185_v31 = vsel %vm45_vm1, %v7183_v28, 0.0  ;;  %v7184_v36 = vmul.f32 %v7182_v24, %v7182_v24 }
0x1717   :  { %7186 = vadd.xlane.f32.xlu1 %v7185_v31 }
0x1718   :  { %v7188_v1 = vsel %vm45_vm1, %v7184_v36, 0.0 }
0x1719   :  { %7189 = vadd.xlane.f32.xlu0 %v7188_v1 }
0x17a4   :  { %v7187_v42 = vpop.xlane.xlu1 %7186 }
0x17a5   :  { %v7191_v32 = vmul.f32 0.03125, %v7187_v42 }
0x17a6   :  { %v7190_v46 = vpop.xlane.xlu0 %7189 }
0x17a7   :  { %v7193_v7 = vadd.f32 1e-05, %v7191_v32  ;;  %v7192_v35 = vmul.f32 0.03125, %v7190_v46 }
0x17a9   :  { %8994 = vrsqrt.f32 %v7193_v7  ;;  %v7194_v41 = vadd.f32 1e-05, %v7192_v35 }
0x17ab   :  { %8996 = vrsqrt.f32 %v7194_v41 }
0x17b3   :  { %v8995_v44 = vpop.eup %8994 }
0x17b4   :  { %v7197_v45 = vmul.f32 %v8995_v44, %v7181_v23 }
0x17b5   :  { %v8997_v48 = vpop.eup %8996 }
0x17b6   :  { %v7203_v49 = vmul.f32 %v7202_v9, %v7197_v45  ;;  %v7198_v58 = vmul.f32 %v8997_v48, %v7182_v24 }
0x17b8   :  { %v7204_v27 = vmul.f32 %v7202_v9, %v7198_v58  ;;  %v7209_v50 = vadd.f32 %v7208_v0, %v7203_v49 }
0x17ba   :  { %v7210_v16 = vadd.f32 %v7208_v0, %v7204_v27 }
0x17bc   :  { %v7211_v51 = vpack.c.bf16 %v7210_v16, %v7209_v50 }
0x17be   :  { %8605 = vmatmul.mubr.msk.bf16.vlgmr.msra.gmra.mrb[104].mxu0 %vm45_vm1, %v7211_v51 }
0x1891   :  { %v7270_v53 = vpop.f32.mrb[104].mxu0 }
0x1892   :  { %v7271_v55 = vadd.f32 %v7270_v53, %v7220_v52  ;;  %v8606_v22 = vpop.f32.mrb[105].mxu0 }
0x1893   :  { %v7273_v56 = vpop.f32.mrb[106].mxu0 }
0x1894   :  { %7277 = vst [vmem:[%s10723_s6] sm:$0xff] %v7271_v55  ;;  %v7274_v37 = vadd.f32 %v7273_v56, %v7220_v52  ;;  %v8607_v38 = vpop.f32.mrb[107].mxu0 }
0x1896   :  { %7278 = vst [vmem:[%s10723_s6 + $0x8] sm:$0xff] %v7274_v37 }

</bundles_post_ra>
